<compile_context>
chip_gen: v5e
topology: v5e:2x2
jax: 0.10.0
libtpu: 0.0.40
codegen_flags: <defaults>
</compile_context>

<pallas_src>
import jax
import jax.numpy as jnp
from jax.experimental import pallas as pl
from jax.experimental.pallas import tpu as pltpu

# ---- model dims -------------------------------------------------------------
D_IN = 784          # 28 * 28  (kept unpadded: full-extent lane blocks)
D_H = 400
D_H_P = 512         # hidden padded to 4 * 128 lanes
LP = 128            # padded latent width (requires latent_dim <= 128)


def _round_up(x, m):
    return (x + m - 1) // m * m


# ---- fused kernel -----------------------------------------------------------
def vae_kernel(x_ref, eps_ref, w1_ref, b1_ref, wenc_ref, benc_ref,
               w3_ref, b3_ref, w4_ref, b4_ref,
               recon_ref, mulogvar_ref):
    # fc1 + relu            : [TB, 784](bf16) @ [784, 512](bf16) -> f32 acc
    h1 = jnp.dot(x_ref[...], w1_ref[...], preferred_element_type=jnp.float32)
    h1 = jnp.maximum(h1 + b1_ref[...], 0.0)                            # f32 [TB, 512]

    # fused fc21|fc22       : one N=256 matmul; mu lanes [0:128), logvar [128:256)
    enc = jnp.dot(h1.astype(jnp.bfloat16), wenc_ref[...],
                  preferred_element_type=jnp.float32) + benc_ref[...]  # f32 [TB, 256]
    mu = enc[:, :LP]
    logvar = enc[:, LP:]

    # reparameterize: padded lanes have logvar == 0 and eps == 0, so z stays 0
    z = mu + eps_ref[...].astype(jnp.float32) * jnp.exp(0.5 * logvar)  # f32 [TB, 128]

    # fc3 + relu            : [TB, 128] @ [128, 512]
    h3 = jnp.dot(z.astype(jnp.bfloat16), w3_ref[...],
                 preferred_element_type=jnp.float32)
    h3 = jnp.maximum(h3 + b3_ref[...], 0.0)                            # f32 [TB, 512]

    # fc4 + sigmoid         : [TB, 512] @ [512, 784]
    logits = jnp.dot(h3.astype(jnp.bfloat16), w4_ref[...],
                     preferred_element_type=jnp.float32) + b4_ref[...]  # f32 [TB, 784]
    recon_ref[...] = jax.nn.sigmoid(logits).astype(recon_ref.dtype)     # bf16 store
    mulogvar_ref[...] = enc                                             # f32 store


# ---- parameter preparation (pad + fuse + bf16 cast, done once) --------------
def prepare_params(params):
    """params: natural-shape f32 weights ([in, out]) / biases ([1, out])."""
    L = params["w21"].shape[1]
    assert L <= LP, f"latent_dim={L} must be <= {LP}"

    def pad2(a, shape):
        out = jnp.zeros(shape, jnp.float32)
        return out.at[:a.shape[0], :a.shape[1]].set(a)

    w1p = pad2(params["w1"], (D_IN, D_H_P)).astype(jnp.bfloat16)   # [784, 512]
    b1p = pad2(params["b1"], (1, D_H_P))                           # f32

    wenc = jnp.zeros((D_H_P, 2 * LP), jnp.float32)
    wenc = wenc.at[:D_H, :L].set(params["w21"])
    wenc = wenc.at[:D_H, LP:LP + L].set(params["w22"])
    wenc = wenc.astype(jnp.bfloat16)                               # [512, 256]
    benc = jnp.zeros((1, 2 * LP), jnp.float32)
    benc = benc.at[:, :L].set(params["b21"]).at[:, LP:LP + L].set(params["b22"])

    w3p = pad2(params["w3"], (LP, D_H_P)).astype(jnp.bfloat16)     # [128, 512]
    b3p = pad2(params["b3"], (1, D_H_P))
    w4p = pad2(params["w4"], (D_H_P, D_IN)).astype(jnp.bfloat16)   # [512, 784]
    b4p = params["b4"].astype(jnp.float32)                         # [1, 784]

    return dict(w1=w1p, b1=b1p, wenc=wenc, benc=benc,
                w3=w3p, b3=b3p, w4=w4p, b4=b4p)


# ---- wrapper ----------------------------------------------------------------
def vae_forward(x, prep, latent_dim, eps, *, block_b=512, min_blocks=2):
    """x: [B, 1, 28, 28] f32 NCHW. Returns (recon [B,784] bf16, mu [B,L], logvar [B,L])."""
    B = x.shape[0]
    L = latent_dim
    x2d = x.reshape(B, D_IN).astype(jnp.bfloat16)   # same as torch x.view(-1, 784)

    # Batch tile: multiple of 8 rows.  Split into >= min_blocks tiles when the
    # batch is big enough so the "parallel" grid axis can shard across both
    # TensorCores on v7x; cap at block_b rows for the v6e/v5e roofline.
    b8 = _round_up(B, 8)
    if b8 <= 8 * min_blocks:
        tb = b8
    else:
        tb = min(_round_up(-(-B // min_blocks), 8), _round_up(block_b, 8))
    b_pad = _round_up(B, tb)
    n_blocks = b_pad // tb

    # Only pad the batch dim, and only when there is a remainder tile.
    if b_pad == B:
        x_in = x2d
    else:
        x_in = jnp.zeros((b_pad, D_IN), jnp.bfloat16).at[:B].set(x2d)
    eps_in = (jnp.zeros((b_pad, LP), jnp.bfloat16)
              .at[:B, :L].set(eps.astype(jnp.bfloat16)))

    def batch_spec(cols):
        return pl.BlockSpec((tb, cols), lambda i: (i, 0))

    def resident_spec(shape):
        # constant block index -> the pipeline re-uses the buffer across steps
        # (no re-DMA of the ~2 MiB of weights per batch tile).
        return pl.BlockSpec(shape, lambda i: (0, 0))

    in_specs = [
        batch_spec(D_IN),                       # x            (bf16)
        batch_spec(LP),                         # eps          (bf16)
        resident_spec((D_IN, D_H_P)),           # w1           (bf16)
        resident_spec((1, D_H_P)),              # b1           (f32)
        resident_spec((D_H_P, 2 * LP)),         # wenc fused fc21|fc22 (bf16)
        resident_spec((1, 2 * LP)),             # benc         (f32)
        resident_spec((LP, D_H_P)),             # w3           (bf16)
        resident_spec((1, D_H_P)),              # b3           (f32)
        resident_spec((D_H_P, D_IN)),           # w4           (bf16)
        resident_spec((1, D_IN)),               # b4           (f32)
    ]
    out_specs = (batch_spec(D_IN), batch_spec(2 * LP))
    out_shape = (jax.ShapeDtypeStruct((b_pad, D_IN), jnp.bfloat16),   # recon
                 jax.ShapeDtypeStruct((b_pad, 2 * LP), jnp.float32))  # mu|logvar slab

    # advisory cost so XLA can overlap the kernel with surrounding ops
    flops = 2 * b_pad * (D_IN * D_H_P + D_H_P * 2 * LP + LP * D_H_P + D_H_P * D_IN)
    transcendentals = b_pad * (LP + D_IN)                 # exp (reparam) + sigmoid
    weight_bytes = sum(int(v.size) * v.dtype.itemsize for v in prep.values())
    bytes_accessed = (int(x_in.size) * 2 + int(eps_in.size) * 2 +
                      b_pad * D_IN * 2 + b_pad * 2 * LP * 4 + weight_bytes)

    recon_pad, mulogvar = pl.pallas_call(
        vae_kernel,
        grid=(n_blocks,),
        in_specs=in_specs,
        out_specs=out_specs,
        out_shape=out_shape,
        cost_estimate=pl.CostEstimate(flops=flops,
                                      transcendentals=transcendentals,
                                      bytes_accessed=bytes_accessed),
        compiler_params=pltpu.CompilerParams(
            dimension_semantics=("parallel",),   # batch tiles independent -> 2 TCs on v7x
            vmem_limit_bytes=32 << 20,           # <~12 MiB footprint at tb=512 bf16 I/O
        ),
    )(x_in, eps_in, prep["w1"], prep["b1"], prep["wenc"], prep["benc"],
      prep["w3"], prep["b3"], prep["w4"], prep["b4"])

    # slices are identities when b_pad == B (no extra copy of recon)
    recon = recon_pad[:B]
    mu = mulogvar[:B, :L]
    logvar = mulogvar[:B, LP:LP + L]
    return recon, mu, logvar


# ---- f32 reference + init ---------------------------------------------------
def init_params(key, latent_dim):
    """PyTorch-style Linear init; weights stored transposed ([in, out])."""
    def linear(k, fan_in, fan_out):
        k1, k2 = jax.random.split(k)
        bound = 1.0 / jnp.sqrt(fan_in)
        w = jax.random.uniform(k1, (fan_in, fan_out), jnp.float32, -bound, bound)
        b = jax.random.uniform(k2, (1, fan_out), jnp.float32, -bound, bound)
        return w, b

    ks = jax.random.split(key, 5)
    w1, b1 = linear(ks[0], 784, 400)
    w21, b21 = linear(ks[1], 400, latent_dim)
    w22, b22 = linear(ks[2], 400, latent_dim)
    w3, b3 = linear(ks[3], latent_dim, 400)
    w4, b4 = linear(ks[4], 400, 784)
    return dict(w1=w1, b1=b1, w21=w21, b21=b21, w22=w22, b22=b22,
                w3=w3, b3=b3, w4=w4, b4=b4)


def vae_forward_ref(x, params, eps):
    """Pure-JAX f32 reference mirroring the PyTorch forward."""
    B = x.shape[0]
    x2d = x.reshape(B, 784)
    h1 = jax.nn.relu(x2d @ params["w1"] + params["b1"])
    mu = h1 @ params["w21"] + params["b21"]
    logvar = h1 @ params["w22"] + params["b22"]
    z = mu + eps * jnp.exp(0.5 * logvar)
    h3 = jax.nn.relu(z @ params["w3"] + params["b3"])
    recon = jax.nn.sigmoid(h3 @ params["w4"] + params["b4"])
    return recon, mu, logvar


if __name__ == "__main__":
    batch = 2
    latent_dim = 32

    key = jax.random.PRNGKey(0)
    k_x, k_p, k_eps = jax.random.split(key, 3)

    x = jax.random.uniform(k_x, (batch, 1, 28, 28), jnp.float32)   # NCHW, MNIST-like
    params = init_params(k_p, latent_dim)
    eps = jax.random.normal(k_eps, (batch, latent_dim), jnp.float32)

    prep = prepare_params(params)
    recon, mu, logvar = jax.block_until_ready(
        vae_forward(x, prep, latent_dim, eps))

    # correctness check against the pure-JAX f32 reference
    # (bf16 weights + bf16 x/eps/recon I/O in the kernel -> relaxed tolerance)
    r_ref, mu_ref, lv_ref = vae_forward_ref(x, params, eps)
    assert recon.shape == (batch, 784)
    assert mu.shape == (batch, latent_dim) and logvar.shape == (batch, latent_dim)
    assert jnp.allclose(recon.astype(jnp.float32), r_ref, atol=2e-2, rtol=2e-2)
    assert jnp.allclose(mu, mu_ref, atol=2e-2, rtol=2e-2)
    assert jnp.allclose(logvar, lv_ref, atol=2e-2, rtol=2e-2)

    print("KERNEL_OK")
</pallas_src>

<mosaic_0001>
module attributes {stable_mosaic.version = 11 : i64} {
  func.func @vae_kernel(%arg0: i32, %arg1: memref<8x784xbf16, #tpu.memory_space<vmem>>, %arg2: memref<8x128xbf16, #tpu.memory_space<vmem>>, %arg3: memref<784x512xbf16, #tpu.memory_space<vmem>>, %arg4: memref<1x512xf32, #tpu.memory_space<vmem>>, %arg5: memref<512x256xbf16, #tpu.memory_space<vmem>>, %arg6: memref<1x256xf32, #tpu.memory_space<vmem>>, %arg7: memref<128x512xbf16, #tpu.memory_space<vmem>>, %arg8: memref<1x512xf32, #tpu.memory_space<vmem>>, %arg9: memref<512x784xbf16, #tpu.memory_space<vmem>>, %arg10: memref<1x784xf32, #tpu.memory_space<vmem>>, %arg11: memref<8x784xbf16, #tpu.memory_space<vmem>>, %arg12: memref<8x256xf32, #tpu.memory_space<vmem>>) attributes {dimension_semantics = [#tpu.dimension_semantics<parallel>], iteration_bounds = array<i64: 1>, scalar_prefetch = 0 : i64, scratch_operands = 0 : i64, tpu.core_type = #tpu.core_type<tc>, window_params = [{transform_indices = @transform_0, window_bounds = array<i64: 8, 784>}, {transform_indices = @transform_1, window_bounds = array<i64: 8, 128>}, {pipeline_mode = #tpu.pipeline_mode<synchronous>, transform_indices = @transform_2, window_bounds = array<i64: 784, 512>}, {pipeline_mode = #tpu.pipeline_mode<synchronous>, transform_indices = @transform_3, window_bounds = array<i64: 1, 512>}, {pipeline_mode = #tpu.pipeline_mode<synchronous>, transform_indices = @transform_4, window_bounds = array<i64: 512, 256>}, {pipeline_mode = #tpu.pipeline_mode<synchronous>, transform_indices = @transform_5, window_bounds = array<i64: 1, 256>}, {pipeline_mode = #tpu.pipeline_mode<synchronous>, transform_indices = @transform_6, window_bounds = array<i64: 128, 512>}, {pipeline_mode = #tpu.pipeline_mode<synchronous>, transform_indices = @transform_7, window_bounds = array<i64: 1, 512>}, {pipeline_mode = #tpu.pipeline_mode<synchronous>, transform_indices = @transform_8, window_bounds = array<i64: 512, 784>}, {pipeline_mode = #tpu.pipeline_mode<synchronous>, transform_indices = @transform_9, window_bounds = array<i64: 1, 784>}, {transform_indices = @transform_10, window_bounds = array<i64: 8, 784>}, {transform_indices = @transform_11, window_bounds = array<i64: 8, 256>}]} {
    %c0 = arith.constant 0 : index
    %c0_0 = arith.constant 0 : index
    %0 = vector.load %arg1[%c0, %c0_0] : memref<8x784xbf16, #tpu.memory_space<vmem>>, vector<8x784xbf16>
    %c0_1 = arith.constant 0 : index
    %c0_2 = arith.constant 0 : index
    %1 = vector.load %arg3[%c0_1, %c0_2] : memref<784x512xbf16, #tpu.memory_space<vmem>>, vector<784x512xbf16>
    %cst = arith.constant dense<0.000000e+00> : vector<8x512xf32>
    %2 = tpu.matmul %0, %1, %cst {dimension_numbers = #tpu.dot_dimension_numbers<[1], [0], [0], [1], [0, 0, 1, 1], [], []>} : vector<8x784xbf16>, vector<784x512xbf16>, vector<8x512xf32> -> vector<8x512xf32>
    %c0_3 = arith.constant 0 : index
    %c0_4 = arith.constant 0 : index
    %3 = vector.load %arg4[%c0_3, %c0_4] : memref<1x512xf32, #tpu.memory_space<vmem>>, vector<1x512xf32>
    %4 = vector.broadcast %3 : vector<1x512xf32> to vector<8x512xf32>
    %5 = arith.addf %2, %4 : vector<8x512xf32>
    %cst_5 = arith.constant 0.000000e+00 : f32
    %6 = vector.broadcast %cst_5 : f32 to vector<8x512xf32>
    %7 = arith.maximumf %5, %6 : vector<8x512xf32>
    %8 = arith.truncf %7 : vector<8x512xf32> to vector<8x512xbf16>
    %c0_6 = arith.constant 0 : index
    %c0_7 = arith.constant 0 : index
    %9 = vector.load %arg5[%c0_6, %c0_7] : memref<512x256xbf16, #tpu.memory_space<vmem>>, vector<512x256xbf16>
    %cst_8 = arith.constant dense<0.000000e+00> : vector<8x256xf32>
    %10 = tpu.matmul %8, %9, %cst_8 {dimension_numbers = #tpu.dot_dimension_numbers<[1], [0], [0], [1], [0, 0, 1, 1], [], []>} : vector<8x512xbf16>, vector<512x256xbf16>, vector<8x256xf32> -> vector<8x256xf32>
    %c0_9 = arith.constant 0 : index
    %c0_10 = arith.constant 0 : index
    %11 = vector.load %arg6[%c0_9, %c0_10] : memref<1x256xf32, #tpu.memory_space<vmem>>, vector<1x256xf32>
    %12 = vector.broadcast %11 : vector<1x256xf32> to vector<8x256xf32>
    %13 = arith.addf %10, %12 : vector<8x256xf32>
    %14 = vector.extract_strided_slice %13 {offsets = [0, 0], sizes = [8, 128], strides = [1, 1]} : vector<8x256xf32> to vector<8x128xf32>
    %15 = vector.extract_strided_slice %13 {offsets = [0, 128], sizes = [8, 128], strides = [1, 1]} : vector<8x256xf32> to vector<8x128xf32>
    %c0_11 = arith.constant 0 : index
    %c0_12 = arith.constant 0 : index
    %16 = vector.load %arg2[%c0_11, %c0_12] : memref<8x128xbf16, #tpu.memory_space<vmem>>, vector<8x128xbf16>
    %17 = arith.extf %16 : vector<8x128xbf16> to vector<8x128xf32>
    %cst_13 = arith.constant 5.000000e-01 : f32
    %18 = vector.broadcast %cst_13 : f32 to vector<8x128xf32>
    %19 = arith.mulf %18, %15 : vector<8x128xf32>
    %20 = math.exp %19 : vector<8x128xf32>
    %21 = arith.mulf %17, %20 : vector<8x128xf32>
    %22 = arith.addf %14, %21 : vector<8x128xf32>
    %23 = arith.truncf %22 : vector<8x128xf32> to vector<8x128xbf16>
    %c0_14 = arith.constant 0 : index
    %c0_15 = arith.constant 0 : index
    %24 = vector.load %arg7[%c0_14, %c0_15] : memref<128x512xbf16, #tpu.memory_space<vmem>>, vector<128x512xbf16>
    %cst_16 = arith.constant dense<0.000000e+00> : vector<8x512xf32>
    %25 = tpu.matmul %23, %24, %cst_16 {dimension_numbers = #tpu.dot_dimension_numbers<[1], [0], [0], [1], [0, 0, 1, 1], [], []>} : vector<8x128xbf16>, vector<128x512xbf16>, vector<8x512xf32> -> vector<8x512xf32>
    %c0_17 = arith.constant 0 : index
    %c0_18 = arith.constant 0 : index
    %26 = vector.load %arg8[%c0_17, %c0_18] : memref<1x512xf32, #tpu.memory_space<vmem>>, vector<1x512xf32>
    %27 = vector.broadcast %26 : vector<1x512xf32> to vector<8x512xf32>
    %28 = arith.addf %25, %27 : vector<8x512xf32>
    %cst_19 = arith.constant 0.000000e+00 : f32
    %29 = vector.broadcast %cst_19 : f32 to vector<8x512xf32>
    %30 = arith.maximumf %28, %29 : vector<8x512xf32>
    %31 = arith.truncf %30 : vector<8x512xf32> to vector<8x512xbf16>
    %c0_20 = arith.constant 0 : index
    %c0_21 = arith.constant 0 : index
    %32 = vector.load %arg9[%c0_20, %c0_21] : memref<512x784xbf16, #tpu.memory_space<vmem>>, vector<512x784xbf16>
    %cst_22 = arith.constant dense<0.000000e+00> : vector<8x784xf32>
    %33 = tpu.matmul %31, %32, %cst_22 {dimension_numbers = #tpu.dot_dimension_numbers<[1], [0], [0], [1], [0, 0, 1, 1], [], []>} : vector<8x512xbf16>, vector<512x784xbf16>, vector<8x784xf32> -> vector<8x784xf32>
    %c0_23 = arith.constant 0 : index
    %c0_24 = arith.constant 0 : index
    %34 = vector.load %arg10[%c0_23, %c0_24] : memref<1x784xf32, #tpu.memory_space<vmem>>, vector<1x784xf32>
    %35 = vector.broadcast %34 : vector<1x784xf32> to vector<8x784xf32>
    %36 = arith.addf %33, %35 : vector<8x784xf32>
    %37 = arith.negf %36 : vector<8x784xf32>
    %38 = math.exp %37 : vector<8x784xf32>
    %cst_25 = arith.constant 1.000000e+00 : f32
    %39 = vector.broadcast %cst_25 : f32 to vector<8x784xf32>
    %40 = arith.addf %39, %38 : vector<8x784xf32>
    %41 = arith.divf %39, %40 : vector<8x784xf32>
    %42 = arith.truncf %41 : vector<8x784xf32> to vector<8x784xbf16>
    %c0_26 = arith.constant 0 : index
    %c0_27 = arith.constant 0 : index
    %43 = vector.load %arg11[%c0_26, %c0_27] : memref<8x784xbf16, #tpu.memory_space<vmem>>, vector<8x784xbf16>
    tpu.vector_store %arg11[%c0_26, %c0_27], %42 {strides = array<i32>} : memref<8x784xbf16, #tpu.memory_space<vmem>>, vector<8x784xbf16>,
    %c0_28 = arith.constant 0 : index
    %c0_29 = arith.constant 0 : index
    %44 = vector.load %arg12[%c0_28, %c0_29] : memref<8x256xf32, #tpu.memory_space<vmem>>, vector<8x256xf32>
    tpu.vector_store %arg12[%c0_28, %c0_29], %13 {strides = array<i32>} : memref<8x256xf32, #tpu.memory_space<vmem>>, vector<8x256xf32>,
    return
  }
  func.func @transform_0(%arg0: i32) -> (i32, i32) {
    %c0_i32 = arith.constant 0 : i32
    %c0_i32_0 = arith.constant 0 : i32
    return %arg0, %c0_i32 : i32, i32
  }
  func.func @transform_1(%arg0: i32) -> (i32, i32) {
    %c0_i32 = arith.constant 0 : i32
    %c0_i32_0 = arith.constant 0 : i32
    return %arg0, %c0_i32 : i32, i32
  }
  func.func @transform_2(%arg0: i32) -> (i32, i32) {
    %c0_i32 = arith.constant 0 : i32
    %c0_i32_0 = arith.constant 0 : i32
    %c0_i32_1 = arith.constant 0 : i32
    return %c0_i32, %c0_i32_0 : i32, i32
  }
  func.func @transform_3(%arg0: i32) -> (i32, i32) {
    %c0_i32 = arith.constant 0 : i32
    %c0_i32_0 = arith.constant 0 : i32
    %c0_i32_1 = arith.constant 0 : i32
    return %c0_i32, %c0_i32_0 : i32, i32
  }
  func.func @transform_4(%arg0: i32) -> (i32, i32) {
    %c0_i32 = arith.constant 0 : i32
    %c0_i32_0 = arith.constant 0 : i32
    %c0_i32_1 = arith.constant 0 : i32
    return %c0_i32, %c0_i32_0 : i32, i32
  }
  func.func @transform_5(%arg0: i32) -> (i32, i32) {
    %c0_i32 = arith.constant 0 : i32
    %c0_i32_0 = arith.constant 0 : i32
    %c0_i32_1 = arith.constant 0 : i32
    return %c0_i32, %c0_i32_0 : i32, i32
  }
  func.func @transform_6(%arg0: i32) -> (i32, i32) {
    %c0_i32 = arith.constant 0 : i32
    %c0_i32_0 = arith.constant 0 : i32
    %c0_i32_1 = arith.constant 0 : i32
    return %c0_i32, %c0_i32_0 : i32, i32
  }
  func.func @transform_7(%arg0: i32) -> (i32, i32) {
    %c0_i32 = arith.constant 0 : i32
    %c0_i32_0 = arith.constant 0 : i32
    %c0_i32_1 = arith.constant 0 : i32
    return %c0_i32, %c0_i32_0 : i32, i32
  }
  func.func @transform_8(%arg0: i32) -> (i32, i32) {
    %c0_i32 = arith.constant 0 : i32
    %c0_i32_0 = arith.constant 0 : i32
    %c0_i32_1 = arith.constant 0 : i32
    return %c0_i32, %c0_i32_0 : i32, i32
  }
  func.func @transform_9(%arg0: i32) -> (i32, i32) {
    %c0_i32 = arith.constant 0 : i32
    %c0_i32_0 = arith.constant 0 : i32
    %c0_i32_1 = arith.constant 0 : i32
    return %c0_i32, %c0_i32_0 : i32, i32
  }
  func.func @transform_10(%arg0: i32) -> (i32, i32) {
    %c0_i32 = arith.constant 0 : i32
    %c0_i32_0 = arith.constant 0 : i32
    return %arg0, %c0_i32 : i32, i32
  }
  func.func @transform_11(%arg0: i32) -> (i32, i32) {
    %c0_i32 = arith.constant 0 : i32
    %c0_i32_0 = arith.constant 0 : i32
    return %arg0, %c0_i32 : i32, i32
  }
}

</mosaic_0001>

<bundles_post_ra>
// kernel: tpu_custom_call.1
= control target key start
LH: loop header
LB: loop body
LE: loop exit
PB: predicated region body
PF: predicated region fallthrough
CT: control target
= control target key end

     0   :  { %17 = vsyncpa [#allocation3], 0  ;;  %vm1254_vm0 = vcmask 130048   ;;  %s10368_s0 = inlined_call_operand.vmem [shape: bf16[8,784], index: 0, kind: input, shape index: {}]   ;;  %s10369_s1 = inlined_call_operand.vmem [shape: bf16[8,128], index: 1, kind: input, shape index: {}]   ;;  %s10370_s2 = inlined_call_operand.vmem [shape: bf16[784,512], index: 2, kind: input, shape index: {}]   ;;  %s10371_s3 = inlined_call_operand.vmem [shape: f32[1,512], index: 3, kind: input, shape index: {}]   ;;  %s10372_s4 = inlined_call_operand.vmem [shape: bf16[512,256], index: 4, kind: input, shape index: {}]   ;;  %s10373_s5 = inlined_call_operand.vmem [shape: f32[1,256], index: 5, kind: input, shape index: {}]   ;;  %s10374_s6 = inlined_call_operand.vmem [shape: bf16[128,512], index: 6, kind: input, shape index: {}]   ;;  %s10375_s7 = inlined_call_operand.vmem [shape: f32[1,512], index: 7, kind: input, shape index: {}]   ;;  %s10376_s8 = inlined_call_operand.vmem [shape: bf16[512,784], index: 8, kind: input, shape index: {}]   ;;  %s10377_s9 = inlined_call_operand.vmem [shape: f32[1,784], index: 9, kind: input, shape index: {}]   ;;  %s10378_s10 = inlined_call_operand.hbm [shape: bf16[8,784], index: 10, kind: output, shape index: {0}]   ;;  %s10379_s11 = inlined_call_operand.hbm [shape: f32[8,256], index: 11, kind: output, shape index: {1}]  }
   0x1   :  { %v4472_v0 = vld [vmem:[%s10370_s2 + $0xe0] sm:$0xf]  ;;  %v6463_v1 = vld [vmem:[%s10370_s2 + $0xec] sm:$0xf0] }
   0x2   :  { %v4600_v2 = vld [vmem:[%s10370_s2 + $0x1e0] sm:$0xf]  ;;  %v4473_v3 = vor.u32 %v6463_v1, %v4472_v0  ;;  %v6495_v4 = vld [vmem:[%s10370_s2 + $0x1ec] sm:$0xf0] }
   0x3   :  { %v4728_v5 = vld [vmem:[%s10370_s2 + $0x2e0] sm:$0xf]  ;;  %v6527_v6 = vld [vmem:[%s10370_s2 + $0x2ec] sm:$0xf0]  ;;  %v4601_v7 = vor.u32 %v6495_v4, %v4600_v2 }
   0x4   :  { %v4729_v8 = vor.u32 %v6527_v6, %v4728_v5  ;;  %v4856_v9 = vld [vmem:[%s10370_s2 + $0x3e0] sm:$0xf]  ;;  %v6559_v10 = vld [vmem:[%s10370_s2 + $0x3ec] sm:$0xf0]  ;;  %1258 = vmatpush.bf16.msra.mxu0 %v4473_v3 }
   0x5   :  { %v4456_v11 = vld [vmem:[%s10370_s2 + $0xc0] sm:$0xf]  ;;  %v4857_v12 = vor.u32 %v6559_v10, %v4856_v9  ;;  %v6459_v13 = vld [vmem:[%s10370_s2 + $0xcc] sm:$0xf0]  ;;  %1271 = vmatpush.bf16.msra.mxu1 %v4601_v7 }
   0x6   :  { %v4584_v14 = vld [vmem:[%s10370_s2 + $0x1c0] sm:$0xf]  ;;  %v6491_v15 = vld [vmem:[%s10370_s2 + $0x1cc] sm:$0xf0]  ;;  %1284 = vmatpush.bf16.msra.mxu2 %v4729_v8  ;;  %v4457_v16 = vor.u32 %v6459_v13, %v4456_v11 }
   0x7   :  { %v4585_v17 = vor.u32 %v6491_v15, %v4584_v14  ;;  %v4712_v18 = vld [vmem:[%s10370_s2 + $0x2c0] sm:$0xf]  ;;  %v6523_v19 = vld [vmem:[%s10370_s2 + $0x2cc] sm:$0xf0]  ;;  %1297 = vmatpush.bf16.msra.mxu3 %v4857_v12 }
   0x8   :  { %v4840_v20 = vld [vmem:[%s10370_s2 + $0x3c0] sm:$0xf]  ;;  %v4713_v21 = vor.u32 %v6523_v19, %v4712_v18  ;;  %v6555_v22 = vld [vmem:[%s10370_s2 + $0x3cc] sm:$0xf0]  ;;  %1259 = vmatpush.bf16.msra.mxu0 %v4457_v16 }
   0x9   :  { %v4440_v23 = vld [vmem:[%s10370_s2 + $0xa0] sm:$0xf]  ;;  %v6455_v24 = vld [vmem:[%s10370_s2 + $0xac] sm:$0xf0]  ;;  %v4841_v25 = vor.u32 %v6555_v22, %v4840_v20  ;;  %1272 = vmatpush.bf16.msra.mxu1 %v4585_v17 }
   0xa   :  { %v4568_v26 = vld [vmem:[%s10370_s2 + $0x1a0] sm:$0xf]  ;;  %v6487_v27 = vld [vmem:[%s10370_s2 + $0x1ac] sm:$0xf0]  ;;  %v4441_v29 = vor.u32 %v6455_v24, %v4440_v23  ;;  %1285 = vmatpush.bf16.msra.mxu2 %v4713_v21 }
   0xb   :  { %v4696_v28 = vld [vmem:[%s10370_s2 + $0x2a0] sm:$0xf]  ;;  %v6519_v30 = vld [vmem:[%s10370_s2 + $0x2ac] sm:$0xf0]  ;;  %v4569_v33 = vor.u32 %v6487_v27, %v4568_v26  ;;  %1298 = vmatpush.bf16.msra.mxu3 %v4841_v25  ;;  %v41_v25 = vld [vmem:[%s10368_s0 + $0x8] sm:$0xff] }
   0xc   :  { %v4824_v31 = vld [vmem:[%s10370_s2 + $0x3a0] sm:$0xf]  ;;  %v6551_v32 = vld [vmem:[%s10370_s2 + $0x3ac] sm:$0xf0]  ;;  %v4697_v34 = vor.u32 %v6519_v30, %v4696_v28  ;;  %1260 = vmatpush.bf16.msra.mxu0 %v4441_v29 }
   0xd   :  { %v4424_v35 = vld [vmem:[%s10370_s2 + $0x80] sm:$0xf]  ;;  %v6451_v36 = vld [vmem:[%s10370_s2 + $0x8c] sm:$0xf0]  ;;  %v4825_v38 = vor.u32 %v6551_v32, %v4824_v31  ;;  %1273 = vmatpush.bf16.msra.mxu1 %v4569_v33 }
   0xe   :  { %v4552_v37 = vld [vmem:[%s10370_s2 + $0x180] sm:$0xf]  ;;  %v6483_v39 = vld [vmem:[%s10370_s2 + $0x18c] sm:$0xf0]  ;;  %v4425_v44 = vor.u32 %v6451_v36, %v4424_v35  ;;  %1286 = vmatpush.bf16.msra.mxu2 %v4697_v34  ;;  %v6461_v34 = vld [vmem:[%s10370_s2 + $0xe4] sm:$0xf]  ;;  %v256_v36 = vunpack.c.l.b16 %v41_v25 }
   0xf   :  { %v4680_v40 = vld [vmem:[%s10370_s2 + $0x280] sm:$0xf]  ;;  %v6515_v41 = vld [vmem:[%s10370_s2 + $0x28c] sm:$0xf0]  ;;  %v4553_v45 = vor.u32 %v6483_v39, %v4552_v37  ;;  %1299 = vmatpush.bf16.msra.mxu3 %v4825_v38  ;;  %v4474_v35 = vld [vmem:[%s10370_s2 + $0xf0] sm:$0xf0] }
  0x10   :  { %v4808_v42 = vld [vmem:[%s10370_s2 + $0x380] sm:$0xf]  ;;  %v6547_v43 = vld [vmem:[%s10370_s2 + $0x38c] sm:$0xf0]  ;;  %v4681_v46 = vor.u32 %v6515_v41, %v4680_v40  ;;  %1261 = vmatpush.bf16.msra.mxu0 %v4425_v44 }
  0x11   :  { %v4408_v47 = vld [vmem:[%s10370_s2 + $0x60] sm:$0xf]  ;;  %v6447_v48 = vld [vmem:[%s10370_s2 + $0x6c] sm:$0xf0]  ;;  %v4809_v50 = vor.u32 %v6547_v43, %v4808_v42  ;;  %1274 = vmatpush.bf16.msra.mxu1 %v4553_v45  ;;  %v257_v42 = vunpack.c.h.b16 %v41_v25  ;;  %v6481_v25 = vld [vmem:[%s10370_s2 + $0x184] sm:$0xf] }
  0x12   :  { %v4536_v49 = vld [vmem:[%s10370_s2 + $0x160] sm:$0xf]  ;;  %v6479_v51 = vld [vmem:[%s10370_s2 + $0x16c] sm:$0xf0]  ;;  %v4409_v56 = vor.u32 %v6447_v48, %v4408_v47  ;;  %1287 = vmatpush.bf16.msra.mxu2 %v4681_v46  ;;  %v6493_v46 = vld [vmem:[%s10370_s2 + $0x1e4] sm:$0xf] }
  0x13   :  { %v4664_v52 = vld [vmem:[%s10370_s2 + $0x260] sm:$0xf]  ;;  %v6511_v53 = vld [vmem:[%s10370_s2 + $0x26c] sm:$0xf0]  ;;  %v4537_v57 = vor.u32 %v6479_v51, %v4536_v49  ;;  %1300 = vmatpush.bf16.msra.mxu3 %v4809_v50  ;;  %v4602_v47 = vld [vmem:[%s10370_s2 + $0x1f0] sm:$0xf0]  ;;  %v4477_v49 = vor.u32 %v6461_v34, %v4474_v35 }
  0x14   :  { %v4792_v54 = vld [vmem:[%s10370_s2 + $0x360] sm:$0xf]  ;;  %v6543_v55 = vld [vmem:[%s10370_s2 + $0x36c] sm:$0xf0]  ;;  %v4665_v58 = vor.u32 %v6511_v53, %v4664_v52  ;;  %1262 = vmatpush.bf16.msra.mxu0 %v4409_v56  ;;  %v7332_v53 = vpack.c.b16 %v256_v36, %v256_v36  ;;  %v4458_v56 = vld [vmem:[%s10370_s2 + $0xd0] sm:$0xf0] }
  0x15   :  { %v4392_v59 = vld [vmem:[%s10370_s2 + $0x40] sm:$0xf]  ;;  %v6443_v60 = vld [vmem:[%s10370_s2 + $0x4c] sm:$0xf0]  ;;  %v4793_v62 = vor.u32 %v6543_v55, %v4792_v54  ;;  %1275 = vmatpush.bf16.msra.mxu1 %v4537_v57  ;;  %v6457_v55 = vld [vmem:[%s10370_s2 + $0xc4] sm:$0xf] }
  0x16   :  { %v4520_v61 = vld [vmem:[%s10370_s2 + $0x140] sm:$0xf]  ;;  %v6475_v63 = vld [vmem:[%s10370_s2 + $0x14c] sm:$0xf0]  ;;  %v4393_v4 = vor.u32 %v6443_v60, %v4392_v59  ;;  %1288 = vmatpush.bf16.msra.mxu2 %v4665_v58  ;;  %v7345_v60 = vpack.c.b16 %v257_v42, %v257_v42  ;;  %v4410_v34 = vld [vmem:[%s10370_s2 + $0x70] sm:$0xf0] }
  0x17   :  { %v4648_v0 = vld [vmem:[%s10370_s2 + $0x240] sm:$0xf]  ;;  %v6507_v1 = vld [vmem:[%s10370_s2 + $0x24c] sm:$0xf0]  ;;  %v4521_v5 = vor.u32 %v6475_v63, %v4520_v61  ;;  %1301 = vmatpush.bf16.msra.mxu3 %v4793_v62  ;;  %v4605_v61 = vor.u32 %v6493_v46, %v4602_v47  ;;  %v6489_v63 = vld [vmem:[%s10370_s2 + $0x1c4] sm:$0xf] }
  0x18   :  { %v4776_v2 = vld [vmem:[%s10370_s2 + $0x340] sm:$0xf]  ;;  %v6539_v3 = vld [vmem:[%s10370_s2 + $0x34c] sm:$0xf0]  ;;  %v4649_v6 = vor.u32 %v6507_v1, %v4648_v0  ;;  %1263 = vmatpush.bf16.msra.mxu0 %v4393_v4  ;;  %v4586_v0 = vld [vmem:[%s10370_s2 + $0x1d0] sm:$0xf0] }
  0x19   :  { %v4376_v7 = vld [vmem:[%s10370_s2 + $0x20] sm:$0xf]  ;;  %v6439_v8 = vld [vmem:[%s10370_s2 + $0x2c] sm:$0xf0]  ;;  %v4777_v10 = vor.u32 %v6539_v3, %v4776_v2  ;;  %1276 = vmatpush.bf16.msra.mxu1 %v4521_v5  ;;  %v4461_v2 = vor.u32 %v6457_v55, %v4458_v56  ;;  %v6441_v46 = vld [vmem:[%s10370_s2 + $0x44] sm:$0xf] }
  0x1a   :  { %v4504_v9 = vld [vmem:[%s10370_s2 + $0x120] sm:$0xf]  ;;  %v6471_v11 = vld [vmem:[%s10370_s2 + $0x12c] sm:$0xf0]  ;;  %v4377_v17 = vor.u32 %v6439_v8, %v4376_v7  ;;  %1289 = vmatpush.bf16.msra.mxu2 %v4649_v6  ;;  %v6453_v7 = vld [vmem:[%s10370_s2 + $0xa4] sm:$0xf] }
  0x1b   :  { %v4632_v12 = vld [vmem:[%s10370_s2 + $0x220] sm:$0xf]  ;;  %v6503_v13 = vld [vmem:[%s10370_s2 + $0x22c] sm:$0xf0]  ;;  %v4505_v21 = vor.u32 %v6471_v11, %v4504_v9  ;;  %1302 = vmatpush.bf16.msra.mxu3 %v4777_v10  ;;  %v4442_v8 = vld [vmem:[%s10370_s2 + $0xb0] sm:$0xf0]  ;;  %v4589_v10 = vor.u32 %v6489_v63, %v4586_v0 }
  0x1c   :  { %v4760_v14 = vld [vmem:[%s10370_s2 + $0x320] sm:$0xf]  ;;  %v6535_v15 = vld [vmem:[%s10370_s2 + $0x32c] sm:$0xf0]  ;;  %v4633_v22 = vor.u32 %v6503_v13, %v4632_v12  ;;  %1264 = vmatpush.bf16.msra.mxu0 %v4377_v17  ;;  %v6485_v12 = vld [vmem:[%s10370_s2 + $0x1a4] sm:$0xf] }
  0x1d   :  { %v4360_v16 = vld [vmem:[%s10370_s2] sm:$0xf]  ;;  %v6435_v18 = vld [vmem:[%s10370_s2 + $0xc] sm:$0xf0]  ;;  %v4761_v26 = vor.u32 %v6535_v15, %v4760_v14  ;;  %1277 = vmatpush.bf16.msra.mxu1 %v4505_v21  ;;  %v4570_v13 = vld [vmem:[%s10370_s2 + $0x1b0] sm:$0xf0]  ;;  %v4445_v15 = vor.u32 %v6453_v7, %v4442_v8 }
  0x1e   :  { %v4488_v19 = vld [vmem:[%s10370_s2 + $0x100] sm:$0xf]  ;;  %v6467_v20 = vld [vmem:[%s10370_s2 + $0x10c] sm:$0xf0]  ;;  %v4361_v33 = vor.u32 %v6435_v18, %v4360_v16  ;;  %1290 = vmatpush.bf16.msra.mxu2 %v4633_v22  ;;  %v4426_v21 = vld [vmem:[%s10370_s2 + $0x90] sm:$0xf0] }
  0x1f   :  { %v4616_v23 = vld [vmem:[%s10370_s2 + $0x200] sm:$0xf]  ;;  %v6499_v24 = vld [vmem:[%s10370_s2 + $0x20c] sm:$0xf0]  ;;  %v4489_v38 = vor.u32 %v6467_v20, %v4488_v19  ;;  %1303 = vmatpush.bf16.msra.mxu3 %v4761_v26  ;;  %v6449_v20 = vld [vmem:[%s10370_s2 + $0x84] sm:$0xf] }
  0x20   :  { %v4744_v27 = vld [vmem:[%s10370_s2 + $0x300] sm:$0xf]  ;;  %v6531_v28 = vld [vmem:[%s10370_s2 + $0x30c] sm:$0xf0]  ;;  %v4617_v39 = vor.u32 %v6499_v24, %v4616_v23  ;;  %1265 = vmatpush.bf16.msra.mxu0 %v4361_v33  ;;  %v43_v22 = vld [vmem:[%s10368_s0 + $0x18] sm:$0xf]  ;;  %v4573_v23 = vor.u32 %v6485_v12, %v4570_v13 }
  0x21   :  { %v4984_v29 = vld [vmem:[%s10370_s2 + $0x4e0] sm:$0xf]  ;;  %v6591_v30 = vld [vmem:[%s10370_s2 + $0x4ec] sm:$0xf0]  ;;  %v4745_v43 = vor.u32 %v6531_v28, %v4744_v27  ;;  %1278 = vmatpush.bf16.msra.mxu1 %v4489_v38  ;;  %v4554_v26 = vld [vmem:[%s10370_s2 + $0x190] sm:$0xf0]  ;;  %v4429_v28 = vor.u32 %v6449_v20, %v4426_v21  ;;  %v260_v35 = vunpack.c.l.b16 %v43_v22 }
  0x22   :  { %v5112_v31 = vld [vmem:[%s10370_s2 + $0x5e0] sm:$0xf]  ;;  %v6623_v32 = vld [vmem:[%s10370_s2 + $0x5ec] sm:$0xf0]  ;;  %v4985_v44 = vor.u32 %v6591_v30, %v4984_v29  ;;  %1291 = vmatpush.bf16.msra.mxu2 %v4617_v39  ;;  %v6445_v33 = vld [vmem:[%s10370_s2 + $0x64] sm:$0xf]  ;;  %v4557_v36 = vor.u32 %v6481_v25, %v4554_v26 }
  0x23   :  { %v40_v37 = vld [vmem:[%s10368_s0] sm:$0xff]  ;;  %v6627_v45 = vld [vmem:[%s10370_s2 + $0x60c] sm:$0xf0]  ;;  %v5113_v48 = vor.u32 %v6623_v32, %v5112_v31  ;;  %1304 = vmatpush.bf16.msra.mxu3 %v4745_v43  ;;  %v4538_v39 = vld [vmem:[%s10370_s2 + $0x170] sm:$0xf0] }
  0x24   :  { %v5128_v40 = vld [vmem:[%s10370_s2 + $0x600] sm:$0xf]  ;;  %v254_v41 = vunpack.c.l.b16 %v40_v37  ;;  %v6587_v51 = vld [vmem:[%s10370_s2 + $0x4cc] sm:$0xf0]  ;;  %v255_v58 = vunpack.c.h.b16 %v40_v37  ;;  %1310 = vmatpush.bf16.msrb.mxu0 %v4985_v44  ;;  %v6477_v38 = vld [vmem:[%s10370_s2 + $0x164] sm:$0xf] }
  0x25   :  { %v4968_v50 = vld [vmem:[%s10370_s2 + $0x4c0] sm:$0xf]  ;;  %v6619_v54 = vld [vmem:[%s10370_s2 + $0x5cc] sm:$0xf0]  ;;  %v5129_v59 = vor.u32 %v6627_v45, %v5128_v40  ;;  %1323 = vmatpush.bf16.msrb.mxu1 %v5113_v48  ;;  %1292 = vmatmul.bf16.vlgmr.msra.gmra.mxu2 %v7332_v53  ;;  %v4394_v47 = vld [vmem:[%s10370_s2 + $0x50] sm:$0xf0]  ;;  %v7452_v48 = vpack.c.b16 %v260_v35, %v260_v35 }
  0x26   :  { %v5096_v52 = vld [vmem:[%s10370_s2 + $0x5c0] sm:$0xf]  ;;  %v7343_v57 = vpack.c.b16 %v254_v41, %v254_v41  ;;  %v4969_v62 = vor.u32 %v6587_v51, %v4968_v50  ;;  %v6583_v4 = vld [vmem:[%s10370_s2 + $0x4ac] sm:$0xf0]  ;;  %v7373_v9 = vpack.c.b16 %v255_v58, %v255_v58  ;;  %1305 = vmatmul.bf16.vlgmr.msra.gmra.mxu3 %v7345_v60  ;;  %v4413_v41 = vor.u32 %v6445_v33, %v4410_v34  ;;  %v6473_v51 = vld [vmem:[%s10370_s2 + $0x144] sm:$0xf] }
  0x27   :  { %1349 = vmatpush.bf16.msrb.mxu3 %v4477_v49  ;;  %v5097_v1 = vor.u32 %v6619_v54, %v5096_v52  ;;  %v4952_v3 = vld [vmem:[%s10370_s2 + $0x4a0] sm:$0xf]  ;;  %v6615_v6 = vld [vmem:[%s10370_s2 + $0x5ac] sm:$0xf0]  ;;  %1343 = vmatpush.bf16.msrb.mxu2 %v5129_v59  ;;  %v4541_v49 = vor.u32 %v6477_v38, %v4538_v39  ;;  %v4522_v52 = vld [vmem:[%s10370_s2 + $0x150] sm:$0xf0]  ;;  %v4397_v55 = vor.u32 %v6441_v46, %v4394_v47 }
  0x28   :  { %v5080_v5 = vld [vmem:[%s10370_s2 + $0x5a0] sm:$0xf]  ;;  %1266 = vmatmul.bf16.vlgmr.msra.gmra.mxu0 %v7343_v57  ;;  %v4953_v11 = vor.u32 %v6583_v4, %v4952_v3  ;;  %v6579_v17 = vld [vmem:[%s10370_s2 + $0x48c] sm:$0xf0]  ;;  %1279 = vmatmul.bf16.vlgmr.msra.gmra.mxu1 %v7373_v9  ;;  %v4378_v63 = vld [vmem:[%s10370_s2 + $0x30] sm:$0xf0] }
  0x29   :  { %1311 = vmatpush.bf16.msrb.mxu0 %v4969_v62  ;;  %1324 = vmatpush.bf16.msrb.mxu1 %v5097_v1  ;;  %v5081_v14 = vor.u32 %v6615_v6, %v5080_v5  ;;  %v4936_v16 = vld [vmem:[%s10370_s2 + $0x480] sm:$0xf]  ;;  %v6611_v19 = vld [vmem:[%s10370_s2 + $0x58c] sm:$0xf0]  ;;  %v6437_v62 = vld [vmem:[%s10370_s2 + $0x24] sm:$0xf]  ;;  %v4525_v1 = vor.u32 %v6473_v51, %v4522_v52 }
  0x2a   :  { %v5064_v18 = vld [vmem:[%s10370_s2 + $0x580] sm:$0xf]  ;;  %v4937_v24 = vor.u32 %v6579_v17, %v4936_v16  ;;  %v6575_v30 = vld [vmem:[%s10370_s2 + $0x46c] sm:$0xf0]  ;;  %v6469_v0 = vld [vmem:[%s10370_s2 + $0x124] sm:$0xf]  ;;  %v4381_v7 = vor.u32 %v6437_v62, %v4378_v63 }
  0x2b   :  { %1362 = vmatpush.bf16.msra.mxu2 %v4605_v61  ;;  %1350 = vmatpush.bf16.msrb.mxu3 %v4461_v2  ;;  %v5065_v27 = vor.u32 %v6611_v19, %v5064_v18  ;;  %v4920_v29 = vld [vmem:[%s10370_s2 + $0x460] sm:$0xf]  ;;  %v6607_v32 = vld [vmem:[%s10370_s2 + $0x56c] sm:$0xf0]  ;;  %v4506_v3 = vld [vmem:[%s10370_s2 + $0x130] sm:$0xf0] }
  0x2c   :  { %v5048_v31 = vld [vmem:[%s10370_s2 + $0x560] sm:$0xf]  ;;  %v4921_v37 = vor.u32 %v6575_v30, %v4920_v29  ;;  %v6571_v43 = vld [vmem:[%s10370_s2 + $0x44c] sm:$0xf0]  ;;  %v6433_v12 = vld [vmem:[%s10370_s2 + $0x4] sm:$0xf]  ;;  %v4509_v19 = vor.u32 %v6469_v0, %v4506_v3 }
  0x2d   :  { %1312 = vmatpush.bf16.msrb.mxu0 %v4953_v11  ;;  %1325 = vmatpush.bf16.msrb.mxu1 %v5081_v14  ;;  %v5049_v40 = vor.u32 %v6607_v32, %v5048_v31  ;;  %v4904_v42 = vld [vmem:[%s10370_s2 + $0x440] sm:$0xf]  ;;  %v6603_v45 = vld [vmem:[%s10370_s2 + $0x54c] sm:$0xf0]  ;;  %v4362_v13 = vld [vmem:[%s10370_s2 + $0x10] sm:$0xf0] }
  0x2e   :  { %v5032_v44 = vld [vmem:[%s10370_s2 + $0x540] sm:$0xf]  ;;  %v4905_v50 = vor.u32 %v6571_v43, %v4904_v42  ;;  %v6567_v58 = vld [vmem:[%s10370_s2 + $0x42c] sm:$0xf0]  ;;  %v6525_v14 = vld [vmem:[%s10370_s2 + $0x2e4] sm:$0xf]  ;;  %v4365_v25 = vor.u32 %v6433_v12, %v4362_v13 }
  0x2f   :  { %1363 = vmatpush.bf16.msra.mxu2 %v4589_v10  ;;  %1351 = vmatpush.bf16.msrb.mxu3 %v4445_v15  ;;  %v5033_v54 = vor.u32 %v6603_v45, %v5032_v44  ;;  %v4888_v56 = vld [vmem:[%s10370_s2 + $0x420] sm:$0xf]  ;;  %v6599_v61 = vld [vmem:[%s10370_s2 + $0x52c] sm:$0xf0]  ;;  %v4730_v15 = vld [vmem:[%s10370_s2 + $0x2f0] sm:$0xf0] }
  0x30   :  { %v5016_v59 = vld [vmem:[%s10370_s2 + $0x520] sm:$0xf]  ;;  %v4889_v2 = vor.u32 %v6567_v58, %v4888_v56  ;;  %v42_v5 = vld [vmem:[%s10368_s0 + $0x10] sm:$0xff]  ;;  %v6557_v16 = vld [vmem:[%s10370_s2 + $0x3e4] sm:$0xf] }
  0x31   :  { %1313 = vmatpush.bf16.msrb.mxu0 %v4937_v24  ;;  %1326 = vmatpush.bf16.msrb.mxu1 %v5065_v27  ;;  %v4872_v4 = vld [vmem:[%s10370_s2 + $0x400] sm:$0xf]  ;;  %v5017_v6 = vor.u32 %v6599_v61, %v5016_v59  ;;  %v6563_v8 = vld [vmem:[%s10370_s2 + $0x40c] sm:$0xf0]  ;;  %v4858_v17 = vld [vmem:[%s10370_s2 + $0x3f0] sm:$0xf0]  ;;  %v258_v18 = vunpack.c.l.b16 %v42_v5 }
  0x32   :  { %v5000_v10 = vld [vmem:[%s10370_s2 + $0x500] sm:$0xf]  ;;  %v6595_v11 = vld [vmem:[%s10370_s2 + $0x50c] sm:$0xf0]  ;;  %v4873_v20 = vor.u32 %v6563_v8, %v4872_v4  ;;  %v6589_v21 = vld [vmem:[%s10370_s2 + $0x4e4] sm:$0xf]  ;;  %v4861_v29 = vor.u32 %v6557_v16, %v4858_v17 }
  0x33   :  { %1364 = vmatpush.bf16.msra.mxu2 %v4573_v23  ;;  %1352 = vmatpush.bf16.msrb.mxu3 %v4429_v28  ;;  %v4986_v22 = vld [vmem:[%s10370_s2 + $0x4f0] sm:$0xf0]  ;;  %v259_v23 = vunpack.c.h.b16 %v42_v5  ;;  %v5001_v24 = vor.u32 %v6595_v11, %v5000_v10  ;;  %v6465_v26 = vld [vmem:[%s10370_s2 + $0x104] sm:$0xf]  ;;  %v4733_v28 = vor.u32 %v6525_v14, %v4730_v15  ;;  %v7540_v34 = vpack.c.b16 %v258_v18, %v258_v18 }
  0x34   :  { %v4490_v27 = vld [vmem:[%s10370_s2 + $0x110] sm:$0xf0]  ;;  %v6621_v30 = vld [vmem:[%s10370_s2 + $0x5e4] sm:$0xf]  ;;  %v4989_v33 = vor.u32 %v6589_v21, %v4986_v22 }
  0x35   :  { %1314 = vmatpush.bf16.msrb.mxu0 %v4921_v37  ;;  %1327 = vmatpush.bf16.msrb.mxu1 %v5049_v40  ;;  %v5114_v31 = vld [vmem:[%s10370_s2 + $0x5f0] sm:$0xf0]  ;;  %v6521_v32 = vld [vmem:[%s10370_s2 + $0x2c4] sm:$0xf]  ;;  %v4493_v38 = vor.u32 %v6465_v26, %v4490_v27  ;;  %v7551_v39 = vpack.c.b16 %v259_v23, %v259_v23 }
  0x36   :  { %5142 = vmatmul.msk.bf16.vlgmr.msrb.gmra.mxu2 %vm1254_vm0, %v7452_v48  ;;  %v4714_v35 = vld [vmem:[%s10370_s2 + $0x2d0] sm:$0xf0]  ;;  %v6585_v40 = vld [vmem:[%s10370_s2 + $0x4c4] sm:$0xf]  ;;  %v5117_v42 = vor.u32 %v6621_v30, %v5114_v31 }
  0x37   :  { %1365 = vmatpush.bf16.msra.mxu2 %v4557_v36  ;;  %1353 = vmatpush.bf16.msrb.mxu3 %v4413_v41  ;;  %v6553_v36 = vld [vmem:[%s10370_s2 + $0x3c4] sm:$0xf]  ;;  %v4842_v37 = vld [vmem:[%s10370_s2 + $0x3d0] sm:$0xf0]  ;;  %v4717_v43 = vor.u32 %v6521_v32, %v4714_v35 }
  0x38   :  { %v4970_v41 = vld [vmem:[%s10370_s2 + $0x4d0] sm:$0xf0]  ;;  %v4845_v44 = vor.u32 %v6553_v36, %v4842_v37  ;;  %v6617_v45 = vld [vmem:[%s10370_s2 + $0x5c4] sm:$0xf] }
  0x39   :  { %1315 = vmatpush.bf16.msrb.mxu0 %v4905_v50  ;;  %1328 = vmatpush.bf16.msrb.mxu1 %v5033_v54  ;;  %v5098_v46 = vld [vmem:[%s10370_s2 + $0x5d0] sm:$0xf0]  ;;  %v6517_v47 = vld [vmem:[%s10370_s2 + $0x2a4] sm:$0xf] }
  0x3a   :  { %v4698_v50 = vld [vmem:[%s10370_s2 + $0x2b0] sm:$0xf0]  ;;  %v6549_v51 = vld [vmem:[%s10370_s2 + $0x3a4] sm:$0xf]  ;;  %v5101_v56 = vor.u32 %v6617_v45, %v5098_v46 }
  0x3b   :  { %1366 = vmatpush.bf16.msra.mxu2 %v4541_v49  ;;  %1354 = vmatpush.bf16.msrb.mxu3 %v4397_v55  ;;  %v4973_v49 = vor.u32 %v6585_v40, %v4970_v41  ;;  %v4826_v52 = vld [vmem:[%s10370_s2 + $0x3b0] sm:$0xf0]  ;;  %v6581_v54 = vld [vmem:[%s10370_s2 + $0x4a4] sm:$0xf]  ;;  %v4701_v58 = vor.u32 %v6517_v47, %v4698_v50 }
  0x3c   :  { %v4954_v55 = vld [vmem:[%s10370_s2 + $0x4b0] sm:$0xf0]  ;;  %v4829_v59 = vor.u32 %v6549_v51, %v4826_v52  ;;  %v6613_v61 = vld [vmem:[%s10370_s2 + $0x5a4] sm:$0xf] }
  0x3d   :  { %1316 = vmatpush.bf16.msrb.mxu0 %v4889_v2  ;;  %1329 = vmatpush.bf16.msrb.mxu1 %v5017_v6  ;;  %v5082_v62 = vld [vmem:[%s10370_s2 + $0x5b0] sm:$0xf0]  ;;  %v6513_v63 = vld [vmem:[%s10370_s2 + $0x284] sm:$0xf]  ;;  %v4957_v0 = vor.u32 %v6581_v54, %v4954_v55 }
  0x3e   :  { %v6545_v2 = vld [vmem:[%s10370_s2 + $0x384] sm:$0xf]  ;;  %v4810_v3 = vld [vmem:[%s10370_s2 + $0x390] sm:$0xf0]  ;;  %v5085_v6 = vor.u32 %v6613_v61, %v5082_v62 }
  0x3f   :  { %1367 = vmatpush.bf16.msra.mxu2 %v4525_v1  ;;  %1355 = vmatpush.bf16.msrb.mxu3 %v4381_v7  ;;  %v4682_v1 = vld [vmem:[%s10370_s2 + $0x290] sm:$0xf0]  ;;  %v6577_v4 = vld [vmem:[%s10370_s2 + $0x484] sm:$0xf]  ;;  %v4813_v8 = vor.u32 %v6545_v2, %v4810_v3 }
  0x40   :  { %v4938_v5 = vld [vmem:[%s10370_s2 + $0x490] sm:$0xf0]  ;;  %v4685_v7 = vor.u32 %v6513_v63, %v4682_v1  ;;  %v6609_v10 = vld [vmem:[%s10370_s2 + $0x584] sm:$0xf] }
  0x41   :  { %1317 = vmatpush.bf16.msrb.mxu0 %v4873_v20  ;;  %1330 = vmatpush.bf16.msrb.mxu1 %v5001_v24  ;;  %v5066_v11 = vld [vmem:[%s10370_s2 + $0x590] sm:$0xf0]  ;;  %v6509_v12 = vld [vmem:[%s10370_s2 + $0x264] sm:$0xf]  ;;  %v4941_v13 = vor.u32 %v6577_v4, %v4938_v5 }
  0x42   :  { %v4666_v14 = vld [vmem:[%s10370_s2 + $0x270] sm:$0xf0]  ;;  %v6541_v15 = vld [vmem:[%s10370_s2 + $0x364] sm:$0xf] }
  0x43   :  { %1368 = vmatpush.bf16.msra.mxu2 %v4509_v19  ;;  %1356 = vmatpush.bf16.msrb.mxu3 %v4365_v25  ;;  %v4794_v16 = vld [vmem:[%s10370_s2 + $0x370] sm:$0xf0]  ;;  %v6573_v17 = vld [vmem:[%s10370_s2 + $0x464] sm:$0xf]  ;;  %v5069_v19 = vor.u32 %v6609_v10, %v5066_v11  ;;  %v4669_v20 = vor.u32 %v6509_v12, %v4666_v14 }
  0x44   :  { %1318 = vmatmul.bf16.vlgmr.msrb.gmra.mxu0 %v7540_v34  ;;  %1331 = vmatmul.bf16.vlgmr.msrb.gmra.mxu1 %v7551_v39  ;;  %v4922_v18 = vld [vmem:[%s10370_s2 + $0x470] sm:$0xf0]  ;;  %v4797_v21 = vor.u32 %v6541_v15, %v4794_v16  ;;  %v6605_v22 = vld [vmem:[%s10370_s2 + $0x564] sm:$0xf] }
  0x45   :  { %1375 = vmatpush.bf16.msra.mxu0 %v4733_v28  ;;  %1388 = vmatpush.bf16.msra.mxu1 %v4861_v29  ;;  %v5050_v23 = vld [vmem:[%s10370_s2 + $0x570] sm:$0xf0]  ;;  %v6505_v24 = vld [vmem:[%s10370_s2 + $0x244] sm:$0xf]  ;;  %v4925_v25 = vor.u32 %v6573_v17, %v4922_v18 }
  0x46   :  { %1357 = vmatmul.bf16.vlgmr.msrb.gmra.mxu3 %v7343_v57  ;;  %v4650_v26 = vld [vmem:[%s10370_s2 + $0x250] sm:$0xf0]  ;;  %v6537_v27 = vld [vmem:[%s10370_s2 + $0x344] sm:$0xf]  ;;  %v5053_v31 = vor.u32 %v6605_v22, %v5050_v23 }
  0x47   :  { %1401 = vmatpush.bf16.msra.mxu3 %v4989_v33  ;;  %1369 = vmatpush.bf16.msra.mxu2 %v4493_v38  ;;  %v4778_v28 = vld [vmem:[%s10370_s2 + $0x350] sm:$0xf0]  ;;  %v6569_v29 = vld [vmem:[%s10370_s2 + $0x444] sm:$0xf]  ;;  %v4653_v33 = vor.u32 %v6505_v24, %v4650_v26 }
  0x48   :  { %v4906_v30 = vld [vmem:[%s10370_s2 + $0x450] sm:$0xf0]  ;;  %v6601_v32 = vld [vmem:[%s10370_s2 + $0x544] sm:$0xf]  ;;  %v4781_v35 = vor.u32 %v6537_v27, %v4778_v28 }
  0x49   :  { %1376 = vmatpush.bf16.msra.mxu0 %v4717_v43  ;;  %1389 = vmatpush.bf16.msra.mxu1 %v4845_v44  ;;  %v5034_v36 = vld [vmem:[%s10370_s2 + $0x550] sm:$0xf0]  ;;  %v6501_v37 = vld [vmem:[%s10370_s2 + $0x224] sm:$0xf]  ;;  %v4909_v40 = vor.u32 %v6569_v29, %v4906_v30 }
  0x4a   :  { %1370 = vmatmul.bf16.vlgmr.msra.gmra.mxu2 %v7373_v9  ;;  %v4634_v38 = vld [vmem:[%s10370_s2 + $0x230] sm:$0xf0]  ;;  %v6533_v41 = vld [vmem:[%s10370_s2 + $0x324] sm:$0xf] }
  0x4b   :  { %1414 = vmatpush.bf16.msrb.mxu2 %v5117_v42  ;;  %1402 = vmatpush.bf16.msra.mxu3 %v4973_v49  ;;  %v4762_v42 = vld [vmem:[%s10370_s2 + $0x330] sm:$0xf0] }
  0x4d   :  { %1377 = vmatpush.bf16.msra.mxu0 %v4701_v58  ;;  %1390 = vmatpush.bf16.msra.mxu1 %v4829_v59 }
  0x4f   :  { %1415 = vmatpush.bf16.msrb.mxu2 %v5101_v56  ;;  %1403 = vmatpush.bf16.msra.mxu3 %v4957_v0 }
  0x51   :  { %1378 = vmatpush.bf16.msra.mxu0 %v4685_v7  ;;  %1391 = vmatpush.bf16.msra.mxu1 %v4813_v8 }
  0x53   :  { %1416 = vmatpush.bf16.msrb.mxu2 %v5085_v6  ;;  %1404 = vmatpush.bf16.msra.mxu3 %v4941_v13 }
  0x55   :  { %1379 = vmatpush.bf16.msra.mxu0 %v4669_v20  ;;  %1392 = vmatpush.bf16.msra.mxu1 %v4797_v21 }
  0x57   :  { %1417 = vmatpush.bf16.msrb.mxu2 %v5069_v19  ;;  %1405 = vmatpush.bf16.msra.mxu3 %v4925_v25 }
  0x58   :  { %18 = vsyncpa [#allocation5], 0  ;;  %v6565_v43 = vld [vmem:[%s10370_s2 + $0x424] sm:$0xf]  ;;  %v4890_v44 = vld [vmem:[%s10370_s2 + $0x430] sm:$0xf0]  ;;  %v5037_v45 = vor.u32 %v6601_v32, %v5034_v36  ;;  %v4637_v49 = vor.u32 %v6501_v37, %v4634_v38  ;;  %v4765_v50 = vor.u32 %v6533_v41, %v4762_v42 }
  0x59   :  { %v6597_v46 = vld [vmem:[%s10370_s2 + $0x524] sm:$0xf]  ;;  %v5018_v47 = vld [vmem:[%s10370_s2 + $0x530] sm:$0xf0]  ;;  %1380 = vmatpush.bf16.msra.mxu0 %v4653_v33  ;;  %1393 = vmatpush.bf16.msra.mxu1 %v4781_v35  ;;  %v4893_v55 = vor.u32 %v6565_v43, %v4890_v44  ;;  %v4480_v61 = vld [vmem:[%s10370_s2 + $0xe8] sm:$0xf] }
  0x5a   :  { %v6497_v51 = vld [vmem:[%s10370_s2 + $0x204] sm:$0xf]  ;;  %v4618_v52 = vld [vmem:[%s10370_s2 + $0x210] sm:$0xf0]  ;;  %v6464_v62 = vld [vmem:[%s10370_s2 + $0xf4] sm:$0xf0]  ;;  %v5021_v0 = vor.u32 %v6597_v46, %v5018_v47 }
  0x5b   :  { %1418 = vmatpush.bf16.msrb.mxu2 %v5053_v31  ;;  %v6529_v54 = vld [vmem:[%s10370_s2 + $0x304] sm:$0xf]  ;;  %1406 = vmatpush.bf16.msra.mxu3 %v4909_v40  ;;  %v4746_v56 = vld [vmem:[%s10370_s2 + $0x310] sm:$0xf0]  ;;  %v4736_v2 = vld [vmem:[%s10370_s2 + $0x2e8] sm:$0xf]  ;;  %v4621_v4 = vor.u32 %v6497_v51, %v4618_v52  ;;  %v4481_v10 = vor.u32 %v6464_v62, %v4480_v61 }
  0x5c   :  { %v6561_v58 = vld [vmem:[%s10370_s2 + $0x404] sm:$0xf]  ;;  %v4874_v59 = vld [vmem:[%s10370_s2 + $0x410] sm:$0xf0]  ;;  %v6528_v3 = vld [vmem:[%s10370_s2 + $0x2f4] sm:$0xf0]  ;;  %v4749_v5 = vor.u32 %v6529_v54, %v4746_v56 }
  0x5d   :  { %v6625_v63 = vld [vmem:[%s10370_s2 + $0x604] sm:$0xf]  ;;  %v5130_v1 = vld [vmem:[%s10370_s2 + $0x610] sm:$0xf0]  ;;  %1381 = vmatpush.bf16.msra.mxu0 %v4637_v49  ;;  %1394 = vmatpush.bf16.msra.mxu1 %v4765_v50  ;;  %v4877_v8 = vor.u32 %v6561_v58, %v4874_v59  ;;  %v4864_v11 = vld [vmem:[%s10370_s2 + $0x3e8] sm:$0xf]  ;;  %v4737_v16 = vor.u32 %v6528_v3, %v4736_v2 }
  0x5e   :  { %v6593_v6 = vld [vmem:[%s10370_s2 + $0x504] sm:$0xf]  ;;  %v5002_v7 = vld [vmem:[%s10370_s2 + $0x510] sm:$0xf0]  ;;  %v6560_v12 = vld [vmem:[%s10370_s2 + $0x3f4] sm:$0xf0]  ;;  %v5133_v13 = vor.u32 %v6625_v63, %v5130_v1 }
  0x5f   :  { %1419 = vmatpush.bf16.msrb.mxu2 %v5037_v45  ;;  %1407 = vmatpush.bf16.msra.mxu3 %v4893_v55  ;;  %v4608_v14 = vld [vmem:[%s10370_s2 + $0x1e8] sm:$0xf]  ;;  %v6496_v15 = vld [vmem:[%s10370_s2 + $0x1f4] sm:$0xf0]  ;;  %v5005_v17 = vor.u32 %v6593_v6, %v5002_v7  ;;  %v4865_v20 = vor.u32 %v6560_v12, %v4864_v11  ;;  %s4344_s21 = sshll.u32 %s10379_s11, 4  ;;  %s7034_s11 = smov [#allocation2]   ;;  %s4345_s21 = int_to_ptr.hbm [resolvable:$true] %s4344_s21 }
  0x60   :  { %v4464_v18 = vld [vmem:[%s10370_s2 + $0xc8] sm:$0xf]  ;;  %v6460_v19 = vld [vmem:[%s10370_s2 + $0xd4] sm:$0xf0]  ;;  %v4609_v23 = vor.u32 %v6496_v15, %v4608_v14  ;;  %s4331_s22 = sshll.u32 %s7034_s11, 4  ;;  %s4333_s24 = sshll.u32 %s10378_s10, 4  ;;  %s4332_s22 = int_to_ptr.vmem [resolvable:$true] %s4331_s22  ;;  %s4334_s24 = int_to_ptr.hbm [resolvable:$true] %s4333_s24 }
  0x61   :  { %1382 = vmatpush.bf16.msra.mxu0 %v4621_v4  ;;  %1395 = vmatpush.bf16.msra.mxu1 %v4749_v5  ;;  %v4720_v21 = vld [vmem:[%s10370_s2 + $0x2c8] sm:$0xf]  ;;  %v6524_v22 = vld [vmem:[%s10370_s2 + $0x2d4] sm:$0xf0]  ;;  %v4465_v26 = vor.u32 %v6460_v19, %v4464_v18 }
  0x62   :  { %v4848_v24 = vld [vmem:[%s10370_s2 + $0x3c8] sm:$0xf]  ;;  %v6556_v25 = vld [vmem:[%s10370_s2 + $0x3d4] sm:$0xf0]  ;;  %v4721_v29 = vor.u32 %v6524_v22, %v4720_v21 }
  0x63   :  { %1420 = vmatpush.bf16.msrb.mxu2 %v5021_v0  ;;  %1408 = vmatpush.bf16.msra.mxu3 %v4877_v8  ;;  %v4592_v27 = vld [vmem:[%s10370_s2 + $0x1c8] sm:$0xf]  ;;  %v6492_v28 = vld [vmem:[%s10370_s2 + $0x1d4] sm:$0xf0]  ;;  %v4849_v32 = vor.u32 %v6556_v25, %v4848_v24 }
  0x64   :  { %1383 = vmatmul.bf16.vlgmr.msra.gmra.mxu0 %v7332_v53  ;;  %v4448_v30 = vld [vmem:[%s10370_s2 + $0xa8] sm:$0xf]  ;;  %v6456_v31 = vld [vmem:[%s10370_s2 + $0xb4] sm:$0xf0]  ;;  %1396 = vmatmul.bf16.vlgmr.msra.gmra.mxu1 %v7345_v60  ;;  %v4593_v36 = vor.u32 %v6492_v28, %v4592_v27 }
  0x65   :  { %1440 = vmatpush.bf16.msrb.mxu1 %v4481_v10  ;;  %1466 = vmatpush.bf16.msrb.mxu0 %v4737_v16  ;;  %v4704_v33 = vld [vmem:[%s10370_s2 + $0x2a8] sm:$0xf]  ;;  %v6520_v35 = vld [vmem:[%s10370_s2 + $0x2b4] sm:$0xf0]  ;;  %v4449_v40 = vor.u32 %v6456_v31, %v4448_v30 }
  0x66   :  { %1409 = vmatmul.bf16.vlgmr.msra.gmra.mxu3 %v7540_v34  ;;  %v4832_v37 = vld [vmem:[%s10370_s2 + $0x3a8] sm:$0xf]  ;;  %v6552_v38 = vld [vmem:[%s10370_s2 + $0x3b4] sm:$0xf0]  ;;  %v4705_v43 = vor.u32 %v6520_v35, %v4704_v33 }
  0x67   :  { %1434 = vmatpush.bf16.msrb.mxu3 %v5133_v13  ;;  %1421 = vmatpush.bf16.msrb.mxu2 %v5005_v17  ;;  %v4576_v41 = vld [vmem:[%s10370_s2 + $0x1a8] sm:$0xf]  ;;  %v6488_v42 = vld [vmem:[%s10370_s2 + $0x1b4] sm:$0xf0]  ;;  %v4833_v46 = vor.u32 %v6552_v38, %v4832_v37 }
  0x68   :  { %v4432_v44 = vld [vmem:[%s10370_s2 + $0x88] sm:$0xf]  ;;  %v6452_v45 = vld [vmem:[%s10370_s2 + $0x94] sm:$0xf0]  ;;  %v4577_v50 = vor.u32 %v6488_v42, %v4576_v41 }
  0x69   :  { %1441 = vmatpush.bf16.msrb.mxu1 %v4465_v26  ;;  %1467 = vmatpush.bf16.msrb.mxu0 %v4721_v29  ;;  %v4688_v47 = vld [vmem:[%s10370_s2 + $0x288] sm:$0xf]  ;;  %v6516_v49 = vld [vmem:[%s10370_s2 + $0x294] sm:$0xf0]  ;;  %v4433_v54 = vor.u32 %v6452_v45, %v4432_v44 }
  0x6a   :  { %1422 = vmatmul.bf16.vlgmr.msrb.gmra.mxu2 %v7551_v39  ;;  %v4816_v51 = vld [vmem:[%s10370_s2 + $0x388] sm:$0xf]  ;;  %v6548_v52 = vld [vmem:[%s10370_s2 + $0x394] sm:$0xf0]  ;;  %v4689_v58 = vor.u32 %v6516_v49, %v4688_v47 }
  0x6b   :  { %1479 = vmatpush.bf16.msra.mxu2 %v4865_v20  ;;  %1453 = vmatpush.bf16.msra.mxu3 %v4609_v23  ;;  %v4560_v55 = vld [vmem:[%s10370_s2 + $0x188] sm:$0xf]  ;;  %v6484_v56 = vld [vmem:[%s10370_s2 + $0x194] sm:$0xf0]  ;;  %v4817_v62 = vor.u32 %v6548_v52, %v4816_v51  ;;  %v6462_v51 = vld [vmem:[%s10370_s2 + $0xec] sm:$0xf] }
  0x6c   :  { %v4416_v59 = vld [vmem:[%s10370_s2 + $0x68] sm:$0xf]  ;;  %v6448_v61 = vld [vmem:[%s10370_s2 + $0x74] sm:$0xf0]  ;;  %v4561_v1 = vor.u32 %v6484_v56, %v4560_v55  ;;  %v4482_v52 = vld [vmem:[%s10370_s2 + $0xf8] sm:$0xf0] }
  0x6d   :  { %1442 = vmatpush.bf16.msrb.mxu1 %v4449_v40  ;;  %1468 = vmatpush.bf16.msrb.mxu0 %v4705_v43  ;;  %v4672_v63 = vld [vmem:[%s10370_s2 + $0x268] sm:$0xf]  ;;  %v6512_v0 = vld [vmem:[%s10370_s2 + $0x274] sm:$0xf0]  ;;  %v4417_v4 = vor.u32 %v6448_v61, %v4416_v59 }
  0x6e   :  { %v4800_v2 = vld [vmem:[%s10370_s2 + $0x368] sm:$0xf]  ;;  %v6544_v3 = vld [vmem:[%s10370_s2 + $0x374] sm:$0xf0]  ;;  %v4673_v7 = vor.u32 %v6512_v0, %v4672_v63  ;;  %v6494_v0 = vld [vmem:[%s10370_s2 + $0x1ec] sm:$0xf] }
  0x6f   :  { %1480 = vmatpush.bf16.msra.mxu2 %v4849_v32  ;;  %1454 = vmatpush.bf16.msra.mxu3 %v4593_v36  ;;  %v4544_v5 = vld [vmem:[%s10370_s2 + $0x168] sm:$0xf]  ;;  %v6480_v6 = vld [vmem:[%s10370_s2 + $0x174] sm:$0xf0]  ;;  %v4801_v11 = vor.u32 %v6544_v3, %v4800_v2  ;;  %v4485_v3 = vor.u32 %v6462_v51, %v4482_v52 }
  0x70   :  { %v4400_v8 = vld [vmem:[%s10370_s2 + $0x48] sm:$0xf]  ;;  %v6444_v10 = vld [vmem:[%s10370_s2 + $0x54] sm:$0xf0]  ;;  %v4545_v14 = vor.u32 %v6480_v6, %v4544_v5  ;;  %v6458_v5 = vld [vmem:[%s10370_s2 + $0xcc] sm:$0xf] }
  0x71   :  { %1443 = vmatpush.bf16.msrb.mxu1 %v4433_v54  ;;  %1469 = vmatpush.bf16.msrb.mxu0 %v4689_v58  ;;  %v4656_v12 = vld [vmem:[%s10370_s2 + $0x248] sm:$0xf]  ;;  %v6508_v13 = vld [vmem:[%s10370_s2 + $0x254] sm:$0xf0]  ;;  %v4401_v17 = vor.u32 %v6444_v10, %v4400_v8  ;;  %v4466_v6 = vld [vmem:[%s10370_s2 + $0xd8] sm:$0xf0] }
  0x72   :  { %v4784_v15 = vld [vmem:[%s10370_s2 + $0x348] sm:$0xf]  ;;  %v6540_v16 = vld [vmem:[%s10370_s2 + $0x354] sm:$0xf0]  ;;  %v4657_v20 = vor.u32 %v6508_v13, %v4656_v12 }
  0x73   :  { %1481 = vmatpush.bf16.msra.mxu2 %v4833_v46  ;;  %1455 = vmatpush.bf16.msra.mxu3 %v4577_v50  ;;  %v4528_v18 = vld [vmem:[%s10370_s2 + $0x148] sm:$0xf]  ;;  %v6476_v19 = vld [vmem:[%s10370_s2 + $0x154] sm:$0xf0]  ;;  %v4785_v23 = vor.u32 %v6540_v16, %v4784_v15  ;;  %v4594_v15 = vld [vmem:[%s10370_s2 + $0x1d8] sm:$0xf0]  ;;  %v4469_v16 = vor.u32 %v6458_v5, %v4466_v6 }
  0x74   :  { %v4384_v21 = vld [vmem:[%s10370_s2 + $0x28] sm:$0xf]  ;;  %v6440_v22 = vld [vmem:[%s10370_s2 + $0x34] sm:$0xf0]  ;;  %v4529_v26 = vor.u32 %v6476_v19, %v4528_v18  ;;  %v6454_v18 = vld [vmem:[%s10370_s2 + $0xac] sm:$0xf] }
  0x75   :  { %1444 = vmatpush.bf16.msrb.mxu1 %v4417_v4  ;;  %1470 = vmatpush.bf16.msrb.mxu0 %v4673_v7  ;;  %v4640_v24 = vld [vmem:[%s10370_s2 + $0x228] sm:$0xf]  ;;  %v6504_v25 = vld [vmem:[%s10370_s2 + $0x234] sm:$0xf0]  ;;  %v4385_v29 = vor.u32 %v6440_v22, %v4384_v21  ;;  %v4450_v19 = vld [vmem:[%s10370_s2 + $0xb8] sm:$0xf0] }
  0x76   :  { %5143 = vmatmul.msk.bf16.vlgmr.msrb.gmra.mxu3 %vm1254_vm0, %v7452_v48  ;;  %v4768_v27 = vld [vmem:[%s10370_s2 + $0x328] sm:$0xf]  ;;  %v6536_v28 = vld [vmem:[%s10370_s2 + $0x334] sm:$0xf0]  ;;  %v4641_v33 = vor.u32 %v6504_v25, %v4640_v24  ;;  %v4530_v5 = vld [vmem:[%s10370_s2 + $0x158] sm:$0xf0] }
  0x77   :  { %1482 = vmatpush.bf16.msra.mxu2 %v4817_v62  ;;  %1456 = vmatpush.bf16.msra.mxu3 %v4561_v1  ;;  %v4512_v30 = vld [vmem:[%s10370_s2 + $0x128] sm:$0xf]  ;;  %v6472_v31 = vld [vmem:[%s10370_s2 + $0x134] sm:$0xf0]  ;;  %v4769_v38 = vor.u32 %v6536_v28, %v4768_v27  ;;  %v4610_v1 = vld [vmem:[%s10370_s2 + $0x1f8] sm:$0xf0]  ;;  %v4453_v28 = vor.u32 %v6454_v18, %v4450_v19 }
  0x78   :  { %v4368_v32 = vld [vmem:[%s10370_s2 + $0x8] sm:$0xf]  ;;  %v6436_v35 = vld [vmem:[%s10370_s2 + $0x14] sm:$0xf0]  ;;  %v4513_v44 = vor.u32 %v6472_v31, %v4512_v30  ;;  %v4613_v8 = vor.u32 %v6494_v0, %v4610_v1  ;;  %v4578_v27 = vld [vmem:[%s10370_s2 + $0x1b8] sm:$0xf0] }
  0x79   :  { %1445 = vmatpush.bf16.msrb.mxu1 %v4401_v17  ;;  %1471 = vmatpush.bf16.msrb.mxu0 %v4657_v20  ;;  %v4992_v36 = vld [vmem:[%s10370_s2 + $0x4e8] sm:$0xf]  ;;  %v6592_v37 = vld [vmem:[%s10370_s2 + $0x4f4] sm:$0xf0]  ;;  %v4369_v49 = vor.u32 %v6436_v35, %v4368_v32  ;;  %v6450_v30 = vld [vmem:[%s10370_s2 + $0x8c] sm:$0xf] }
  0x7a   :  { %v4496_v40 = vld [vmem:[%s10370_s2 + $0x108] sm:$0xf]  ;;  %v6500_v42 = vld [vmem:[%s10370_s2 + $0x214] sm:$0xf0]  ;;  %v4993_v54 = vor.u32 %v6592_v37, %v4992_v36  ;;  %v4434_v31 = vld [vmem:[%s10370_s2 + $0x98] sm:$0xf0] }
  0x7b   :  { %1483 = vmatpush.bf16.msra.mxu2 %v4801_v11  ;;  %1457 = vmatpush.bf16.msra.mxu3 %v4545_v14  ;;  %v4624_v41 = vld [vmem:[%s10370_s2 + $0x208] sm:$0xf]  ;;  %v6532_v45 = vld [vmem:[%s10370_s2 + $0x314] sm:$0xf0]  ;;  %v6490_v14 = vld [vmem:[%s10370_s2 + $0x1cc] sm:$0xf] }
  0x7c   :  { %v4752_v43 = vld [vmem:[%s10370_s2 + $0x308] sm:$0xf]  ;;  %v6628_v47 = vld [vmem:[%s10370_s2 + $0x614] sm:$0xf0]  ;;  %v4625_v55 = vor.u32 %v6500_v42, %v4624_v41  ;;  %v4597_v21 = vor.u32 %v6490_v14, %v4594_v15  ;;  %v4562_v41 = vld [vmem:[%s10370_s2 + $0x198] sm:$0xf0]  ;;  %v4437_v42 = vor.u32 %v6450_v30, %v4434_v31 }
  0x7d   :  { %v5136_v46 = vld [vmem:[%s10370_s2 + $0x608] sm:$0xf]  ;;  %1446 = vmatpush.bf16.msrb.mxu1 %v4385_v29  ;;  %v6468_v50 = vld [vmem:[%s10370_s2 + $0x114] sm:$0xf0]  ;;  %1472 = vmatpush.bf16.msrb.mxu0 %v4641_v33  ;;  %v4753_v61 = vor.u32 %v6532_v45, %v4752_v43  ;;  %v4418_v45 = vld [vmem:[%s10370_s2 + $0x78] sm:$0xf0] }
  0x7e   :  { %v5120_v56 = vld [vmem:[%s10370_s2 + $0x5e8] sm:$0xf]  ;;  %v6624_v58 = vld [vmem:[%s10370_s2 + $0x5f4] sm:$0xf0]  ;;  %v5137_v63 = vor.u32 %v6628_v47, %v5136_v46  ;;  %v4497_v2 = vor.u32 %v6468_v50, %v4496_v40  ;;  %v6482_v40 = vld [vmem:[%s10370_s2 + $0x18c] sm:$0xf] }
  0x7f   :  { %1484 = vmatpush.bf16.msra.mxu2 %v4785_v23  ;;  %1458 = vmatpush.bf16.msra.mxu3 %v4529_v26  ;;  %v4976_v59 = vld [vmem:[%s10370_s2 + $0x4c8] sm:$0xf]  ;;  %v6588_v62 = vld [vmem:[%s10370_s2 + $0x4d4] sm:$0xf0]  ;;  %v5121_v4 = vor.u32 %v6624_v58, %v5120_v56  ;;  %v6486_v26 = vld [vmem:[%s10370_s2 + $0x1ac] sm:$0xf]  ;;  %v4565_v47 = vor.u32 %v6482_v40, %v4562_v41 }
  0x80   :  { %v4977_v7 = vor.u32 %v6588_v62, %v4976_v59  ;;  %v5104_v10 = vld [vmem:[%s10370_s2 + $0x5c8] sm:$0xf]  ;;  %v6620_v11 = vld [vmem:[%s10370_s2 + $0x5d4] sm:$0xf0]  ;;  %v4581_v33 = vor.u32 %v6486_v26, %v4578_v27  ;;  %v6442_v59 = vld [vmem:[%s10370_s2 + $0x4c] sm:$0xf] }
  0x81   :  { %1447 = vmatpush.bf16.msrb.mxu1 %v4369_v49  ;;  %1473 = vmatpush.bf16.msrb.mxu0 %v4625_v55  ;;  %v4960_v12 = vld [vmem:[%s10370_s2 + $0x4a8] sm:$0xf]  ;;  %v6584_v13 = vld [vmem:[%s10370_s2 + $0x4b4] sm:$0xf0]  ;;  %v5105_v17 = vor.u32 %v6620_v11, %v5104_v10  ;;  %v4546_v55 = vld [vmem:[%s10370_s2 + $0x178] sm:$0xf0] }
  0x82   :  { %v4961_v20 = vor.u32 %v6584_v13, %v4960_v12  ;;  %v5088_v22 = vld [vmem:[%s10370_s2 + $0x5a8] sm:$0xf]  ;;  %v6616_v23 = vld [vmem:[%s10370_s2 + $0x5b4] sm:$0xf0]  ;;  %v4386_v10 = vld [vmem:[%s10370_s2 + $0x38] sm:$0xf0] }
  0x83   :  { %1485 = vmatpush.bf16.msra.mxu2 %v4769_v38  ;;  %1459 = vmatpush.bf16.msra.mxu3 %v4513_v44  ;;  %v4944_v24 = vld [vmem:[%s10370_s2 + $0x488] sm:$0xf]  ;;  %v6580_v25 = vld [vmem:[%s10370_s2 + $0x494] sm:$0xf0]  ;;  %v5089_v29 = vor.u32 %v6616_v23, %v5088_v22  ;;  %v6446_v44 = vld [vmem:[%s10370_s2 + $0x6c] sm:$0xf] }
  0x84   :  { %1474 = vmatmul.bf16.vlgmr.msrb.gmra.mxu0 %v7332_v53  ;;  %1448 = vmatmul.bf16.vlgmr.msrb.gmra.mxu1 %v7343_v57  ;;  %v4945_v32 = vor.u32 %v6580_v25, %v4944_v24  ;;  %v5072_v35 = vld [vmem:[%s10370_s2 + $0x588] sm:$0xf]  ;;  %v6612_v36 = vld [vmem:[%s10370_s2 + $0x594] sm:$0xf0]  ;;  %v4421_v56 = vor.u32 %v6446_v44, %v4418_v45  ;;  %v4514_v18 = vld [vmem:[%s10370_s2 + $0x138] sm:$0xf0] }
  0x85   :  { %1492 = vmatpush.bf16.msra.mxu1 %v4993_v54  ;;  %1525 = vmatpush.bf16.msra.mxu0 %v5137_v63  ;;  %v4928_v37 = vld [vmem:[%s10370_s2 + $0x468] sm:$0xf]  ;;  %v6576_v38 = vld [vmem:[%s10370_s2 + $0x474] sm:$0xf0]  ;;  %v5073_v43 = vor.u32 %v6612_v36, %v5072_v35  ;;  %v6478_v54 = vld [vmem:[%s10370_s2 + $0x16c] sm:$0xf] }
  0x86   :  { %v4929_v46 = vor.u32 %v6576_v38, %v4928_v37  ;;  %v5056_v49 = vld [vmem:[%s10370_s2 + $0x568] sm:$0xf]  ;;  %v6608_v50 = vld [vmem:[%s10370_s2 + $0x574] sm:$0xf0]  ;;  %v4549_v63 = vor.u32 %v6478_v54, %v4546_v55  ;;  %v6434_v24 = vld [vmem:[%s10370_s2 + $0xc] sm:$0xf] }
  0x87   :  { %1486 = vmatpush.bf16.msra.mxu2 %v4753_v61  ;;  %1460 = vmatpush.bf16.msra.mxu3 %v4497_v2  ;;  %v4912_v51 = vld [vmem:[%s10370_s2 + $0x448] sm:$0xf]  ;;  %v6572_v52 = vld [vmem:[%s10370_s2 + $0x454] sm:$0xf0]  ;;  %v5057_v58 = vor.u32 %v6608_v50, %v5056_v49  ;;  %v4402_v61 = vld [vmem:[%s10370_s2 + $0x58] sm:$0xf0] }
  0x88   :  { %v4913_v62 = vor.u32 %v6572_v52, %v4912_v51  ;;  %v5040_v0 = vld [vmem:[%s10370_s2 + $0x548] sm:$0xf]  ;;  %v6604_v1 = vld [vmem:[%s10370_s2 + $0x554] sm:$0xf0]  ;;  %v4405_v6 = vor.u32 %v6442_v59, %v4402_v61  ;;  %v4370_v25 = vld [vmem:[%s10370_s2 + $0x18] sm:$0xf0] }
  0x89   :  { %1493 = vmatpush.bf16.msra.mxu1 %v4977_v7  ;;  %1544 = vmatpush.bf16.msrb.mxu0 %v4613_v8  ;;  %v4896_v2 = vld [vmem:[%s10370_s2 + $0x428] sm:$0xf]  ;;  %v5041_v7 = vor.u32 %v6604_v1, %v5040_v0  ;;  %v6438_v8 = vld [vmem:[%s10370_s2 + $0x2c] sm:$0xf]  ;;  %v6600_v14 = vld [vmem:[%s10370_s2 + $0x534] sm:$0xf0]  ;;  %v4373_v36 = vor.u32 %v6434_v24, %v4370_v25 }
  0x8a   :  { %1461 = vmatmul.bf16.vlgmr.msra.gmra.mxu3 %v7373_v9  ;;  %1487 = vmatmul.bf16.vlgmr.msra.gmra.mxu2 %v7345_v60  ;;  %v5024_v13 = vld [vmem:[%s10370_s2 + $0x528] sm:$0xf]  ;;  %v4389_v19 = vor.u32 %v6438_v8, %v4386_v10  ;;  %v4866_v30 = vld [vmem:[%s10370_s2 + $0x3f8] sm:$0xf0]  ;;  %v6522_v35 = vld [vmem:[%s10370_s2 + $0x2cc] sm:$0xf] }
  0x8b   :  { %1531 = vmatpush.bf16.msrb.mxu2 %v4485_v3  ;;  %1505 = vmatpush.bf16.msrb.mxu3 %v5121_v4  ;;  %v6568_v3 = vld [vmem:[%s10370_s2 + $0x434] sm:$0xf0]  ;;  %v6474_v4 = vld [vmem:[%s10370_s2 + $0x14c] sm:$0xf]  ;;  %v4880_v15 = vld [vmem:[%s10370_s2 + $0x408] sm:$0xf]  ;;  %v5025_v22 = vor.u32 %v6600_v14, %v5024_v13 }
  0x8c   :  { %v4897_v11 = vor.u32 %v6568_v3, %v4896_v2  ;;  %v4533_v12 = vor.u32 %v6474_v4, %v4530_v5  ;;  %v5008_v23 = vld [vmem:[%s10370_s2 + $0x508] sm:$0xf]  ;;  %v4722_v37 = vld [vmem:[%s10370_s2 + $0x2d8] sm:$0xf0]  ;;  %v6466_v38 = vld [vmem:[%s10370_s2 + $0x10c] sm:$0xf] }
  0x8d   :  { %1494 = vmatpush.bf16.msra.mxu1 %v4961_v20  ;;  %1545 = vmatpush.bf16.msrb.mxu0 %v4597_v21  ;;  %v6526_v20 = vld [vmem:[%s10370_s2 + $0x2ec] sm:$0xf]  ;;  %v4738_v21 = vld [vmem:[%s10370_s2 + $0x2f8] sm:$0xf0] }
  0x8e   :  { %v4741_v31 = vor.u32 %v6526_v20, %v4738_v21  ;;  %v4498_v40 = vld [vmem:[%s10370_s2 + $0x118] sm:$0xf0]  ;;  %v6586_v51 = vld [vmem:[%s10370_s2 + $0x4cc] sm:$0xf] }
  0x8f   :  { %1532 = vmatpush.bf16.msrb.mxu2 %v4469_v16  ;;  %1506 = vmatpush.bf16.msrb.mxu3 %v5105_v17  ;;  %v6564_v16 = vld [vmem:[%s10370_s2 + $0x414] sm:$0xf0]  ;;  %v6470_v17 = vld [vmem:[%s10370_s2 + $0x12c] sm:$0xf]  ;;  %v4501_v49 = vor.u32 %v6466_v38, %v4498_v40  ;;  %v4850_v50 = vld [vmem:[%s10370_s2 + $0x3d8] sm:$0xf0] }
  0x90   :  { %v4881_v26 = vor.u32 %v6564_v16, %v4880_v15  ;;  %v4517_v27 = vor.u32 %v6470_v17, %v4514_v18  ;;  %v4978_v52 = vld [vmem:[%s10370_s2 + $0x4d8] sm:$0xf0]  ;;  %v6518_v55 = vld [vmem:[%s10370_s2 + $0x2ac] sm:$0xf] }
  0x91   :  { %1495 = vmatpush.bf16.msra.mxu1 %v4945_v32  ;;  %1546 = vmatpush.bf16.msrb.mxu0 %v4581_v33  ;;  %v6590_v32 = vld [vmem:[%s10370_s2 + $0x4ec] sm:$0xf]  ;;  %v4994_v33 = vld [vmem:[%s10370_s2 + $0x4f8] sm:$0xf0] }
  0x92   :  { %v4997_v45 = vor.u32 %v6590_v32, %v4994_v33  ;;  %v5106_v59 = vld [vmem:[%s10370_s2 + $0x5d8] sm:$0xf0]  ;;  %v6582_v2 = vld [vmem:[%s10370_s2 + $0x4ac] sm:$0xf] }
  0x93   :  { %1533 = vmatpush.bf16.msrb.mxu2 %v4453_v28  ;;  %1507 = vmatpush.bf16.msrb.mxu3 %v5089_v29  ;;  %v6596_v28 = vld [vmem:[%s10370_s2 + $0x514] sm:$0xf0]  ;;  %v6558_v29 = vld [vmem:[%s10370_s2 + $0x3ec] sm:$0xf]  ;;  %v4834_v1 = vld [vmem:[%s10370_s2 + $0x3b8] sm:$0xf0] }
  0x94   :  { %5144 = vmatmul.msk.bf16.vlgmr.msra.gmra.mxu0 %vm1254_vm0, %v7452_v48  ;;  %v5009_v41 = vor.u32 %v6596_v28, %v5008_v23  ;;  %v4869_v44 = vor.u32 %v6558_v29, %v4866_v30  ;;  %v4962_v3 = vld [vmem:[%s10370_s2 + $0x4b8] sm:$0xf0]  ;;  %v6514_v5 = vld [vmem:[%s10370_s2 + $0x28c] sm:$0xf] }
  0x95   :  { %1496 = vmatpush.bf16.msra.mxu1 %v4929_v46  ;;  %1547 = vmatpush.bf16.msrb.mxu0 %v4565_v47  ;;  %v6554_v46 = vld [vmem:[%s10370_s2 + $0x3cc] sm:$0xf]  ;;  %v4725_v47 = vor.u32 %v6522_v35, %v4722_v37  ;;  %v5090_v8 = vld [vmem:[%s10370_s2 + $0x5b8] sm:$0xf0] }
  0x96   :  { %v4853_v61 = vor.u32 %v6554_v46, %v4850_v50  ;;  %v6578_v14 = vld [vmem:[%s10370_s2 + $0x48c] sm:$0xf]  ;;  %v4946_v15 = vld [vmem:[%s10370_s2 + $0x498] sm:$0xf0] }
  0x97   :  { %1534 = vmatpush.bf16.msrb.mxu2 %v4437_v42  ;;  %1508 = vmatpush.bf16.msrb.mxu3 %v5073_v43  ;;  %v6622_v42 = vld [vmem:[%s10370_s2 + $0x5ec] sm:$0xf]  ;;  %v5122_v43 = vld [vmem:[%s10370_s2 + $0x5f8] sm:$0xf0] }
  0x98   :  { %v5125_v54 = vor.u32 %v6622_v42, %v5122_v43  ;;  %v6510_v17 = vld [vmem:[%s10370_s2 + $0x26c] sm:$0xf]  ;;  %v4674_v18 = vld [vmem:[%s10370_s2 + $0x278] sm:$0xf0] }
  0x99   :  { %1497 = vmatpush.bf16.msra.mxu1 %v4913_v62  ;;  %1548 = vmatpush.bf16.msrb.mxu0 %v4549_v63  ;;  %v4981_v62 = vor.u32 %v6586_v51, %v4978_v52  ;;  %v6550_v63 = vld [vmem:[%s10370_s2 + $0x3ac] sm:$0xf]  ;;  %v4677_v24 = vor.u32 %v6510_v17, %v4674_v18  ;;  %v4802_v25 = vld [vmem:[%s10370_s2 + $0x378] sm:$0xf0]  ;;  %v5204_v17 = vld [vmem:[%s10372_s4 + $0x70] sm:$0xf] }
  0x9a   :  { %v4837_v10 = vor.u32 %v6550_v63, %v4834_v1  ;;  %v6610_v20 = vld [vmem:[%s10370_s2 + $0x58c] sm:$0xf]  ;;  %v5058_v33 = vld [vmem:[%s10370_s2 + $0x578] sm:$0xf0]  ;;  %v6644_v18 = vld [vmem:[%s10372_s4 + $0x74] sm:$0xf0] }
  0x9b   :  { %1535 = vmatpush.bf16.msrb.mxu2 %v4421_v56  ;;  %1509 = vmatpush.bf16.msrb.mxu3 %v5057_v58  ;;  %v4706_v56 = vld [vmem:[%s10370_s2 + $0x2b8] sm:$0xf0]  ;;  %v6618_v58 = vld [vmem:[%s10370_s2 + $0x5cc] sm:$0xf] }
  0x9c   :  { %v4709_v0 = vor.u32 %v6518_v55, %v4706_v56  ;;  %v5109_v4 = vor.u32 %v6618_v58, %v5106_v59  ;;  %v6542_v23 = vld [vmem:[%s10370_s2 + $0x36c] sm:$0xf]  ;;  %v4786_v42 = vld [vmem:[%s10370_s2 + $0x358] sm:$0xf0] }
  0x9d   :  { %1498 = vmatpush.bf16.msra.mxu1 %v4897_v11  ;;  %1549 = vmatpush.bf16.msrb.mxu0 %v4533_v12  ;;  %v4965_v11 = vor.u32 %v6582_v2, %v4962_v3  ;;  %v6546_v12 = vld [vmem:[%s10370_s2 + $0x38c] sm:$0xf]  ;;  %v5042_v51 = vld [vmem:[%s10370_s2 + $0x558] sm:$0xf0] }
  0x9e   :  { %v6506_v30 = vld [vmem:[%s10370_s2 + $0x24c] sm:$0xf]  ;;  %v4770_v58 = vld [vmem:[%s10370_s2 + $0x338] sm:$0xf0] }
  0x9f   :  { %1536 = vmatpush.bf16.msrb.mxu2 %v4405_v6  ;;  %1510 = vmatpush.bf16.msrb.mxu3 %v5041_v7  ;;  %v4690_v6 = vld [vmem:[%s10370_s2 + $0x298] sm:$0xf0]  ;;  %v6614_v7 = vld [vmem:[%s10370_s2 + $0x5ac] sm:$0xf] }
  0xa0   :  { %v4693_v13 = vor.u32 %v6514_v5, %v4690_v6  ;;  %v5093_v16 = vor.u32 %v6614_v7, %v5090_v8  ;;  %v6606_v32 = vld [vmem:[%s10370_s2 + $0x56c] sm:$0xf]  ;;  %v5026_v3 = vld [vmem:[%s10370_s2 + $0x538] sm:$0xf0]  ;;  %v8316_v6 = vld [vmem:[%s10371_s3] sm:$0xf] }
  0xa1   :  { %1499 = vmatpush.bf16.msra.mxu1 %v4881_v26  ;;  %1550 = vmatpush.bf16.msrb.mxu0 %v4517_v27  ;;  %v6574_v26 = vld [vmem:[%s10370_s2 + $0x46c] sm:$0xf]  ;;  %v4930_v27 = vld [vmem:[%s10370_s2 + $0x478] sm:$0xf0] }
  0xa2   :  { %v4933_v37 = vor.u32 %v6574_v26, %v4930_v27  ;;  %v6538_v38 = vld [vmem:[%s10370_s2 + $0x34c] sm:$0xf]  ;;  %v5138_v5 = vld [vmem:[%s10370_s2 + $0x618] sm:$0xf0]  ;;  %v5205_v27 = vor.u32 %v6644_v18, %v5204_v17  ;;  %v5148_v17 = vld [vmem:[%s10372_s4] sm:$0xf] }
  0xa3   :  { %1537 = vmatpush.bf16.msrb.mxu2 %v4389_v19  ;;  %1511 = vmatpush.bf16.msrb.mxu3 %v5025_v22  ;;  %v4949_v22 = vor.u32 %v6578_v14, %v4946_v15  ;;  %v6570_v43 = vld [vmem:[%s10370_s2 + $0x44c] sm:$0xf]  ;;  %v4789_v52 = vor.u32 %v6538_v38, %v4786_v42  ;;  %v4882_v14 = vld [vmem:[%s10370_s2 + $0x418] sm:$0xf0]  ;;  %v5188_v42 = vld [vmem:[%s10372_s4 + $0x50] sm:$0xf] }
  0xa4   :  { %1500 = vmatmul.bf16.vlgmr.msra.gmra.mxu1 %v7540_v34  ;;  %v6502_v46 = vld [vmem:[%s10370_s2 + $0x22c] sm:$0xf]  ;;  %v6630_v18 = vld [vmem:[%s10372_s4 + $0x4] sm:$0xf0] }
  0xa5   :  { %1557 = vmatpush.bf16.msrb.mxu1 %v4741_v31  ;;  %1551 = vmatpush.bf16.msrb.mxu0 %v4501_v49  ;;  %v8221_v19 = vpop.f32.mrf.mxu0  ;;  %v8241_v29 = vpop.f32.mrf.mxu1  ;;  %v4658_v31 = vld [vmem:[%s10370_s2 + $0x258] sm:$0xf0]  ;;  %v6602_v50 = vld [vmem:[%s10370_s2 + $0x54c] sm:$0xf] }
  0xa6   :  { %v4661_v40 = vor.u32 %v6506_v30, %v4658_v31  ;;  %v6534_v55 = vld [vmem:[%s10370_s2 + $0x32c] sm:$0xf]  ;;  %v5196_v30 = vld [vmem:[%s10372_s4 + $0x60] sm:$0xf]  ;;  %v6642_v31 = vld [vmem:[%s10372_s4 + $0x64] sm:$0xf0] }
  0xa7   :  { %1538 = vmatpush.bf16.msrb.mxu2 %v4373_v36  ;;  %1512 = vmatpush.bf16.msrb.mxu3 %v5009_v41  ;;  %v4805_v36 = vor.u32 %v6542_v23, %v4802_v25  ;;  %v6566_v59 = vld [vmem:[%s10370_s2 + $0x42c] sm:$0xf]  ;;  %v4773_v8 = vor.u32 %v6534_v55, %v4770_v58  ;;  %v6660_v23 = vld [vmem:[%s10372_s4 + $0xf4] sm:$0xf0]  ;;  %v5172_v55 = vld [vmem:[%s10372_s4 + $0x30] sm:$0xf] }
  0xa8   :  { %1552 = vmatmul.bf16.vlgmr.msrb.gmra.mxu0 %v7373_v9  ;;  %v5074_v9 = vld [vmem:[%s10370_s2 + $0x598] sm:$0xf0]  ;;  %v8255_v35 = vpop.f32.mrf.mxu2  ;;  %v6498_v63 = vld [vmem:[%s10370_s2 + $0x20c] sm:$0xf] }
  0xa9   :  { %1558 = vmatpush.bf16.msrb.mxu1 %v4725_v47  ;;  %1596 = vmatpush.bf16.msra.mxu0 %v5125_v54  ;;  %v5077_v28 = vor.u32 %v6610_v20, %v5074_v9  ;;  %v8260_v41 = vpop.f32.mrf.mxu3  ;;  %v4642_v47 = vld [vmem:[%s10370_s2 + $0x238] sm:$0xf0]  ;;  %v6598_v1 = vld [vmem:[%s10370_s2 + $0x52c] sm:$0xf] }
  0xaa   :  { %1513 = vmatmul.bf16.vlgmr.msrb.gmra.mxu3 %v7551_v39  ;;  %1539 = vmatmul.bf16.vlgmr.msrb.gmra.mxu2 %v7343_v57  ;;  %v4818_v57 = vld [vmem:[%s10370_s2 + $0x398] sm:$0xf0]  ;;  %v4645_v56 = vor.u32 %v6502_v46, %v4642_v47  ;;  %v6594_v20 = vld [vmem:[%s10370_s2 + $0x50c] sm:$0xf]  ;;  %v6638_v47 = vld [vmem:[%s10372_s4 + $0x44] sm:$0xf0] }
  0xab   :  { %1570 = vmatpush.bf16.msra.mxu3 %v4869_v44  ;;  %1583 = vmatpush.bf16.msra.mxu2 %v4997_v45  ;;  %v4821_v21 = vor.u32 %v6546_v12, %v4818_v57  ;;  %v4914_v44 = vld [vmem:[%s10370_s2 + $0x458] sm:$0xf0]  ;;  %v5061_v45 = vor.u32 %v6606_v32, %v5058_v33  ;;  %v6562_v57 = vld [vmem:[%s10370_s2 + $0x40c] sm:$0xf]  ;;  %v5260_v33 = vld [vmem:[%s10372_s4 + $0xe0] sm:$0xf] }
  0xac   :  { %v4917_v54 = vor.u32 %v6570_v43, %v4914_v44  ;;  %v4885_v26 = vor.u32 %v6562_v57, %v4882_v14  ;;  %v6640_v43 = vld [vmem:[%s10372_s4 + $0x54] sm:$0xf0] }
  0xad   :  { %1559 = vmatpush.bf16.msrb.mxu1 %v4709_v0  ;;  %1597 = vmatpush.bf16.msra.mxu0 %v5109_v4  ;;  %v1269_v49 = vpop.f32.mrf.mxu0  ;;  %v4626_v0 = vld [vmem:[%s10370_s2 + $0x218] sm:$0xf0]  ;;  %v1282_v2 = vpop.f32.mrf.mxu1  ;;  %v6626_v4 = vld [vmem:[%s10370_s2 + $0x60c] sm:$0xf]  ;;  %v5189_v46 = vor.u32 %v6640_v43, %v5188_v42  ;;  %v6648_v14 = vld [vmem:[%s10372_s4 + $0x94] sm:$0xf0] }
  0xae   :  { %v4629_v12 = vor.u32 %v6498_v63, %v4626_v0  ;;  %v5141_v9 = vor.u32 %v6626_v4, %v5138_v5  ;;  %v5164_v0 = vld [vmem:[%s10372_s4 + $0x20] sm:$0xf]  ;;  %v6650_v5 = vld [vmem:[%s10372_s4 + $0xa4] sm:$0xf0] }
  0xaf   :  { %1571 = vmatpush.bf16.msra.mxu3 %v4853_v61  ;;  %1584 = vmatpush.bf16.msra.mxu2 %v4981_v62  ;;  %v4898_v61 = vld [vmem:[%s10370_s2 + $0x438] sm:$0xf0]  ;;  %v5045_v62 = vor.u32 %v6602_v50, %v5042_v51 }
  0xb0   :  { %v1295_v7 = vpop.f32.mrf.mxu2 }
  0xb1   :  { %1560 = vmatpush.bf16.msrb.mxu1 %v4693_v13  ;;  %1598 = vmatpush.bf16.msra.mxu0 %v5093_v16  ;;  %v4754_v13 = vld [vmem:[%s10370_s2 + $0x318] sm:$0xf0]  ;;  %v1308_v15 = vpop.f32.mrf.mxu3  ;;  %v5029_v16 = vor.u32 %v6598_v1, %v5026_v3  ;;  %v6634_v1 = vld [vmem:[%s10372_s4 + $0x24] sm:$0xf0] }
  0xb3   :  { %1572 = vmatpush.bf16.msra.mxu3 %v4837_v10  ;;  %1585 = vmatpush.bf16.msra.mxu2 %v4965_v11  ;;  %v4901_v10 = vor.u32 %v6566_v59, %v4898_v61  ;;  %v6530_v11 = vld [vmem:[%s10370_s2 + $0x30c] sm:$0xf]  ;;  %v5236_v59 = vld [vmem:[%s10372_s4 + $0xb0] sm:$0xf] }
  0xb4   :  { %v4757_v25 = vor.u32 %v6530_v11, %v4754_v13  ;;  %v6632_v13 = vld [vmem:[%s10372_s4 + $0x14] sm:$0xf0] }
  0xb5   :  { %1561 = vmatpush.bf16.msrb.mxu1 %v4677_v24  ;;  %1599 = vmatpush.bf16.msra.mxu0 %v5077_v28  ;;  %v242_v24 = vperm.slane %v8316_v6, 0 }
  0xb7   :  { %1573 = vmatpush.bf16.msra.mxu3 %v4821_v21  ;;  %1586 = vmatpush.bf16.msra.mxu2 %v4949_v22  ;;  %v5010_v21 = vld [vmem:[%s10370_s2 + $0x518] sm:$0xf0]  ;;  %v5268_v22 = vld [vmem:[%s10372_s4 + $0xf0] sm:$0xf] }
  0xb8   :  { %v5013_v28 = vor.u32 %v6594_v20, %v5010_v21  ;;  %v5269_v32 = vor.u32 %v6660_v23, %v5268_v22  ;;  %v6643_v20 = vld [vmem:[%s10372_s4 + $0x74] sm:$0xf]  ;;  %v5206_v22 = vld [vmem:[%s10372_s4 + $0x78] sm:$0xf0]  ;;  %v5212_v23 = vld [vmem:[%s10372_s4 + $0x80] sm:$0xf] }
  0xb9   :  { %1562 = vmatpush.bf16.msrb.mxu1 %v4661_v40  ;;  %1600 = vmatpush.bf16.msra.mxu0 %v5061_v45  ;;  %v1345_v38 = vpop.f32.mrf.mxu2  ;;  %v5197_v40 = vor.u32 %v6642_v31, %v5196_v30  ;;  %v5209_v31 = vor.u32 %v6643_v20, %v5206_v22  ;;  %v5158_v20 = vld [vmem:[%s10372_s4 + $0x18] sm:$0xf0]  ;;  %v6647_v22 = vld [vmem:[%s10372_s4 + $0x94] sm:$0xf] }
  0xbb   :  { %1574 = vmatpush.bf16.msra.mxu3 %v4805_v36  ;;  %1587 = vmatpush.bf16.msra.mxu2 %v4933_v37  ;;  %v6658_v36 = vld [vmem:[%s10372_s4 + $0xe4] sm:$0xf0]  ;;  %v1268_v37 = vadd.f32 %v8221_v19, %v242_v24  ;;  %v6656_v19 = vld [vmem:[%s10372_s4 + $0xd4] sm:$0xf0] }
  0xbc   :  { %v5261_v44 = vor.u32 %v6658_v36, %v5260_v33  ;;  %v6646_v24 = vld [vmem:[%s10372_s4 + $0x84] sm:$0xf0]  ;;  %v6641_v33 = vld [vmem:[%s10372_s4 + $0x64] sm:$0xf]  ;;  %v5198_v36 = vld [vmem:[%s10372_s4 + $0x68] sm:$0xf0] }
  0xbd   :  { %1563 = vmatpush.bf16.msrb.mxu1 %v4645_v56  ;;  %1601 = vmatpush.bf16.msra.mxu0 %v5045_v62  ;;  %v1281_v45 = vadd.f32 %v8241_v29, %v1268_v37  ;;  %v5244_v29 = vld [vmem:[%s10372_s4 + $0xc0] sm:$0xf]  ;;  %v6636_v56 = vld [vmem:[%s10372_s4 + $0x34] sm:$0xf0]  ;;  %v5201_v43 = vor.u32 %v6641_v33, %v5198_v36  ;;  %v5300_v33 = vld [vmem:[%s10372_s4 + $0x130] sm:$0xf] }
  0xbe   :  { %v5173_v62 = vor.u32 %v6636_v56, %v5172_v55  ;;  %v5324_v55 = vld [vmem:[%s10372_s4 + $0x160] sm:$0xf]  ;;  %v6674_v56 = vld [vmem:[%s10372_s4 + $0x164] sm:$0xf0]  ;;  %v6668_v36 = vld [vmem:[%s10372_s4 + $0x134] sm:$0xf0] }
  0xbf   :  { %1575 = vmatpush.bf16.msra.mxu3 %v4789_v52  ;;  %1588 = vmatpush.bf16.msra.mxu2 %v4917_v54 }
  0xc1   :  { %1564 = vmatpush.bf16.msrb.mxu1 %v4629_v12  ;;  %1602 = vmatpush.bf16.msra.mxu0 %v5029_v16  ;;  %v1319_v50 = vpop.f32.mrf.mxu0  ;;  %v1332_v51 = vpop.f32.mrf.mxu1  ;;  %v5156_v12 = vld [vmem:[%s10372_s4 + $0x10] sm:$0xf] }
  0xc2   :  { %v1347_v52 = vpop.f32.mrf.mxu2  ;;  %v5157_v15 = vor.u32 %v6632_v13, %v5156_v12  ;;  %v5316_v13 = vld [vmem:[%s10372_s4 + $0x150] sm:$0xf] }
  0xc3   :  { %1576 = vmatpush.bf16.msra.mxu3 %v4773_v8  ;;  %1589 = vmatpush.bf16.msra.mxu2 %v4901_v10  ;;  %v5165_v8 = vor.u32 %v6634_v1, %v5164_v0  ;;  %v5325_v0 = vor.u32 %v6674_v56, %v5324_v55  ;;  %v6651_v1 = vld [vmem:[%s10372_s4 + $0xb4] sm:$0xf]  ;;  %v6662_v55 = vld [vmem:[%s10372_s4 + $0x104] sm:$0xf0] }
  0xc4   :  { %1565 = vmatmul.bf16.vlgmr.msrb.gmra.mxu1 %v7332_v53  ;;  %v5252_v53 = vld [vmem:[%s10372_s4 + $0xd0] sm:$0xf] }
  0xc5   :  { %1616 = vmatpush.bf16.msra.mxu1 %v5141_v9  ;;  %1603 = vmatpush.bf16.msra.mxu0 %v5013_v28  ;;  %v5253_v49 = vor.u32 %v6656_v19, %v5252_v53  ;;  %v5190_v53 = vld [vmem:[%s10372_s4 + $0x58] sm:$0xf0] }
  0xc7   :  { %1577 = vmatpush.bf16.msra.mxu3 %v4757_v25  ;;  %1590 = vmatpush.bf16.msra.mxu2 %v4885_v26  ;;  %v6659_v25 = vld [vmem:[%s10372_s4 + $0xf4] sm:$0xf]  ;;  %v5270_v26 = vld [vmem:[%s10372_s4 + $0xf8] sm:$0xf0] }
  0xc8   :  { %1604 = vmatmul.bf16.vlgmr.msra.gmra.mxu0 %v7551_v39  ;;  %v1294_v39 = vadd.f32 %v8255_v35, %v1281_v45  ;;  %v6652_v35 = vld [vmem:[%s10372_s4 + $0xb4] sm:$0xf0]  ;;  %v5273_v37 = vor.u32 %v6659_v25, %v5270_v26  ;;  %v6655_v45 = vld [vmem:[%s10372_s4 + $0xd4] sm:$0xf] }
  0xc9   :  { %2033 = vmatpush.bf16.msrb.mxu1 %v5269_v32  ;;  %v5237_v2 = vor.u32 %v6652_v35, %v5236_v59  ;;  %v8411_v3 = vpop.f32.mrf.mxu3  ;;  %v1321_v4 = vpop.f32.mrf.mxu0  ;;  %v5213_v32 = vor.u32 %v6646_v24, %v5212_v23  ;;  %v243_v59 = vperm.slane %v8316_v6, 1  ;;  %v5308_v23 = vld [vmem:[%s10372_s4 + $0x140] sm:$0xf]  ;;  %v6670_v24 = vld [vmem:[%s10372_s4 + $0x144] sm:$0xf0] }
  0xca   :  { %1578 = vmatmul.bf16.vlgmr.msra.gmra.mxu3 %v7345_v60  ;;  %1591 = vmatmul.bf16.vlgmr.msra.gmra.mxu2 %v7540_v34  ;;  %v5180_v60 = vld [vmem:[%s10372_s4 + $0x40] sm:$0xf]  ;;  %v6654_v34 = vld [vmem:[%s10372_s4 + $0xc4] sm:$0xf0]  ;;  %v1307_v61 = vadd.f32 %v8260_v41, %v1294_v39  ;;  %v1334_v7 = vpop.f32.mrf.mxu1  ;;  %v5332_v39 = vld [vmem:[%s10372_s4 + $0x170] sm:$0xf]  ;;  %v5309_v26 = vor.u32 %v6670_v24, %v5308_v23 }
  0xcb   :  { %2020 = vmatpush.bf16.msrb.mxu3 %v5205_v27  ;;  %v5181_v54 = vor.u32 %v6638_v47, %v5180_v60  ;;  %v5245_v58 = vor.u32 %v6654_v34, %v5244_v29  ;;  %v5228_v41 = vld [vmem:[%s10372_s4 + $0xa0] sm:$0xf]  ;;  %v5149_v27 = vor.u32 %v6630_v18, %v5148_v17  ;;  %v6637_v47 = vld [vmem:[%s10372_s4 + $0x44] sm:$0xf]  ;;  %v5246_v34 = vld [vmem:[%s10372_s4 + $0xc8] sm:$0xf0] }
  0xcc   :  { %v1320_v63 = vadd.f32 %v1319_v50, %v1307_v61  ;;  %v5229_v57 = vor.u32 %v6650_v5, %v5228_v41  ;;  %v6653_v29 = vld [vmem:[%s10372_s4 + $0xc4] sm:$0xf]  ;;  %v6635_v61 = vld [vmem:[%s10372_s4 + $0x34] sm:$0xf]  ;;  %v1359_v41 = vadd.f32 %v8411_v3, %v243_v59  ;;  %v5166_v7 = vld [vmem:[%s10372_s4 + $0x28] sm:$0xf0] }
  0xcd   :  { %2034 = vmatpush.bf16.msrb.mxu1 %v5261_v44  ;;  %v8421_v10 = vpop.f32.mrf.mxu2  ;;  %v6639_v44 = vld [vmem:[%s10372_s4 + $0x54] sm:$0xf]  ;;  %v6633_v5 = vld [vmem:[%s10372_s4 + $0x24] sm:$0xf]  ;;  %v5230_v3 = vld [vmem:[%s10372_s4 + $0xa8] sm:$0xf0] }
  0xce   :  { %v1333_v11 = vadd.f32 %v1332_v51, %v1320_v63  ;;  %v5193_v60 = vor.u32 %v6639_v44, %v5190_v53  ;;  %v6676_v51 = vld [vmem:[%s10372_s4 + $0x174] sm:$0xf0]  ;;  %v5249_v63 = vor.u32 %v6653_v29, %v5246_v34  ;;  %v1372_v17 = vadd.f32 %v8421_v10, %v1359_v41  ;;  %v6631_v18 = vld [vmem:[%s10372_s4 + $0x14] sm:$0xf]  ;;  %v5222_v10 = vld [vmem:[%s10372_s4 + $0x98] sm:$0xf0] }
  0xcf   :  { %2021 = vmatpush.bf16.msrb.mxu3 %v5197_v40  ;;  %v5262_v40 = vld [vmem:[%s10372_s4 + $0xe8] sm:$0xf0]  ;;  %v6666_v44 = vld [vmem:[%s10372_s4 + $0x124] sm:$0xf0]  ;;  %v6675_v59 = vld [vmem:[%s10372_s4 + $0x174] sm:$0xf] }
  0xd0   :  { %v1346_v16 = vadd.f32 %v1345_v38, %v1333_v11  ;;  %v6657_v38 = vld [vmem:[%s10372_s4 + $0xe4] sm:$0xf]  ;;  %v5372_v24 = vld [vmem:[%s10372_s4 + $0x1c0] sm:$0xf] }
  0xd1   :  { %2035 = vmatpush.bf16.msrb.mxu1 %v5253_v49  ;;  %v1360_v21 = vpop.f32.mrf.mxu3  ;;  %v5265_v19 = vor.u32 %v6657_v38, %v5262_v40  ;;  %v5182_v49 = vld [vmem:[%s10372_s4 + $0x48] sm:$0xf0]  ;;  %v6649_v11 = vld [vmem:[%s10372_s4 + $0xa4] sm:$0xf]  ;;  %v5301_v40 = vor.u32 %v6668_v36, %v5300_v33 }
  0xd2   :  { %v1622_v30 = vmax.f32 %v1346_v16, 0.0  ;;  %v5169_v16 = vor.u32 %v6633_v5, %v5166_v7  ;;  %v5233_v21 = vor.u32 %v6649_v11, %v5230_v3  ;;  %v5214_v38 = vld [vmem:[%s10372_s4 + $0x88] sm:$0xf0]  ;;  %v6671_v7 = vld [vmem:[%s10372_s4 + $0x154] sm:$0xf] }
  0xd3   :  { %2022 = vmatpush.bf16.msrb.mxu3 %v5189_v46  ;;  %v5254_v46 = vld [vmem:[%s10372_s4 + $0xd8] sm:$0xf0]  ;;  %v6690_v3 = vld [vmem:[%s10372_s4 + $0x1e4] sm:$0xf0] }
  0xd4   :  { %5145 = vmatmul.msk.bf16.vlgmr.msra.gmra.mxu1 %vm1254_vm0, %v7452_v48  ;;  %v5220_v48 = vld [vmem:[%s10372_s4 + $0x90] sm:$0xf]  ;;  %v8471_v42 = vpack.c.bf16 %v1622_v30, %v1622_v30  ;;  %v5257_v50 = vor.u32 %v6655_v45, %v5254_v46  ;;  %v5150_v30 = vld [vmem:[%s10372_s4 + $0x8] sm:$0xf0] }
  0xd5   :  { %2036 = vmatpush.bf16.msrb.mxu1 %v5245_v58  ;;  %v5221_v9 = vor.u32 %v6648_v14, %v5220_v48  ;;  %v1373_v28 = vpop.f32.mrf.mxu2  ;;  %v5185_v58 = vor.u32 %v6637_v47, %v5182_v49  ;;  %v5284_v49 = vld [vmem:[%s10372_s4 + $0x110] sm:$0xf] }
  0xd6   :  { %v6629_v28 = vld [vmem:[%s10372_s4 + $0x4] sm:$0xf] }
  0xd7   :  { %2023 = vmatpush.bf16.msrb.mxu3 %v5181_v54  ;;  %v5333_v54 = vor.u32 %v6676_v51, %v5332_v39 }
  0xd9   :  { %2037 = vmatpush.bf16.msrb.mxu1 %v5237_v2  ;;  %2046 = vmatpush.bf16.msrb.mxu2 %v5333_v54  ;;  %v5238_v2 = vld [vmem:[%s10372_s4 + $0xb8] sm:$0xf0]  ;;  %v5276_v54 = vld [vmem:[%s10372_s4 + $0x100] sm:$0xf] }
  0xdb   :  { %2024 = vmatpush.bf16.msrb.mxu3 %v5173_v62  ;;  %v5174_v62 = vld [vmem:[%s10372_s4 + $0x38] sm:$0xf0] }
  0xdc   :  { %v5177_v4 = vor.u32 %v6635_v61, %v5174_v62  ;;  %v5326_v62 = vld [vmem:[%s10372_s4 + $0x168] sm:$0xf0] }
  0xdd   :  { %2038 = vmatpush.bf16.msrb.mxu1 %v5229_v57  ;;  %2047 = vmatpush.bf16.msrb.mxu2 %v5325_v0  ;;  %v6672_v57 = vld [vmem:[%s10372_s4 + $0x154] sm:$0xf0] }
  0xde   :  { %v5317_v14 = vor.u32 %v6672_v57, %v5316_v13  ;;  %v6692_v0 = vld [vmem:[%s10372_s4 + $0x1f4] sm:$0xf0] }
  0xdf   :  { %2025 = vmatpush.bf16.msrb.mxu3 %v5165_v8  ;;  %v5241_v8 = vor.u32 %v6651_v1, %v5238_v2 }
  0xe1   :  { %2039 = vmatpush.bf16.msrb.mxu1 %v5221_v9  ;;  %v1384_v52 = vpop.f32.mrf.mxu0  ;;  %v1397_v35 = vpop.f32.mrf.mxu1  ;;  %2048 = vmatpush.bf16.msrb.mxu2 %v5317_v14  ;;  %v6669_v14 = vld [vmem:[%s10372_s4 + $0x144] sm:$0xf] }
  0xe2   :  { %v1385_v25 = vadd.f32 %v1384_v52, %v1372_v17 }
  0xe3   :  { %2026 = vmatpush.bf16.msrb.mxu3 %v5157_v15 }
  0xe4   :  { %v1398_v53 = vadd.f32 %v1397_v35, %v1385_v25  ;;  %v6673_v35 = vld [vmem:[%s10372_s4 + $0x164] sm:$0xf]  ;;  %v6686_v25 = vld [vmem:[%s10372_s4 + $0x1c4] sm:$0xf0] }
  0xe5   :  { %2040 = vmatpush.bf16.msrb.mxu1 %v5213_v32  ;;  %v6645_v32 = vld [vmem:[%s10372_s4 + $0x84] sm:$0xf]  ;;  %2049 = vmatpush.bf16.msrb.mxu2 %v5309_v26  ;;  %v5329_v41 = vor.u32 %v6673_v35, %v5326_v62  ;;  %v5398_v35 = vld [vmem:[%s10372_s4 + $0x1f8] sm:$0xf0] }
  0xe6   :  { %v6665_v26 = vld [vmem:[%s10372_s4 + $0x124] sm:$0xf] }
  0xe7   :  { %2027 = vmatpush.bf16.msrb.mxu3 %v5149_v27  ;;  %v5161_v27 = vor.u32 %v6631_v18, %v5158_v20  ;;  %v5380_v20 = vld [vmem:[%s10372_s4 + $0x1d0] sm:$0xf] }
  0xe9   :  { %2085 = vmatpush.bf16.msra.mxu1 %v5273_v37  ;;  %v1410_v12 = vpop.f32.mrf.mxu3  ;;  %v1386_v48 = vpop.f32.mrf.mxu0  ;;  %2050 = vmatpush.bf16.msrb.mxu2 %v5301_v40  ;;  %v5286_v40 = vld [vmem:[%s10372_s4 + $0x118] sm:$0xf0] }
  0xea   :  { %2028 = vmatmul.bf16.vlgmr.msrb.gmra.mxu3 %v8471_v42  ;;  %v1399_v9 = vpop.f32.mrf.mxu1  ;;  %v1411_v46 = vadd.f32 %v1410_v12, %v1398_v53  ;;  %v5388_v12 = vld [vmem:[%s10372_s4 + $0x1e0] sm:$0xf] }
  0xeb   :  { %2072 = vmatpush.bf16.msra.mxu3 %v5209_v31  ;;  %v5225_v31 = vor.u32 %v6647_v22, %v5222_v10  ;;  %v5389_v13 = vor.u32 %v6690_v3, %v5388_v12  ;;  %v6688_v9 = vld [vmem:[%s10372_s4 + $0x1d4] sm:$0xf0]  ;;  %v6667_v22 = vld [vmem:[%s10372_s4 + $0x134] sm:$0xf]  ;;  %v5302_v10 = vld [vmem:[%s10372_s4 + $0x138] sm:$0xf0] }
  0xec   :  { %v5305_v23 = vor.u32 %v6667_v22, %v5302_v10  ;;  %v5356_v53 = vld [vmem:[%s10372_s4 + $0x1a0] sm:$0xf]  ;;  %v5382_v12 = vld [vmem:[%s10372_s4 + $0x1d8] sm:$0xf0]  ;;  %v6681_v10 = vld [vmem:[%s10372_s4 + $0x1a4] sm:$0xf] }
  0xed   :  { %2086 = vmatpush.bf16.msra.mxu1 %v5265_v19  ;;  %v1423_v15 = vpop.f32.mrf.mxu2  ;;  %v5153_v19 = vor.u32 %v6629_v28, %v5150_v30  ;;  %v5294_v28 = vld [vmem:[%s10372_s4 + $0x128] sm:$0xf0]  ;;  %v5364_v30 = vld [vmem:[%s10372_s4 + $0x1b0] sm:$0xf] }
  0xee   :  { %v1424_v29 = vadd.f32 %v1423_v15, %v1411_v46  ;;  %v5310_v15 = vld [vmem:[%s10372_s4 + $0x148] sm:$0xf0]  ;;  %v5297_v36 = vor.u32 %v6665_v26, %v5294_v28  ;;  %v5350_v26 = vld [vmem:[%s10372_s4 + $0x198] sm:$0xf0] }
  0xef   :  { %2073 = vmatpush.bf16.msra.mxu3 %v5201_v43  ;;  %v5292_v43 = vld [vmem:[%s10372_s4 + $0x120] sm:$0xf]  ;;  %v5313_v18 = vor.u32 %v6669_v14, %v5310_v15  ;;  %v6685_v14 = vld [vmem:[%s10372_s4 + $0x1c4] sm:$0xf]  ;;  %v5374_v15 = vld [vmem:[%s10372_s4 + $0x1c8] sm:$0xf0] }
  0xf0   :  { %v5293_v47 = vor.u32 %v6666_v44, %v5292_v43  ;;  %v244_v43 = vperm.slane %v8316_v6, 2 }
  0xf1   :  { %2087 = vmatpush.bf16.msra.mxu1 %v5257_v50  ;;  %v1412_v37 = vpop.f32.mrf.mxu3  ;;  %v6664_v50 = vld [vmem:[%s10372_s4 + $0x114] sm:$0xf0] }
  0xf2   :  { %2051 = vmatpush.bf16.msrb.mxu2 %v5293_v47  ;;  %v5285_v34 = vor.u32 %v6664_v50, %v5284_v49  ;;  %v6661_v49 = vld [vmem:[%s10372_s4 + $0x104] sm:$0xf]  ;;  %v5278_v50 = vld [vmem:[%s10372_s4 + $0x108] sm:$0xf0] }
  0xf3   :  { %2074 = vmatpush.bf16.msra.mxu3 %v5193_v60  ;;  %v5217_v60 = vor.u32 %v6645_v32, %v5214_v38  ;;  %v6663_v38 = vld [vmem:[%s10372_s4 + $0x114] sm:$0xf] }
  0xf5   :  { %2088 = vmatpush.bf16.msra.mxu1 %v5249_v63  ;;  %v1425_v45 = vpop.f32.mrf.mxu2  ;;  %v5396_v63 = vld [vmem:[%s10372_s4 + $0x1f0] sm:$0xf] }
  0xf6   :  { %2052 = vmatpush.bf16.msrb.mxu2 %v5285_v34  ;;  %v5397_v1 = vor.u32 %v6692_v0, %v5396_v63  ;;  %v5289_v45 = vor.u32 %v6663_v38, %v5286_v40  ;;  %v5281_v34 = vor.u32 %v6661_v49, %v5278_v50  ;;  %v6689_v0 = vld [vmem:[%s10372_s4 + $0x1e4] sm:$0xf] }
  0xf7   :  { %2075 = vmatpush.bf16.msra.mxu3 %v5185_v58  ;;  %v5277_v58 = vor.u32 %v6662_v55, %v5276_v54 }
  0xf8   :  { %2059 = vmatpush.bf16.msrb.mxu0 %v5397_v1  ;;  %v5390_v1 = vld [vmem:[%s10372_s4 + $0x1e8] sm:$0xf0] }
  0xf9   :  { %2089 = vmatpush.bf16.msra.mxu1 %v5241_v8  ;;  %v1436_v39 = vpop.f32.mrf.mxu3  ;;  %v5318_v8 = vld [vmem:[%s10372_s4 + $0x158] sm:$0xf0] }
  0xfa   :  { %v1437_v51 = vadd.f32 %v1436_v39, %v1424_v29  ;;  %2053 = vmatpush.bf16.msrb.mxu2 %v5277_v58  ;;  %v5321_v11 = vor.u32 %v6671_v7, %v5318_v8  ;;  %v5348_v39 = vld [vmem:[%s10372_s4 + $0x190] sm:$0xf]  ;;  %v6678_v58 = vld [vmem:[%s10372_s4 + $0x184] sm:$0xf0] }
  0xfb   :  { %2076 = vmatpush.bf16.msra.mxu3 %v5177_v4 }
  0xfc   :  { %v1623_v52 = vmax.f32 %v1437_v51, 0.0  ;;  %2060 = vmatpush.bf16.msrb.mxu0 %v5389_v13  ;;  %v6680_v51 = vld [vmem:[%s10372_s4 + $0x194] sm:$0xf0] }
  0xfd   :  { %2090 = vmatpush.bf16.msra.mxu1 %v5233_v21  ;;  %v5381_v21 = vor.u32 %v6688_v9, %v5380_v20  ;;  %v6683_v9 = vld [vmem:[%s10372_s4 + $0x1b4] sm:$0xf] }
  0xfe   :  { %v1627_v56 = vpack.c.bf16 %v1623_v52, %v1623_v52  ;;  %v5349_v52 = vor.u32 %v6680_v51, %v5348_v39 }
  0xff   :  { %2077 = vmatpush.bf16.msra.mxu3 %v5169_v16 }
 0x100   :  { %2041 = vmatmul.bf16.vlgmr.msrb.gmra.mxu1 %v1627_v56  ;;  %2061 = vmatpush.bf16.msrb.mxu0 %v5381_v21  ;;  %v5366_v21 = vld [vmem:[%s10372_s4 + $0x1b8] sm:$0xf0] }
 0x101   :  { %2091 = vmatpush.bf16.msra.mxu1 %v5225_v31  ;;  %v1438_v2 = vpop.f32.mrf.mxu3  ;;  %v8616_v4 = vpop.f32.mrf.mxu0  ;;  %v6684_v31 = vld [vmem:[%s10372_s4 + $0x1b4] sm:$0xf0]  ;;  %v5369_v22 = vor.u32 %v6683_v9, %v5366_v21  ;;  %v5502_v9 = vld [vmem:[%s10374_s6 + $0xd0] sm:$0xf0]  ;;  %v5508_v21 = vld [vmem:[%s10374_s6 + $0xc8] sm:$0xf] }
 0x102   :  { %v1449_v5 = vpop.f32.mrf.mxu1  ;;  %v5365_v37 = vor.u32 %v6684_v31, %v5364_v30  ;;  %v6677_v30 = vld [vmem:[%s10372_s4 + $0x184] sm:$0xf]  ;;  %v5342_v31 = vld [vmem:[%s10372_s4 + $0x188] sm:$0xf0] }
 0x103   :  { %2078 = vmatpush.bf16.msra.mxu3 %v5161_v27  ;;  %v5373_v27 = vor.u32 %v6686_v25, %v5372_v24  ;;  %v6679_v25 = vld [vmem:[%s10372_s4 + $0x194] sm:$0xf] }
 0x104   :  { %v5353_v28 = vor.u32 %v6679_v25, %v5350_v26  ;;  %v5510_v25 = vld [vmem:[%s10374_s6 + $0xd8] sm:$0xf0]  ;;  %v5484_v26 = vld [vmem:[%s10374_s6 + $0xa0] sm:$0xf] }
 0x105   :  { %2092 = vmatpush.bf16.msra.mxu1 %v5217_v60  ;;  %2062 = vmatpush.bf16.msrb.mxu0 %v5373_v27  ;;  %v1450_v60 = vadd.f32 %v1449_v5, %v244_v43  ;;  %v245_v27 = vperm.slane %v8316_v6, 3 }
 0x107   :  { %2079 = vmatpush.bf16.msra.mxu3 %v5153_v19  ;;  %v6682_v19 = vld [vmem:[%s10372_s4 + $0x1a4] sm:$0xf0] }
 0x108   :  { %v5357_v46 = vor.u32 %v6682_v19, %v5356_v53 }
 0x109   :  { %v1477_v48 = vpop.f32.mrf.mxu0  ;;  %2063 = vmatpush.bf16.msrb.mxu0 %v5365_v37 }
 0x10a   :  { %2080 = vmatmul.bf16.vlgmr.msra.gmra.mxu3 %v8471_v42  ;;  %v5334_v42 = vld [vmem:[%s10372_s4 + $0x178] sm:$0xf0]  ;;  %v1451_v17 = vpop.f32.mrf.mxu1 }
 0x10b   :  { %v5337_v61 = vor.u32 %v6675_v59, %v5334_v42  ;;  %v6691_v42 = vld [vmem:[%s10372_s4 + $0x1f4] sm:$0xf]  ;;  %v5377_v17 = vor.u32 %v6685_v14, %v5374_v15  ;;  %v5526_v14 = vld [vmem:[%s10374_s6 + $0xf8] sm:$0xf0] }
 0x10d   :  { %2098 = vmatpush.bf16.msra.mxu2 %v5337_v61  ;;  %v1462_v57 = vpop.f32.mrf.mxu3  ;;  %v1488_v16 = vpop.f32.mrf.mxu2  ;;  %2064 = vmatpush.bf16.msrb.mxu0 %v5357_v46  ;;  %v5401_v61 = vor.u32 %v6691_v42, %v5398_v35 }
 0x10e   :  { %v1463_v29 = vadd.f32 %v1462_v57, %v1450_v60 }
 0x110   :  { %2093 = vmatmul.bf16.vlgmr.msra.gmra.mxu1 %v1627_v56  ;;  %v1476_v55 = vadd.f32 %v8616_v4, %v1463_v29  ;;  %v5340_v56 = vld [vmem:[%s10372_s4 + $0x180] sm:$0xf] }
 0x111   :  { %2099 = vmatpush.bf16.msra.mxu2 %v5329_v41  ;;  %v1527_v33 = vpop.f32.mrf.mxu0  ;;  %2065 = vmatpush.bf16.msrb.mxu0 %v5349_v52  ;;  %v5341_v59 = vor.u32 %v6678_v58, %v5340_v56  ;;  %v5393_v41 = vor.u32 %v6689_v0, %v5390_v1 }
 0x112   :  { %v1489_v62 = vadd.f32 %v1488_v16, %v1476_v55 }
 0x115   :  { %2100 = vmatpush.bf16.msra.mxu2 %v5321_v11  ;;  %v1464_v32 = vpop.f32.mrf.mxu3  ;;  %v1490_v44 = vpop.f32.mrf.mxu2  ;;  %2066 = vmatpush.bf16.msrb.mxu0 %v5341_v59  ;;  %v6687_v11 = vld [vmem:[%s10372_s4 + $0x1d4] sm:$0xf] }
 0x116   :  { %v5385_v13 = vor.u32 %v6687_v11, %v5382_v12  ;;  %v5518_v11 = vld [vmem:[%s10374_s6 + $0xf0] sm:$0xf0]  ;;  %v5524_v12 = vld [vmem:[%s10374_s6 + $0xe8] sm:$0xf] }
 0x119   :  { %2101 = vmatpush.bf16.msra.mxu2 %v5313_v18  ;;  %v1529_v47 = vpop.f32.mrf.mxu0  ;;  %2111 = vmatpush.bf16.msra.mxu0 %v5401_v61 }
 0x11d   :  { %2102 = vmatpush.bf16.msra.mxu2 %v5305_v23  ;;  %2112 = vmatpush.bf16.msra.mxu0 %v5393_v41  ;;  %v5358_v23 = vld [vmem:[%s10372_s4 + $0x1a8] sm:$0xf0]  ;;  %v6723_v41 = vld [vmem:[%s10374_s6 + $0xec] sm:$0xf0] }
 0x11e   :  { %v5361_v24 = vor.u32 %v6681_v10, %v5358_v23 }
 0x121   :  { %2103 = vmatpush.bf16.msra.mxu2 %v5297_v36  ;;  %v1501_v54 = vpop.f32.mrf.mxu1  ;;  %2113 = vmatpush.bf16.msra.mxu0 %v5385_v13  ;;  %v5345_v36 = vor.u32 %v6677_v30, %v5342_v31  ;;  %v6713_v30 = vld [vmem:[%s10374_s6 + $0xa4] sm:$0xf]  ;;  %v5486_v31 = vld [vmem:[%s10374_s6 + $0xb0] sm:$0xf0] }
 0x122   :  { %v1502_v2 = vadd.f32 %v1501_v54, %v1489_v62  ;;  %v1694_v54 = vld [vmem:[%s10373_s5] sm:$0x3] }
 0x123   :  { %v1696_v55 = vperm.slane %v1694_v54, 0  ;;  %v1697_v62 = vperm.slane %v1694_v54, 1  ;;  %v6707_v54 = vld [vmem:[%s10374_s6 + $0x6c] sm:$0xf0] }
 0x125   :  { %2104 = vmatpush.bf16.msra.mxu2 %v5289_v45  ;;  %v1553_v63 = vpop.f32.mrf.mxu0  ;;  %2114 = vmatpush.bf16.msra.mxu0 %v5377_v17  ;;  %v6719_v17 = vld [vmem:[%s10374_s6 + $0xcc] sm:$0xf0] }
 0x129   :  { %2105 = vmatpush.bf16.msra.mxu2 %v5281_v34  ;;  %v1503_v4 = vpop.f32.mrf.mxu1  ;;  %2115 = vmatpush.bf16.msra.mxu0 %v5369_v22  ;;  %v6720_v22 = vld [vmem:[%s10374_s6 + $0xd4] sm:$0xf0] }
 0x12a   :  { %v5516_v4 = vld [vmem:[%s10374_s6 + $0xe0] sm:$0xf]  ;;  %v5509_v23 = vor.u32 %v6720_v22, %v5508_v21 }
 0x12d   :  { %v1514_v5 = vpop.f32.mrf.mxu3  ;;  %v1540_v8 = vpop.f32.mrf.mxu2  ;;  %2116 = vmatpush.bf16.msra.mxu0 %v5361_v24  ;;  %v6718_v24 = vld [vmem:[%s10374_s6 + $0xcc] sm:$0xf] }
 0x12e   :  { %v1515_v7 = vadd.f32 %v1514_v5, %v1502_v2  ;;  %v1555_v48 = vpop.f32.mrf.mxu0  ;;  %v1541_v32 = vadd.f32 %v1540_v8, %v245_v27  ;;  %v6721_v5 = vld [vmem:[%s10374_s6 + $0xe4] sm:$0xf]  ;;  %v5517_v8 = vor.u32 %v6723_v41, %v5516_v4  ;;  %v5513_v27 = vor.u32 %v6718_v24, %v5510_v25  ;;  %v5436_v41 = vld [vmem:[%s10374_s6 + $0x40] sm:$0xf]  ;;  %v6698_v24 = vld [vmem:[%s10374_s6 + $0x2c] sm:$0xf] }
 0x12f   :  { %v5521_v13 = vor.u32 %v6721_v5, %v5518_v11  ;;  %v6722_v48 = vld [vmem:[%s10374_s6 + $0xec] sm:$0xf]  ;;  %v6703_v5 = vld [vmem:[%s10374_s6 + $0x4c] sm:$0xf0] }
 0x130   :  { %v1528_v3 = vadd.f32 %v1527_v33, %v1515_v7  ;;  %v1554_v37 = vadd.f32 %v1553_v63, %v1541_v32  ;;  %2334 = vmatpush.bf16.msrb.mxu3 %v5517_v8  ;;  %v5529_v15 = vor.u32 %v6722_v48, %v5526_v14  ;;  %v6701_v8 = vld [vmem:[%s10374_s6 + $0x44] sm:$0xf]  ;;  %v5437_v11 = vor.u32 %v6703_v5, %v5436_v41  ;;  %v6702_v14 = vld [vmem:[%s10374_s6 + $0x4c] sm:$0xf]  ;;  %v6931_v41 = vld [vmem:[%s10376_s8 + $0x670] sm:$0xf0] }
 0x131   :  { %2117 = vmatpush.bf16.msra.mxu0 %v5353_v28  ;;  %2347 = vmatpush.bf16.msrb.mxu1 %v5521_v13  ;;  %v6715_v28 = vld [vmem:[%s10374_s6 + $0xac] sm:$0xf0]  ;;  %v6704_v13 = vld [vmem:[%s10374_s6 + $0x54] sm:$0xf0] }
 0x132   :  { %v1624_v57 = vmax.f32 %v1528_v3, 0.0  ;;  %v6724_v3 = vld [vmem:[%s10374_s6 + $0xf4] sm:$0xf0]  ;;  %v5485_v32 = vor.u32 %v6715_v28, %v5484_v26  ;;  %v5404_v28 = vld [vmem:[%s10374_s6] sm:$0xf] }
 0x133   :  { %v5700_v5 = vld [vmem:[%s10376_s8 + $0x150] sm:$0xf] }
 0x134   :  { %v1628_v16 = vpack.c.bf16 %v1624_v57, %v1624_v57  ;;  %v5525_v57 = vor.u32 %v6724_v3, %v5524_v12  ;;  %v5438_v12 = vld [vmem:[%s10374_s6 + $0x50] sm:$0xf0]  ;;  %v5444_v3 = vld [vmem:[%s10374_s6 + $0x48] sm:$0xf] }
 0x135   :  { %v1516_v18 = vpop.f32.mrf.mxu3  ;;  %v1542_v20 = vpop.f32.mrf.mxu2  ;;  %2118 = vmatpush.bf16.msra.mxu0 %v5345_v36  ;;  %v5492_v36 = vld [vmem:[%s10374_s6 + $0xa8] sm:$0xf]  ;;  %v5445_v48 = vor.u32 %v6704_v13, %v5444_v3  ;;  %v6882_v3 = vld [vmem:[%s10376_s8 + $0x4e8] sm:$0xf0] }
 0x136   :  { %2054 = vmatmul.bf16.vlgmr.msrb.gmra.mxu2 %v1628_v16  ;;  %v6717_v18 = vld [vmem:[%s10374_s6 + $0xc4] sm:$0xf] }
 0x137   :  { %2360 = vmatpush.bf16.msrb.mxu2 %v5525_v57  ;;  %v5505_v10 = vor.u32 %v6717_v18, %v5502_v9  ;;  %v5441_v57 = vor.u32 %v6701_v8, %v5438_v12  ;;  %v6699_v18 = vld [vmem:[%s10374_s6 + $0x2c] sm:$0xf0]  ;;  %v5422_v9 = vld [vmem:[%s10374_s6 + $0x30] sm:$0xf0]  ;;  %v6770_v8 = vld [vmem:[%s10376_s8 + $0x168] sm:$0xf0] }
 0x138   :  { %v6148_v12 = vld [vmem:[%s10376_s8 + $0x4d0] sm:$0xf] }
 0x139   :  { %2348 = vmatpush.bf16.msrb.mxu1 %v5505_v10  ;;  %v5428_v10 = vld [vmem:[%s10374_s6 + $0x28] sm:$0xf] }
 0x13b   :  { %2361 = vmatpush.bf16.msrb.mxu2 %v5509_v23  ;;  %v6700_v23 = vld [vmem:[%s10374_s6 + $0x34] sm:$0xf0] }
 0x13c   :  { %v5429_v26 = vor.u32 %v6700_v23, %v5428_v10 }
 0x141   :  { %v1566_v33 = vpop.f32.mrf.mxu1 }
 0x142   :  { %v1567_v40 = vadd.f32 %v1566_v33, %v1554_v37  ;;  %v5489_v33 = vor.u32 %v6713_v30, %v5486_v31  ;;  %v6716_v37 = vld [vmem:[%s10374_s6 + $0xb4] sm:$0xf0]  ;;  %v6695_v30 = vld [vmem:[%s10374_s6 + $0xc] sm:$0xf0] }
 0x144   :  { %2349 = vmatpush.bf16.msrb.mxu1 %v5489_v33  ;;  %v5406_v33 = vld [vmem:[%s10374_s6 + $0x10] sm:$0xf0] }
 0x145   :  { %v1605_v38 = vpop.f32.mrf.mxu0 }
 0x146   :  { %2106 = vmatmul.bf16.vlgmr.msra.gmra.mxu2 %v1628_v16  ;;  %v5500_v16 = vld [vmem:[%s10374_s6 + $0xc0] sm:$0xf] }
 0x147   :  { %v5501_v20 = vor.u32 %v6719_v17, %v5500_v16  ;;  %v5420_v16 = vld [vmem:[%s10374_s6 + $0x20] sm:$0xf] }
 0x148   :  { %v5421_v21 = vor.u32 %v6699_v18, %v5420_v16  ;;  %v5672_v16 = vld [vmem:[%s10376_s8 + $0x118] sm:$0xf] }
 0x149   :  { %v1568_v6 = vpop.f32.mrf.mxu1  ;;  %2335 = vmatpush.bf16.msrb.mxu3 %v5501_v20  ;;  %v6697_v20 = vld [vmem:[%s10374_s6 + $0x24] sm:$0xf]  ;;  %v6120_v18 = vld [vmem:[%s10376_s8 + $0x498] sm:$0xf] }
 0x14a   :  { %v5493_v6 = vor.u32 %v6716_v37, %v5492_v36  ;;  %v5425_v22 = vor.u32 %v6697_v20, %v5422_v9  ;;  %v5412_v36 = vld [vmem:[%s10374_s6 + $0x8] sm:$0xf]  ;;  %v5405_v37 = vor.u32 %v6695_v30, %v5404_v28  ;;  %v6316_v20 = vld [vmem:[%s10376_s8 + $0x620] sm:$0xf]  ;;  %v6924_v9 = vld [vmem:[%s10376_s8 + $0x638] sm:$0xf0] }
 0x14b   :  { %v6092_v28 = vld [vmem:[%s10376_s8 + $0x460] sm:$0xf]  ;;  %v6317_v30 = vor.u32 %v6924_v9, %v6316_v20  ;;  %v6942_v20 = vld [vmem:[%s10376_s8 + $0x6cc] sm:$0xf] }
 0x14c   :  { %2362 = vmatpush.bf16.msrb.mxu2 %v5493_v6  ;;  %v5414_v6 = vld [vmem:[%s10374_s6 + $0x18] sm:$0xf0] }
 0x14d   :  { %v1579_v43 = vpop.f32.mrf.mxu3  ;;  %v1592_v53 = vpop.f32.mrf.mxu2  ;;  %2336 = vmatpush.bf16.msrb.mxu3 %v5485_v32  ;;  %v6693_v32 = vld [vmem:[%s10374_s6 + $0x4] sm:$0xf] }
 0x14e   :  { %v1580_v44 = vadd.f32 %v1579_v43, %v1567_v40  ;;  %v1607_v45 = vpop.f32.mrf.mxu0  ;;  %v5494_v43 = vld [vmem:[%s10374_s6 + $0xb8] sm:$0xf0] }
 0x14f   :  { %v6709_v45 = vld [vmem:[%s10374_s6 + $0x84] sm:$0xf] }
 0x150   :  { %v1593_v19 = vadd.f32 %v1592_v53, %v1580_v44  ;;  %v5468_v53 = vld [vmem:[%s10374_s6 + $0x80] sm:$0xf] }
 0x151   :  { %v1618_v60 = vpop.f32.mrf.mxu1 }
 0x152   :  { %v1606_v46 = vadd.f32 %v1605_v38, %v1593_v19  ;;  %v6714_v38 = vld [vmem:[%s10374_s6 + $0xac] sm:$0xf]  ;;  %v6711_v19 = vld [vmem:[%s10374_s6 + $0x8c] sm:$0xf0] }
 0x153   :  { %v5497_v44 = vor.u32 %v6714_v38, %v5494_v43  ;;  %v6696_v38 = vld [vmem:[%s10374_s6 + $0x14] sm:$0xf0] }
 0x154   :  { %v1619_v47 = vadd.f32 %v1618_v60, %v1606_v46  ;;  %v5469_v46 = vor.u32 %v6711_v19, %v5468_v53  ;;  %v5470_v60 = vld [vmem:[%s10374_s6 + $0x90] sm:$0xf0]  ;;  %v5413_v53 = vor.u32 %v6696_v38, %v5412_v36  ;;  %v6917_v36 = vld [vmem:[%s10376_s8 + $0x600] sm:$0xf0] }
 0x155   :  { %v1581_v49 = vpop.f32.mrf.mxu3  ;;  %v1594_v50 = vpop.f32.mrf.mxu2 }
 0x156   :  { %v1625_v29 = vmax.f32 %v1619_v47, 0.0  ;;  %v5476_v47 = vld [vmem:[%s10374_s6 + $0x88] sm:$0xf]  ;;  %v6712_v49 = vld [vmem:[%s10374_s6 + $0x94] sm:$0xf0]  ;;  %v5473_v50 = vor.u32 %v6709_v45, %v5470_v60  ;;  %2337 = vmatpush.bf16.msrb.mxu3 %v5469_v46 }
 0x157   :  { %v5952_v60 = vld [vmem:[%s10376_s8 + $0x348] sm:$0xf] }
 0x158   :  { %v1629_v34 = vpack.c.bf16 %v1625_v29, %v1625_v29  ;;  %v5477_v29 = vor.u32 %v6712_v49, %v5476_v47  ;;  %2350 = vmatpush.bf16.msrb.mxu1 %v5473_v50  ;;  %v6945_v49 = vld [vmem:[%s10376_s8 + $0x6e0] sm:$0xf0]  ;;  %v5924_v50 = vld [vmem:[%s10376_s8 + $0x310] sm:$0xf] }
 0x159   :  { %v1620_v39 = vpop.f32.mrf.mxu1 }
 0x15a   :  { %2067 = vmatmul.bf16.vlgmr.msrb.gmra.mxu0 %v1629_v34  ;;  %v5478_v39 = vld [vmem:[%s10374_s6 + $0x98] sm:$0xf0]  ;;  %2363 = vmatpush.bf16.msrb.mxu2 %v5477_v29  ;;  %v6826_v29 = vld [vmem:[%s10376_s8 + $0x328] sm:$0xf0] }
 0x15b   :  { %2373 = vmatpush.bf16.msrb.mxu0 %v5529_v15  ;;  %v5446_v15 = vld [vmem:[%s10374_s6 + $0x58] sm:$0xf0] }
 0x15c   :  { %v5449_v17 = vor.u32 %v6702_v14, %v5446_v15  ;;  %v6812_v14 = vld [vmem:[%s10376_s8 + $0x2b8] sm:$0xf0] }
 0x15f   :  { %2374 = vmatpush.bf16.msrb.mxu0 %v5513_v27  ;;  %v5430_v27 = vld [vmem:[%s10374_s6 + $0x38] sm:$0xf0] }
 0x160   :  { %v5433_v31 = vor.u32 %v6698_v24, %v5430_v27  ;;  %v5644_v24 = vld [vmem:[%s10376_s8 + $0xe0] sm:$0xf]  ;;  %v6756_v27 = vld [vmem:[%s10376_s8 + $0xf8] sm:$0xf0] }
 0x161   :  { %v5645_v38 = vor.u32 %v6756_v27, %v5644_v24  ;;  %v6728_v24 = vld [vmem:[%s10376_s8 + $0x18] sm:$0xf0] }
 0x163   :  { %2375 = vmatpush.bf16.msrb.mxu0 %v5497_v44  ;;  %v5409_v44 = vor.u32 %v6693_v32, %v5406_v33  ;;  %v6805_v32 = vld [vmem:[%s10376_s8 + $0x280] sm:$0xf0]  ;;  %v6288_v33 = vld [vmem:[%s10376_s8 + $0x5e8] sm:$0xf] }
 0x16a   :  { %2119 = vmatmul.bf16.vlgmr.msra.gmra.mxu0 %v1629_v34  ;;  %v6710_v34 = vld [vmem:[%s10374_s6 + $0x8c] sm:$0xf] }
 0x16d   :  { %v2029_v51 = vpop.f32.mrf.mxu3 }
 0x16e   :  { %v2030_v56 = vadd.f32 %v2029_v51, %v1696_v55  ;;  %v5481_v51 = vor.u32 %v6710_v34, %v5478_v39  ;;  %v6705_v55 = vld [vmem:[%s10374_s6 + $0x64] sm:$0xf]  ;;  %v6372_v39 = vld [vmem:[%s10376_s8 + $0x690] sm:$0xf] }
 0x170   :  { %2376 = vmatpush.bf16.msrb.mxu0 %v5481_v51  ;;  %v6938_v51 = vld [vmem:[%s10376_s8 + $0x6a8] sm:$0xf0] }
 0x175   :  { %v2031_v52 = vpop.f32.mrf.mxu3 }
 0x176   :  { %v5452_v52 = vld [vmem:[%s10374_s6 + $0x60] sm:$0xf] }
 0x17d   :  { %v2042_v58 = vpop.f32.mrf.mxu1 }
 0x17e   :  { %v8750_v42 = vadd.f32 %v2042_v58, %v2030_v56  ;;  %v5453_v58 = vor.u32 %v6707_v54, %v5452_v52  ;;  %v5728_v52 = vld [vmem:[%s10376_s8 + $0x188] sm:$0xf] }
 0x180   :  { %2338 = vmatpush.bf16.msrb.mxu3 %v5453_v58  ;;  %v6777_v58 = vld [vmem:[%s10376_s8 + $0x1a0] sm:$0xf0] }
 0x184   :  { %2339 = vmatpush.bf16.msrb.mxu3 %v5437_v11  ;;  %v5701_v11 = vor.u32 %v6770_v8, %v5700_v5  ;;  %v6735_v8 = vld [vmem:[%s10376_s8 + $0x50] sm:$0xf0] }
 0x185   :  { %v2044_v35 = vpop.f32.mrf.mxu1 }
 0x186   :  { %v5460_v35 = vld [vmem:[%s10374_s6 + $0x68] sm:$0xf] }
 0x188   :  { %2340 = vmatpush.bf16.msrb.mxu3 %v5421_v21  ;;  %v6875_v21 = vld [vmem:[%s10376_s8 + $0x4b0] sm:$0xf0] }
 0x189   :  { %v6121_v23 = vor.u32 %v6875_v21, %v6120_v18  ;;  %v5954_v18 = vld [vmem:[%s10376_s8 + $0x364] sm:$0xf0] }
 0x18c   :  { %2341 = vmatpush.bf16.msrb.mxu3 %v5405_v37 }
 0x18d   :  { %v2081_v59 = vpop.f32.mrf.mxu3  ;;  %v2094_v0 = vpop.f32.mrf.mxu1 }
 0x18e   :  { %v2082_v63 = vadd.f32 %v2081_v59, %v1697_v62  ;;  %v5454_v59 = vld [vmem:[%s10374_s6 + $0x70] sm:$0xf0] }
 0x18f   :  { %v5457_v62 = vor.u32 %v6705_v55, %v5454_v59  ;;  %v5925_v55 = vor.u32 %v6826_v29, %v5924_v50  ;;  %v6176_v59 = vld [vmem:[%s10376_s8 + $0x508] sm:$0xf]  ;;  %v2124_v50 = vld [vmem:[%s10369_s1] sm:$0xf] }
 0x190   :  { %v8752_v1 = vadd.f32 %v2094_v0, %v2082_v63  ;;  %v6706_v0 = vld [vmem:[%s10374_s6 + $0x6c] sm:$0xf] }
 0x191   :  { %2351 = vmatpush.bf16.msrb.mxu1 %v5457_v62  ;;  %v5729_v62 = vor.u32 %v6777_v58, %v5728_v52  ;;  %v6854_v58 = vld [vmem:[%s10376_s8 + $0x408] sm:$0xf0] }
 0x193   :  { %3818 = vmatpush.bf16.msra.mxu3 %v5729_v62  ;;  %v2125_v62 = vunpack.c.l.bf16 %v2124_v50  ;;  %v5898_v50 = vld [vmem:[%s10376_s8 + $0x2f4] sm:$0xf0] }
 0x195   :  { %v2083_v61 = vpop.f32.mrf.mxu3  ;;  %v2096_v2 = vpop.f32.mrf.mxu1  ;;  %2352 = vmatpush.bf16.msrb.mxu1 %v5441_v57  ;;  %v6149_v57 = vor.u32 %v6882_v3, %v6148_v12  ;;  %v6847_v12 = vld [vmem:[%s10376_s8 + $0x3d0] sm:$0xf0] }
 0x196   :  { %v6708_v61 = vld [vmem:[%s10374_s6 + $0x74] sm:$0xf0]  ;;  %v5462_v2 = vld [vmem:[%s10374_s6 + $0x78] sm:$0xf0] }
 0x197   :  { %v5461_v63 = vor.u32 %v6708_v61, %v5460_v35  ;;  %v5465_v4 = vor.u32 %v6706_v0, %v5462_v2  ;;  %v6889_v35 = vld [vmem:[%s10376_s8 + $0x520] sm:$0xf0]  ;;  %v6373_v61 = vor.u32 %v6938_v51, %v6372_v39  ;;  %v5896_v0 = vld [vmem:[%s10376_s8 + $0x2d8] sm:$0xf]  ;;  %v6819_v2 = vld [vmem:[%s10376_s8 + $0x2f0] sm:$0xf0]  ;;  %3819 = vmatpush.bf16.msra.mxu3 %v5701_v11 }
 0x198   :  { %v5897_v13 = vor.u32 %v6819_v2, %v5896_v0  ;;  %v5588_v39 = vld [vmem:[%s10376_s8 + $0x70] sm:$0xf]  ;;  %v6903_v0 = vld [vmem:[%s10376_s8 + $0x590] sm:$0xf0]  ;;  %v6008_v11 = vld [vmem:[%s10376_s8 + $0x3b8] sm:$0xf] }
 0x199   :  { %2364 = vmatpush.bf16.msrb.mxu2 %v5461_v63  ;;  %2377 = vmatpush.bf16.msrb.mxu0 %v5465_v4  ;;  %v6177_v63 = vor.u32 %v6889_v35, %v6176_v59  ;;  %v6344_v4 = vld [vmem:[%s10376_s8 + $0x658] sm:$0xf]  ;;  %v6009_v21 = vor.u32 %v6847_v12, %v6008_v11  ;;  %v6094_v11 = vld [vmem:[%s10376_s8 + $0x47c] sm:$0xf0] }
 0x19a   :  { %2353 = vmatpush.bf16.msrb.mxu1 %v5425_v22  ;;  %v6345_v15 = vor.u32 %v6931_v41, %v6344_v4  ;;  %v5784_v35 = vld [vmem:[%s10376_s8 + $0x1f8] sm:$0xf] }
 0x19b   :  { %v5560_v41 = vld [vmem:[%s10376_s8 + $0x38] sm:$0xf] }
 0x19c   :  { %v5561_v9 = vor.u32 %v6735_v8, %v5560_v41  ;;  %v6753_v41 = vld [vmem:[%s10376_s8 + $0xe4] sm:$0xf] }
 0x19d   :  { %2365 = vmatpush.bf16.msrb.mxu2 %v5445_v48  ;;  %2378 = vmatpush.bf16.msrb.mxu0 %v5449_v17  ;;  %v5868_v48 = vld [vmem:[%s10376_s8 + $0x2a0] sm:$0xf]  ;;  %v6763_v17 = vld [vmem:[%s10376_s8 + $0x130] sm:$0xf0]  ;;  %v6865_v8 = vld [vmem:[%s10376_s8 + $0x464] sm:$0xf] }
 0x19e   :  { %2354 = vmatpush.bf16.msrb.mxu1 %v5409_v44  ;;  %v5673_v10 = vor.u32 %v6763_v17, %v5672_v16  ;;  %v6749_v44 = vld [vmem:[%s10376_s8 + $0xc0] sm:$0xf0]  ;;  %v6896_v16 = vld [vmem:[%s10376_s8 + $0x558] sm:$0xf0]  ;;  %v6830_v17 = vld [vmem:[%s10376_s8 + $0x34c] sm:$0xf] }
 0x1a0   :  { %3820 = vmatpush.bf16.msra.mxu3 %v5673_v10  ;;  %v6402_v10 = vld [vmem:[%s10376_s8 + $0x6e4] sm:$0xf0] }
 0x1a1   :  { %2366 = vmatpush.bf16.msrb.mxu2 %v5429_v26  ;;  %2379 = vmatpush.bf16.msrb.mxu0 %v5433_v31  ;;  %v5869_v26 = vor.u32 %v6812_v14, %v5868_v48  ;;  %v5840_v31 = vld [vmem:[%s10376_s8 + $0x268] sm:$0xf]  ;;  %v6784_v14 = vld [vmem:[%s10376_s8 + $0x1d8] sm:$0xf0] }
 0x1a4   :  { %3821 = vmatpush.bf16.msra.mxu3 %v5645_v38  ;;  %v6935_v38 = vld [vmem:[%s10376_s8 + $0x694] sm:$0xf] }
 0x1a5   :  { %2367 = vmatpush.bf16.msrb.mxu2 %v5413_v53  ;;  %v6064_v53 = vld [vmem:[%s10376_s8 + $0x428] sm:$0xf] }
 0x1a9   :  { %3844 = vmatpush.bf16.msra.mxu2 %v6177_v63  ;;  %v6232_v63 = vld [vmem:[%s10376_s8 + $0x578] sm:$0xf] }
 0x1ad   :  { %3845 = vmatpush.bf16.msra.mxu2 %v6149_v57  ;;  %v5756_v57 = vld [vmem:[%s10376_s8 + $0x1c0] sm:$0xf] }
 0x1b1   :  { %3846 = vmatpush.bf16.msra.mxu2 %v6121_v23  ;;  %v5532_v23 = vld [vmem:[%s10376_s8] sm:$0xf] }
 0x1b9   :  { %v8763_v7 = vpop.f32.mrf.mxu2 }
 0x1ba   :  { %v2056_v43 = vadd.f32 %v8763_v7, %v8750_v42  ;;  %v6833_v42 = vld [vmem:[%s10376_s8 + $0x360] sm:$0xf0]  ;;  %v6400_v7 = vld [vmem:[%s10376_s8 + $0x6c8] sm:$0xf] }
 0x1bb   :  { %v5953_v47 = vor.u32 %v6833_v42, %v5952_v60  ;;  %v6401_v34 = vor.u32 %v6945_v49, %v6400_v7  ;;  %v6289_v60 = vor.u32 %v6917_v36, %v6288_v33  ;;  %v5812_v42 = vld [vmem:[%s10376_s8 + $0x230] sm:$0xf]  ;;  %v6798_v7 = vld [vmem:[%s10376_s8 + $0x248] sm:$0xf0]  ;;  %v6405_v33 = vor.u32 %v6942_v20, %v6402_v10  ;;  %v6823_v36 = vld [vmem:[%s10376_s8 + $0x314] sm:$0xf] }
 0x1bc   :  { %v6910_v49 = vld [vmem:[%s10376_s8 + $0x5c8] sm:$0xf0]  ;;  %v5813_v52 = vor.u32 %v6798_v7, %v5812_v42  ;;  %v6150_v42 = vld [vmem:[%s10376_s8 + $0x4ec] sm:$0xf0]  ;;  %v6795_v20 = vld [vmem:[%s10376_s8 + $0x234] sm:$0xf] }
 0x1bd   :  { %3831 = vmatpush.bf16.msra.mxu1 %v5953_v47  ;;  %v6260_v47 = vld [vmem:[%s10376_s8 + $0x5b0] sm:$0xf] }
 0x1be   :  { %v6261_v59 = vor.u32 %v6910_v49, %v6260_v47  ;;  %v6816_v49 = vld [vmem:[%s10376_s8 + $0x2dc] sm:$0xf] }
 0x1c1   :  { %v2057_v40 = vpop.f32.mrf.mxu2  ;;  %3832 = vmatpush.bf16.msra.mxu1 %v5925_v55  ;;  %v6036_v55 = vld [vmem:[%s10376_s8 + $0x3f0] sm:$0xf] }
 0x1c2   :  { %v6694_v40 = vld [vmem:[%s10374_s6 + $0xc] sm:$0xf]  ;;  %v6037_v4 = vor.u32 %v6854_v58, %v6036_v55  ;;  %v6872_v55 = vld [vmem:[%s10376_s8 + $0x49c] sm:$0xf]  ;;  %v6122_v58 = vld [vmem:[%s10376_s8 + $0x4b4] sm:$0xf0] }
 0x1c3   :  { %v5417_v45 = vor.u32 %v6694_v40, %v5414_v6  ;;  %v5616_v6 = vld [vmem:[%s10376_s8 + $0xa8] sm:$0xf] }
 0x1c4   :  { %v5617_v29 = vor.u32 %v6749_v44, %v5616_v6  ;;  %v5533_v6 = vor.u32 %v6728_v24, %v5532_v23  ;;  %v6746_v24 = vld [vmem:[%s10376_s8 + $0xac] sm:$0xf] }
 0x1c5   :  { %2380 = vmatpush.bf16.msrb.mxu0 %v5417_v45  ;;  %3833 = vmatpush.bf16.msra.mxu1 %v5897_v13  ;;  %v6233_v13 = vor.u32 %v6903_v0, %v6232_v63  ;;  %v6921_v63 = vld [vmem:[%s10376_s8 + $0x624] sm:$0xf]  ;;  %v6318_v0 = vld [vmem:[%s10376_s8 + $0x63c] sm:$0xf0] }
 0x1c6   :  { %3822 = vmatpush.bf16.msra.mxu3 %v5617_v29  ;;  %v6928_v29 = vld [vmem:[%s10376_s8 + $0x65c] sm:$0xf] }
 0x1c9   :  { %v8861_v56 = vpop.f32.mrf.mxu2  ;;  %3857 = vmatpush.bf16.msra.mxu0 %v6401_v34  ;;  %3834 = vmatpush.bf16.msra.mxu1 %v5869_v26  ;;  %v6774_v26 = vld [vmem:[%s10376_s8 + $0x18c] sm:$0xf] }
 0x1ca   :  { %v2108_v22 = vadd.f32 %v8861_v56, %v8752_v1  ;;  %v6868_v1 = vld [vmem:[%s10376_s8 + $0x478] sm:$0xf0] }
 0x1cb   :  { %v6093_v40 = vor.u32 %v6868_v1, %v6092_v28  ;;  %v5757_v28 = vor.u32 %v6784_v14, %v5756_v57  ;;  %v5842_v57 = vld [vmem:[%s10376_s8 + $0x284] sm:$0xf0] }
 0x1cc   :  { %v6290_v14 = vld [vmem:[%s10376_s8 + $0x604] sm:$0xf0] }
 0x1cd   :  { %3858 = vmatpush.bf16.msra.mxu0 %v6373_v61  ;;  %3847 = vmatpush.bf16.msra.mxu2 %v6093_v40  ;;  %v6791_v61 = vld [vmem:[%s10376_s8 + $0x210] sm:$0xf0]  ;;  %v6374_v40 = vld [vmem:[%s10376_s8 + $0x6ac] sm:$0xf0] }
 0x1ce   :  { %v5785_v5 = vor.u32 %v6791_v61, %v5784_v35  ;;  %v6377_v47 = vor.u32 %v6935_v38, %v6374_v40  ;;  %v6809_v61 = vld [vmem:[%s10376_s8 + $0x2a4] sm:$0xf]  ;;  %v6851_v38 = vld [vmem:[%s10376_s8 + $0x3f4] sm:$0xf] }
 0x1d1   :  { %v2109_v25 = vpop.f32.mrf.mxu2  ;;  %3859 = vmatpush.bf16.msra.mxu0 %v6345_v15  ;;  %v6204_v15 = vld [vmem:[%s10376_s8 + $0x540] sm:$0xf] }
 0x1d2   :  { %v6205_v1 = vor.u32 %v6896_v16, %v6204_v15  ;;  %v6097_v16 = vor.u32 %v6865_v8, %v6094_v11  ;;  %v6946_v8 = vld [vmem:[%s10376_s8 + $0x6e8] sm:$0xf0] }
 0x1d5   :  { %3860 = vmatpush.bf16.msra.mxu0 %v6317_v30  ;;  %v6886_v30 = vld [vmem:[%s10376_s8 + $0x50c] sm:$0xf] }
 0x1d7   :  { %v2068_v19 = vpop.f32.mrf.mxu0 }
 0x1d8   :  { %v8952_v46 = vadd.f32 %v2068_v19, %v2056_v43  ;;  %v5841_v43 = vor.u32 %v6805_v32, %v5840_v31  ;;  %v6861_v19 = vld [vmem:[%s10376_s8 + $0x440] sm:$0xf0]  ;;  %v6178_v31 = vld [vmem:[%s10376_s8 + $0x524] sm:$0xf0]  ;;  %v5957_v32 = vor.u32 %v6830_v17, %v5954_v18 }
 0x1d9   :  { %v6065_v34 = vor.u32 %v6861_v19, %v6064_v53  ;;  %3861 = vmatpush.bf16.msra.mxu0 %v6289_v60  ;;  %v6181_v53 = vor.u32 %v6886_v30, %v6178_v31  ;;  %v6767_v19 = vld [vmem:[%s10376_s8 + $0x154] sm:$0xf]  ;;  %v6900_v31 = vld [vmem:[%s10376_s8 + $0x57c] sm:$0xf] }
 0x1da   :  { %4324 = vst [vmem:[#allocation4] sm:$0xff] %v8952_v46  ;;  %3835 = vmatpush.bf16.msra.mxu1 %v5841_v43  ;;  %v6879_v60 = vld [vmem:[%s10376_s8 + $0x4d4] sm:$0xf] }
 0x1db   :  { %3848 = vmatpush.bf16.msra.mxu2 %v6065_v34  ;;  %v6346_v34 = vld [vmem:[%s10376_s8 + $0x674] sm:$0xf0] }
 0x1dc   :  { %v6349_v35 = vor.u32 %v6928_v29, %v6346_v34  ;;  %v6010_v29 = vld [vmem:[%s10376_s8 + $0x3d4] sm:$0xf0] }
 0x1dd   :  { %3862 = vmatpush.bf16.msra.mxu0 %v6261_v59  ;;  %v5901_v59 = vor.u32 %v6816_v49, %v5898_v50  ;;  %v6844_v49 = vld [vmem:[%s10376_s8 + $0x3bc] sm:$0xf] }
 0x1de   :  { %3836 = vmatpush.bf16.msra.mxu1 %v5813_v52  ;;  %v6760_v52 = vld [vmem:[%s10376_s8 + $0x11c] sm:$0xf]  ;;  %v6013_v34 = vor.u32 %v6844_v49, %v6010_v29  ;;  %v6925_v29 = vld [vmem:[%s10376_s8 + $0x640] sm:$0xf0] }
 0x1df   :  { %v2070_v54 = vpop.f32.mrf.mxu0  ;;  %3849 = vmatpush.bf16.msra.mxu2 %v6037_v4  ;;  %v6125_v4 = vor.u32 %v6872_v55, %v6122_v58  ;;  %v5982_v55 = vld [vmem:[%s10376_s8 + $0x39c] sm:$0xf0] }
 0x1e0   :  { %v6742_v54 = vld [vmem:[%s10376_s8 + $0x88] sm:$0xf0] }
 0x1e1   :  { %v5589_v2 = vor.u32 %v6742_v54, %v5588_v39  ;;  %3863 = vmatpush.bf16.msra.mxu0 %v6233_v13  ;;  %v5674_v54 = vld [vmem:[%s10376_s8 + $0x134] sm:$0xf0]  ;;  %v6802_v13 = vld [vmem:[%s10376_s8 + $0x26c] sm:$0xf] }
 0x1e2   :  { %3837 = vmatpush.bf16.msra.mxu1 %v5785_v5  ;;  %v5646_v5 = vld [vmem:[%s10376_s8 + $0xfc] sm:$0xf0]  ;;  %v5845_v17 = vor.u32 %v6802_v13, %v5842_v57 }
 0x1e3   :  { %3823 = vmatpush.bf16.msra.mxu3 %v5589_v2  ;;  %3850 = vmatpush.bf16.msra.mxu2 %v6009_v21  ;;  %v5677_v2 = vor.u32 %v6760_v52, %v5674_v54  ;;  %v5649_v15 = vor.u32 %v6753_v41, %v5646_v5  ;;  %v6907_v21 = vld [vmem:[%s10376_s8 + $0x5b4] sm:$0xf]  ;;  %v6837_v54 = vld [vmem:[%s10376_s8 + $0x384] sm:$0xf]  ;;  %v6408_v5 = vld [vmem:[%s10376_s8 + $0x6d0] sm:$0xf] }
 0x1e4   :  { %v5985_v58 = vor.u32 %v6837_v54, %v5982_v55  ;;  %v6128_v55 = vld [vmem:[%s10376_s8 + $0x4a0] sm:$0xf] }
 0x1e5   :  { %3864 = vmatpush.bf16.msra.mxu0 %v6205_v1  ;;  %v6788_v1 = vld [vmem:[%s10376_s8 + $0x1fc] sm:$0xf] }
 0x1e6   :  { %3838 = vmatpush.bf16.msra.mxu1 %v5757_v28 }
 0x1e7   :  { %v2120_v25 = vpop.f32.mrf.mxu0  ;;  %3824 = vmatpush.bf16.msra.mxu3 %v5561_v9  ;;  %v5814_v9 = vld [vmem:[%s10376_s8 + $0x24c] sm:$0xf0] }
 0x1e8   :  { %v2121_v56 = vadd.f32 %v2120_v25, %v2108_v22  ;;  %v5980_v25 = vld [vmem:[%s10376_s8 + $0x380] sm:$0xf]  ;;  %v5817_v10 = vor.u32 %v6795_v20, %v5814_v9  ;;  %v6380_v20 = vld [vmem:[%s10376_s8 + $0x698] sm:$0xf]  ;;  %v6939_v9 = vld [vmem:[%s10376_s8 + $0x6b0] sm:$0xf0] }
 0x1ea   :  { %v2126_v37 = vmul.f32 0.5, %v2121_v56  ;;  %4325 = vst [vmem:[#allocation4 + $0x8] sm:$0xff] %v2121_v56  ;;  %v5730_v56 = vld [vmem:[%s10376_s8 + $0x1a4] sm:$0xf0] }
 0x1eb   :  { %v5733_v44 = vor.u32 %v6774_v26, %v5730_v56  ;;  %3825 = vmatpush.bf16.msra.mxu3 %v5533_v6  ;;  %v5786_v56 = vld [vmem:[%s10376_s8 + $0x214] sm:$0xf0]  ;;  %v6038_v6 = vld [vmem:[%s10376_s8 + $0x40c] sm:$0xf0] }
 0x1ec   :  { %v2127_v45 = vmul.f32 1.442695, %v2126_v37  ;;  %v5926_v37 = vld [vmem:[%s10376_s8 + $0x32c] sm:$0xf0]  ;;  %v5789_v30 = vor.u32 %v6788_v1, %v5786_v56  ;;  %v6381_v56 = vor.u32 %v6939_v9, %v6380_v20  ;;  %v6750_v20 = vld [vmem:[%s10376_s8 + $0xc8] sm:$0xf0] }
 0x1ed   :  { %v5929_v7 = vor.u32 %v6823_v36, %v5926_v37  ;;  %v6739_v36 = vld [vmem:[%s10376_s8 + $0x74] sm:$0xf]  ;;  %v5590_v37 = vld [vmem:[%s10376_s8 + $0x8c] sm:$0xf0] }
 0x1ee   :  { %6951 = vpow2.f32 %v2127_v45  ;;  %v5702_v45 = vld [vmem:[%s10376_s8 + $0x16c] sm:$0xf0]  ;;  %v5593_v40 = vor.u32 %v6739_v36, %v5590_v37  ;;  %v6352_v36 = vld [vmem:[%s10376_s8 + $0x660] sm:$0xf]  ;;  %v6932_v37 = vld [vmem:[%s10376_s8 + $0x678] sm:$0xf0] }
 0x1ef   :  { %v2122_v51 = vpop.f32.mrf.mxu0  ;;  %v5705_v39 = vor.u32 %v6767_v19, %v5702_v45  ;;  %v6893_v19 = vld [vmem:[%s10376_s8 + $0x544] sm:$0xf] }
 0x1f0   :  { %v6153_v51 = vor.u32 %v6879_v60, %v6150_v42  ;;  %v6206_v60 = vld [vmem:[%s10376_s8 + $0x55c] sm:$0xf0] }
 0x1f1   :  { %v6209_v42 = vor.u32 %v6893_v19, %v6206_v60  ;;  %v6156_v19 = vld [vmem:[%s10376_s8 + $0x4d8] sm:$0xf]  ;;  %v6353_v60 = vor.u32 %v6932_v37, %v6352_v36  ;;  %v6785_v36 = vld [vmem:[%s10376_s8 + $0x1e0] sm:$0xf0]  ;;  %v6212_v37 = vld [vmem:[%s10376_s8 + $0x548] sm:$0xf] }
 0x1f4   :  { %v6952_v3 = vpop.eup %6951 }
 0x1f5   :  { %v2129_v48 = vmul.f32 %v6952_v3, %v2125_v62  ;;  %v5870_v62 = vld [vmem:[%s10376_s8 + $0x2bc] sm:$0xf0]  ;;  %v6321_v3 = vor.u32 %v6921_v63, %v6318_v0 }
 0x1f6   :  { %v5873_v12 = vor.u32 %v6809_v61, %v5870_v62 }
 0x1f7   :  { %v2130_v22 = vadd.f32 %v2129_v48, %v8952_v46  ;;  %v6840_v46 = vld [vmem:[%s10376_s8 + $0x398] sm:$0xf0]  ;;  %v6914_v48 = vld [vmem:[%s10376_s8 + $0x5ec] sm:$0xf] }
 0x1f8   :  { %v5981_v43 = vor.u32 %v6840_v46, %v5980_v25  ;;  %v6293_v18 = vor.u32 %v6914_v48, %v6290_v14  ;;  %v5618_v25 = vld [vmem:[%s10376_s8 + $0xc4] sm:$0xf0]  ;;  %v6858_v46 = vld [vmem:[%s10376_s8 + $0x42c] sm:$0xf]  ;;  %v6409_v14 = vor.u32 %v6946_v8, %v6408_v5 }
 0x1f9   :  { %v2131_v27 = vpack.c.bf16 %v2130_v22, %v2130_v22  ;;  %v6262_v22 = vld [vmem:[%s10376_s8 + $0x5cc] sm:$0xf0]  ;;  %v5621_v26 = vor.u32 %v6746_v24, %v5618_v25  ;;  %v6100_v8 = vld [vmem:[%s10376_s8 + $0x468] sm:$0xf] }
 0x1fa   :  { %3851 = vmatpush.bf16.msra.mxu2 %v5981_v43  ;;  %v6265_v23 = vor.u32 %v6907_v21, %v6262_v22  ;;  %v6041_v43 = vor.u32 %v6851_v38, %v6038_v6  ;;  %v5708_v6 = vld [vmem:[%s10376_s8 + $0x158] sm:$0xf] }
 0x1fb   :  { %2342 = vmatmul.bf16.vlgmr.msrb.gmra.mxu3 %v2131_v27  ;;  %2355 = vmatmul.bf16.vlgmr.msrb.gmra.mxu1 %v2131_v27 }
 0x1fc   :  { %2368 = vmatmul.bf16.vlgmr.msrb.gmra.mxu2 %v2131_v27  ;;  %2381 = vmatmul.bf16.vlgmr.msrb.gmra.mxu0 %v2131_v27  ;;  %v6066_v27 = vld [vmem:[%s10376_s8 + $0x444] sm:$0xf0] }
 0x1fd   :  { %3883 = vmatpush.bf16.msrb.mxu1 %v5957_v32  ;;  %3909 = vmatpush.bf16.msrb.mxu0 %v6405_v33  ;;  %v6069_v28 = vor.u32 %v6858_v46, %v6066_v27  ;;  %v6234_v32 = vld [vmem:[%s10376_s8 + $0x594] sm:$0xf0]  ;;  %v6890_v27 = vld [vmem:[%s10376_s8 + $0x528] sm:$0xf0] }
 0x1fe   :  { %3870 = vmatpush.bf16.msrb.mxu3 %v5733_v44  ;;  %3896 = vmatpush.bf16.msrb.mxu2 %v6181_v53  ;;  %v6237_v33 = vor.u32 %v6900_v31, %v6234_v32  ;;  %v6781_v44 = vld [vmem:[%s10376_s8 + $0x1c4] sm:$0xf]  ;;  %v5758_v53 = vld [vmem:[%s10376_s8 + $0x1dc] sm:$0xf0]  ;;  %v6820_v31 = vld [vmem:[%s10376_s8 + $0x2f8] sm:$0xf0] }
 0x1ff   :  { %v5761_v45 = vor.u32 %v6781_v44, %v5758_v53 }
 0x201   :  { %3884 = vmatpush.bf16.msrb.mxu1 %v5929_v7  ;;  %3910 = vmatpush.bf16.msrb.mxu0 %v6377_v47  ;;  %v6732_v7 = vld [vmem:[%s10376_s8 + $0x3c] sm:$0xf]  ;;  %v5562_v47 = vld [vmem:[%s10376_s8 + $0x54] sm:$0xf0] }
 0x202   :  { %3871 = vmatpush.bf16.msrb.mxu3 %v5705_v39  ;;  %3897 = vmatpush.bf16.msrb.mxu2 %v6153_v51  ;;  %v5565_v50 = vor.u32 %v6732_v7, %v5562_v47  ;;  %v6725_v39 = vld [vmem:[%s10376_s8 + $0x4] sm:$0xf]  ;;  %v5534_v51 = vld [vmem:[%s10376_s8 + $0x1c] sm:$0xf0] }
 0x203   :  { %v5537_v52 = vor.u32 %v6725_v39, %v5534_v51  ;;  %v6813_v7 = vld [vmem:[%s10376_s8 + $0x2c0] sm:$0xf0]  ;;  %v5680_v51 = vld [vmem:[%s10376_s8 + $0x120] sm:$0xf] }
 0x205   :  { %3885 = vmatpush.bf16.msrb.mxu1 %v5901_v59  ;;  %3911 = vmatpush.bf16.msrb.mxu0 %v6349_v35  ;;  %v2164_v59 = vld [vmem:[%s10375_s7] sm:$0xf] }
 0x206   :  { %3872 = vmatpush.bf16.msrb.mxu3 %v5677_v2  ;;  %3898 = vmatpush.bf16.msrb.mxu2 %v6125_v4  ;;  %v2167_v35 = vperm.slane %v2164_v59, 1  ;;  %v2169_v61 = vperm.slane %v2164_v59, 3  ;;  %v5960_v2 = vld [vmem:[%s10376_s8 + $0x350] sm:$0xf]  ;;  %v6834_v4 = vld [vmem:[%s10376_s8 + $0x368] sm:$0xf0] }
 0x207   :  { %v2168_v13 = vperm.slane %v2164_v59, 2  ;;  %v5961_v57 = vor.u32 %v6834_v4, %v5960_v2  ;;  %v5652_v4 = vld [vmem:[%s10376_s8 + $0xe8] sm:$0xf] }
 0x209   :  { %3886 = vmatpush.bf16.msrb.mxu1 %v5873_v12  ;;  %3912 = vmatpush.bf16.msrb.mxu0 %v6321_v3  ;;  %v2166_v12 = vperm.slane %v2164_v59, 0 }
 0x20a   :  { %3873 = vmatpush.bf16.msrb.mxu3 %v5649_v15  ;;  %3899 = vmatpush.bf16.msrb.mxu2 %v6097_v16  ;;  %v5932_v15 = vld [vmem:[%s10376_s8 + $0x318] sm:$0xf]  ;;  %v6827_v16 = vld [vmem:[%s10376_s8 + $0x330] sm:$0xf0] }
 0x20b   :  { %v5933_v46 = vor.u32 %v6827_v16, %v5932_v15  ;;  %v6911_v15 = vld [vmem:[%s10376_s8 + $0x5d0] sm:$0xf0] }
 0x20d   :  { %3887 = vmatpush.bf16.msrb.mxu1 %v5845_v17  ;;  %3913 = vmatpush.bf16.msrb.mxu0 %v6293_v18 }
 0x20e   :  { %3874 = vmatpush.bf16.msrb.mxu3 %v5621_v26  ;;  %3900 = vmatpush.bf16.msrb.mxu2 %v6069_v28  ;;  %v6184_v26 = vld [vmem:[%s10376_s8 + $0x510] sm:$0xf] }
 0x211   :  { %3888 = vmatpush.bf16.msrb.mxu1 %v5817_v10  ;;  %3914 = vmatpush.bf16.msrb.mxu0 %v6265_v23  ;;  %v5736_v10 = vld [vmem:[%s10376_s8 + $0x190] sm:$0xf]  ;;  %v6778_v23 = vld [vmem:[%s10376_s8 + $0x1a8] sm:$0xf0] }
 0x212   :  { %3875 = vmatpush.bf16.msrb.mxu3 %v5593_v40  ;;  %3901 = vmatpush.bf16.msrb.mxu2 %v6041_v43  ;;  %v6185_v40 = vor.u32 %v6890_v27, %v6184_v26  ;;  %v6771_v43 = vld [vmem:[%s10376_s8 + $0x170] sm:$0xf0]  ;;  %v6904_v26 = vld [vmem:[%s10376_s8 + $0x598] sm:$0xf0] }
 0x213   :  { %v5709_v49 = vor.u32 %v6771_v43, %v5708_v6  ;;  %v6831_v43 = vld [vmem:[%s10376_s8 + $0x354] sm:$0xf] }
 0x215   :  { %3889 = vmatpush.bf16.msrb.mxu1 %v5789_v30  ;;  %3915 = vmatpush.bf16.msrb.mxu0 %v6237_v33  ;;  %v5904_v30 = vld [vmem:[%s10376_s8 + $0x2e0] sm:$0xf]  ;;  %v5737_v33 = vor.u32 %v6778_v23, %v5736_v10 }
 0x216   :  { %3876 = vmatpush.bf16.msrb.mxu3 %v5565_v50  ;;  %3902 = vmatpush.bf16.msrb.mxu2 %v6013_v34  ;;  %v5905_v53 = vor.u32 %v6820_v31, %v5904_v30  ;;  %v6324_v50 = vld [vmem:[%s10376_s8 + $0x628] sm:$0xf]  ;;  %v5792_v23 = vld [vmem:[%s10376_s8 + $0x200] sm:$0xf]  ;;  %v6044_v30 = vld [vmem:[%s10376_s8 + $0x3f8] sm:$0xf] }
 0x217   :  { %v6325_v59 = vor.u32 %v6925_v29, %v6324_v50  ;;  %v6855_v31 = vld [vmem:[%s10376_s8 + $0x410] sm:$0xf0]  ;;  %v6848_v50 = vld [vmem:[%s10376_s8 + $0x3d8] sm:$0xf0] }
 0x219   :  { %3890 = vmatpush.bf16.msrb.mxu1 %v5761_v45  ;;  %3916 = vmatpush.bf16.msrb.mxu0 %v6209_v42  ;;  %v6883_v45 = vld [vmem:[%s10376_s8 + $0x4f0] sm:$0xf0]  ;;  %v5876_v42 = vld [vmem:[%s10376_s8 + $0x2a8] sm:$0xf] }
 0x21a   :  { %3877 = vmatpush.bf16.msrb.mxu3 %v5537_v52  ;;  %3903 = vmatpush.bf16.msrb.mxu2 %v5985_v58  ;;  %v6157_v39 = vor.u32 %v6883_v45, %v6156_v19  ;;  %v6764_v52 = vld [vmem:[%s10376_s8 + $0x138] sm:$0xf0]  ;;  %v5877_v54 = vor.u32 %v6813_v7, %v5876_v42  ;;  %v6943_v19 = vld [vmem:[%s10376_s8 + $0x6d4] sm:$0xf]  ;;  %v6045_v45 = vor.u32 %v6855_v31, %v6044_v30  ;;  %v5568_v42 = vld [vmem:[%s10376_s8 + $0x40] sm:$0xf] }
 0x21b   :  { %v6876_v58 = vld [vmem:[%s10376_s8 + $0x4b8] sm:$0xf0]  ;;  %v6873_v30 = vld [vmem:[%s10376_s8 + $0x4a4] sm:$0xf]  ;;  %v6130_v31 = vld [vmem:[%s10376_s8 + $0x4bc] sm:$0xf0] }
 0x21c   :  { %v6129_v2 = vor.u32 %v6876_v58, %v6128_v55  ;;  %v6736_v7 = vld [vmem:[%s10376_s8 + $0x58] sm:$0xf0]  ;;  %v6382_v58 = vld [vmem:[%s10376_s8 + $0x6b4] sm:$0xf0] }
 0x21d   :  { %v6936_v55 = vld [vmem:[%s10376_s8 + $0x69c] sm:$0xf] }
 0x278   :  { %v2356_v62 = vpop.f32.mrf.mxu1 }
 0x279   :  { %v2357_v63 = vadd.f32 %v2356_v62, %v2167_v35  ;;  %v2382_v0 = vpop.f32.mrf.mxu0  ;;  %v5848_v35 = vld [vmem:[%s10376_s8 + $0x270] sm:$0xf]  ;;  %v5681_v62 = vor.u32 %v6764_v52, %v5680_v51  ;;  %v5569_v52 = vor.u32 %v6736_v7, %v5568_v42  ;;  %v6102_v42 = vld [vmem:[%s10376_s8 + $0x484] sm:$0xf0] }
 0x27a   :  { %v2383_v41 = vadd.f32 %v2382_v0, %v2169_v61  ;;  %v6806_v61 = vld [vmem:[%s10376_s8 + $0x288] sm:$0xf0] }
 0x27b   :  { %v2387_v11 = vmax.f32 %v2357_v63, 0.0  ;;  %v6296_v63 = vld [vmem:[%s10376_s8 + $0x5f0] sm:$0xf]  ;;  %v6918_v0 = vld [vmem:[%s10376_s8 + $0x608] sm:$0xf0]  ;;  %v5849_v5 = vor.u32 %v6806_v61, %v5848_v35 }
 0x27c   :  { %v2389_v3 = vmax.f32 %v2383_v41, 0.0  ;;  %v6757_v41 = vld [vmem:[%s10376_s8 + $0x100] sm:$0xf0]  ;;  %v5540_v35 = vld [vmem:[%s10376_s8 + $0x8] sm:$0xf] }
 0x27d   :  { %v9360_v48 = vpack.c.bf16 %v2387_v11, %v2387_v11  ;;  %v6869_v11 = vld [vmem:[%s10376_s8 + $0x480] sm:$0xf0] }
 0x27e   :  { %v9368_v17 = vpack.c.bf16 %v2389_v3, %v2389_v3  ;;  %v2343_v18 = vpop.f32.mrf.mxu3  ;;  %v5820_v3 = vld [vmem:[%s10376_s8 + $0x238] sm:$0xf]  ;;  %v6101_v16 = vor.u32 %v6869_v11, %v6100_v8  ;;  %v6729_v61 = vld [vmem:[%s10376_s8 + $0x20] sm:$0xf0]  ;;  %v6385_v8 = vor.u32 %v6936_v55, %v6382_v58  ;;  %v6859_v55 = vld [vmem:[%s10376_s8 + $0x434] sm:$0xf] }
 0x27f   :  { %v2344_v21 = vadd.f32 %v2343_v18, %v2166_v12  ;;  %v2369_v22 = vpop.f32.mrf.mxu2  ;;  %3839 = vmatmul.bf16.vlgmr.msra.gmra.mxu1 %v9360_v48  ;;  %v6297_v12 = vor.u32 %v6918_v0, %v6296_v63  ;;  %v5624_v18 = vld [vmem:[%s10376_s8 + $0xb0] sm:$0xf]  ;;  %v6841_v63 = vld [vmem:[%s10376_s8 + $0x3a0] sm:$0xf0]  ;;  %v6775_v0 = vld [vmem:[%s10376_s8 + $0x194] sm:$0xf]  ;;  %v5541_v11 = vor.u32 %v6729_v61, %v5540_v35 }
 0x280   :  { %v2370_v24 = vadd.f32 %v2369_v22, %v2168_v13  ;;  %3865 = vmatmul.bf16.vlgmr.msra.gmra.mxu0 %v9368_v17  ;;  %3935 = vmatpush.bf16.msra.mxu1 %v5961_v57  ;;  %v2358_v25 = vpop.f32.mrf.mxu1  ;;  %v6799_v13 = vld [vmem:[%s10376_s8 + $0x250] sm:$0xf0]  ;;  %v5653_v57 = vor.u32 %v6757_v41, %v5652_v4  ;;  %v6862_v22 = vld [vmem:[%s10376_s8 + $0x448] sm:$0xf0]  ;;  %v6074_v58 = vld [vmem:[%s10376_s8 + $0x44c] sm:$0xf0] }
 0x281   :  { %v2386_v28 = vmax.f32 %v2344_v21, 0.0  ;;  %3961 = vmatpush.bf16.msra.mxu0 %v6409_v14  ;;  %v2384_v1 = vpop.f32.mrf.mxu0  ;;  %v6268_v14 = vld [vmem:[%s10376_s8 + $0x5b8] sm:$0xf]  ;;  %v5821_v9 = vor.u32 %v6799_v13, %v5820_v3  ;;  %v6072_v21 = vld [vmem:[%s10376_s8 + $0x430] sm:$0xf]  ;;  %v5625_v25 = vor.u32 %v6750_v20, %v5624_v18 }
 0x282   :  { %v2388_v32 = vmax.f32 %v2370_v24, 0.0  ;;  %v6269_v10 = vor.u32 %v6911_v15, %v6268_v14  ;;  %v6792_v24 = vld [vmem:[%s10376_s8 + $0x218] sm:$0xf0]  ;;  %v6073_v27 = vor.u32 %v6862_v22, %v6072_v21  ;;  %v6743_v1 = vld [vmem:[%s10376_s8 + $0x90] sm:$0xf0] }
 0x283   :  { %v9402_v38 = vpack.c.bf16 %v2386_v28, %v2386_v28  ;;  %v5596_v28 = vld [vmem:[%s10376_s8 + $0x78] sm:$0xf]  ;;  %v6887_v41 = vld [vmem:[%s10376_s8 + $0x514] sm:$0xf]  ;;  %v5906_v3 = vld [vmem:[%s10376_s8 + $0x2fc] sm:$0xf0] }
 0x284   :  { %v9410_v44 = vpack.c.bf16 %v2388_v32, %v2388_v32  ;;  %3936 = vmatpush.bf16.msra.mxu1 %v5933_v46  ;;  %v6240_v46 = vld [vmem:[%s10376_s8 + $0x580] sm:$0xf]  ;;  %v5764_v32 = vld [vmem:[%s10376_s8 + $0x1c8] sm:$0xf]  ;;  %v5597_v6 = vor.u32 %v6743_v1, %v5596_v28  ;;  %v6929_v14 = vld [vmem:[%s10376_s8 + $0x664] sm:$0xf] }
 0x285   :  { %3962 = vmatpush.bf16.msra.mxu0 %v6381_v56  ;;  %3826 = vmatmul.bf16.vlgmr.msra.gmra.mxu3 %v9402_v38  ;;  %v5793_v56 = vor.u32 %v6792_v24, %v5792_v23  ;;  %v6354_v15 = vld [vmem:[%s10376_s8 + $0x67c] sm:$0xf0]  ;;  %v6768_v18 = vld [vmem:[%s10376_s8 + $0x15c] sm:$0xf]  ;;  %v5710_v20 = vld [vmem:[%s10376_s8 + $0x174] sm:$0xf0] }
 0x286   :  { %3852 = vmatmul.bf16.vlgmr.msra.gmra.mxu2 %v9410_v44  ;;  %3922 = vmatpush.bf16.msra.mxu3 %v5737_v33  ;;  %v2345_v47 = vpop.f32.mrf.mxu3  ;;  %v6241_v33 = vor.u32 %v6904_v26, %v6240_v46  ;;  %v6880_v21 = vld [vmem:[%s10376_s8 + $0x4dc] sm:$0xf]  ;;  %v6158_v22 = vld [vmem:[%s10376_s8 + $0x4f4] sm:$0xf0]  ;;  %v6810_v23 = vld [vmem:[%s10376_s8 + $0x2ac] sm:$0xf] }
 0x287   :  { %3948 = vmatpush.bf16.msra.mxu2 %v6185_v40  ;;  %v2371_v34 = vpop.f32.mrf.mxu2  ;;  %v6897_v40 = vld [vmem:[%s10376_s8 + $0x560] sm:$0xf0]  ;;  %v5765_v47 = vor.u32 %v6785_v36, %v5764_v32  ;;  %v5878_v24 = vld [vmem:[%s10376_s8 + $0x2c4] sm:$0xf0]  ;;  %v6922_v46 = vld [vmem:[%s10376_s8 + $0x62c] sm:$0xf] }
 0x288   :  { %3937 = vmatpush.bf16.msra.mxu1 %v5905_v53  ;;  %v5962_v53 = vld [vmem:[%s10376_s8 + $0x36c] sm:$0xf0]  ;;  %v6213_v29 = vor.u32 %v6897_v40, %v6212_v37  ;;  %v6326_v26 = vld [vmem:[%s10376_s8 + $0x644] sm:$0xf0]  ;;  %v6761_v28 = vld [vmem:[%s10376_s8 + $0x124] sm:$0xf] }
 0x289   :  { %3963 = vmatpush.bf16.msra.mxu0 %v6353_v60  ;;  %v6410_v60 = vld [vmem:[%s10376_s8 + $0x6ec] sm:$0xf0]  ;;  %v5965_v34 = vor.u32 %v6831_v43, %v5962_v53  ;;  %v5682_v1 = vld [vmem:[%s10376_s8 + $0x13c] sm:$0xf0]  ;;  %v6329_v32 = vor.u32 %v6922_v46, %v6326_v26  ;;  %v6915_v40 = vld [vmem:[%s10376_s8 + $0x5f4] sm:$0xf]  ;;  %v6133_v43 = vor.u32 %v6873_v30, %v6130_v31 }
 0x28a   :  { %3923 = vmatpush.bf16.msra.mxu3 %v5709_v49  ;;  %v6016_v49 = vld [vmem:[%s10376_s8 + $0x3c0] sm:$0xf]  ;;  %v6413_v51 = vor.u32 %v6943_v19, %v6410_v60  ;;  %v5850_v36 = vld [vmem:[%s10376_s8 + $0x28c] sm:$0xf0]  ;;  %v5685_v37 = vor.u32 %v6761_v28, %v5682_v1  ;;  %v6754_v53 = vld [vmem:[%s10376_s8 + $0xec] sm:$0xf] }
 0x28b   :  { %3949 = vmatpush.bf16.msra.mxu2 %v6157_v39  ;;  %v6824_v39 = vld [vmem:[%s10376_s8 + $0x31c] sm:$0xf]  ;;  %v5654_v19 = vld [vmem:[%s10376_s8 + $0x104] sm:$0xf0]  ;;  %v6866_v60 = vld [vmem:[%s10376_s8 + $0x46c] sm:$0xf] }
 0x28c   :  { %3938 = vmatpush.bf16.msra.mxu1 %v5877_v54  ;;  %v5934_v54 = vld [vmem:[%s10376_s8 + $0x334] sm:$0xf0]  ;;  %v6789_v35 = vld [vmem:[%s10376_s8 + $0x204] sm:$0xf]  ;;  %v5794_v61 = vld [vmem:[%s10376_s8 + $0x21c] sm:$0xf0] }
 0x28d   :  { %3964 = vmatpush.bf16.msra.mxu0 %v6325_v59  ;;  %v6017_v59 = vor.u32 %v6848_v50, %v6016_v49  ;;  %v5937_v4 = vor.u32 %v6824_v39, %v5934_v54  ;;  %v5822_v49 = vld [vmem:[%s10376_s8 + $0x254] sm:$0xf0]  ;;  %v5657_v50 = vor.u32 %v6754_v53, %v5654_v19  ;;  %v6105_v39 = vor.u32 %v6866_v60, %v6102_v42  ;;  %v6388_v30 = vld [vmem:[%s10376_s8 + $0x6a0] sm:$0xf]  ;;  %v6940_v31 = vld [vmem:[%s10376_s8 + $0x6b8] sm:$0xf0] }
 0x28e   :  { %3924 = vmatpush.bf16.msra.mxu3 %v5681_v62  ;;  %v5988_v62 = vld [vmem:[%s10376_s8 + $0x388] sm:$0xf]  ;;  %v6192_v19 = vld [vmem:[%s10376_s8 + $0x518] sm:$0xf]  ;;  %v6389_v60 = vor.u32 %v6940_v31, %v6388_v30  ;;  %v6863_v31 = vld [vmem:[%s10376_s8 + $0x450] sm:$0xf0] }
 0x28f   :  { %3950 = vmatpush.bf16.msra.mxu2 %v6129_v2  ;;  %3891 = vmatmul.bf16.vlgmr.msrb.gmra.mxu1 %v9360_v48  ;;  %v5738_v2 = vld [vmem:[%s10376_s8 + $0x1ac] sm:$0xf0]  ;;  %v5989_v13 = vor.u32 %v6841_v63, %v5988_v62  ;;  %v6901_v63 = vld [vmem:[%s10376_s8 + $0x584] sm:$0xf]  ;;  %v6080_v30 = vld [vmem:[%s10376_s8 + $0x438] sm:$0xf] }
 0x290   :  { %3917 = vmatmul.bf16.vlgmr.msrb.gmra.mxu0 %v9368_v17  ;;  %3939 = vmatpush.bf16.msra.mxu1 %v5849_v5  ;;  %v6186_v5 = vld [vmem:[%s10376_s8 + $0x52c] sm:$0xf0] }
 0x291   :  { %3965 = vmatpush.bf16.msra.mxu0 %v6297_v12  ;;  %v6817_v12 = vld [vmem:[%s10376_s8 + $0x2e4] sm:$0xf] }
 0x292   :  { %3925 = vmatpush.bf16.msra.mxu3 %v5653_v57  ;;  %v5741_v57 = vor.u32 %v6775_v0, %v5738_v2  ;;  %v6242_v0 = vld [vmem:[%s10376_s8 + $0x59c] sm:$0xf0]  ;;  %v6077_v2 = vor.u32 %v6859_v55, %v6074_v58  ;;  %v6884_v58 = vld [vmem:[%s10376_s8 + $0x4f8] sm:$0xf0] }
 0x293   :  { %3951 = vmatpush.bf16.msra.mxu2 %v6101_v16  ;;  %v6189_v16 = vor.u32 %v6887_v41, %v6186_v5  ;;  %v5598_v41 = vld [vmem:[%s10376_s8 + $0x94] sm:$0xf0]  ;;  %v5797_v5 = vor.u32 %v6789_v35, %v5794_v61  ;;  %v6164_v55 = vld [vmem:[%s10376_s8 + $0x4e0] sm:$0xf]  ;;  %v5884_v35 = vld [vmem:[%s10376_s8 + $0x2b0] sm:$0xf] }
 0x294   :  { %3940 = vmatpush.bf16.msra.mxu1 %v5821_v9  ;;  %v5909_v9 = vor.u32 %v6817_v12, %v5906_v3  ;;  %v6782_v12 = vld [vmem:[%s10376_s8 + $0x1cc] sm:$0xf]  ;;  %v6245_v3 = vor.u32 %v6901_v63, %v6242_v0  ;;  %v6332_v63 = vld [vmem:[%s10376_s8 + $0x630] sm:$0xf] }
 0x295   :  { %3966 = vmatpush.bf16.msra.mxu0 %v6269_v10  ;;  %3878 = vmatmul.bf16.vlgmr.msrb.gmra.mxu3 %v9402_v38  ;;  %v6357_v10 = vor.u32 %v6929_v14, %v6354_v15  ;;  %v6214_v14 = vld [vmem:[%s10376_s8 + $0x564] sm:$0xf0]  ;;  %v6814_v61 = vld [vmem:[%s10376_s8 + $0x2c8] sm:$0xf0] }
 0x296   :  { %3904 = vmatmul.bf16.vlgmr.msrb.gmra.mxu2 %v9410_v44  ;;  %3926 = vmatpush.bf16.msra.mxu3 %v5625_v25  ;;  %v5713_v25 = vor.u32 %v6768_v18, %v5710_v20  ;;  %v6835_v18 = vld [vmem:[%s10376_s8 + $0x370] sm:$0xf0]  ;;  %v6416_v20 = vld [vmem:[%s10376_s8 + $0x6d8] sm:$0xf]  ;;  %v6926_v0 = vld [vmem:[%s10376_s8 + $0x648] sm:$0xf0] }
 0x297   :  { %3952 = vmatpush.bf16.msra.mxu2 %v6073_v27  ;;  %v6161_v27 = vor.u32 %v6880_v21, %v6158_v22  ;;  %v6947_v21 = vld [vmem:[%s10376_s8 + $0x6f0] sm:$0xf0]  ;;  %v6733_v22 = vld [vmem:[%s10376_s8 + $0x44] sm:$0xf] }
 0x298   :  { %3941 = vmatpush.bf16.msra.mxu1 %v5793_v56  ;;  %v5881_v56 = vor.u32 %v6810_v23, %v5878_v24  ;;  %v6845_v24 = vld [vmem:[%s10376_s8 + $0x3c4] sm:$0xf]  ;;  %v6417_v28 = vor.u32 %v6947_v21, %v6416_v20  ;;  %v6758_v20 = vld [vmem:[%s10376_s8 + $0x108] sm:$0xf0]  ;;  %v6108_v21 = vld [vmem:[%s10376_s8 + $0x470] sm:$0xf] }
 0x299   :  { %3967 = vmatpush.bf16.msra.mxu0 %v6241_v33  ;;  %v6803_v33 = vld [vmem:[%s10376_s8 + $0x274] sm:$0xf] }
 0x29a   :  { %3927 = vmatpush.bf16.msra.mxu3 %v5597_v6  ;;  %v6298_v6 = vld [vmem:[%s10376_s8 + $0x60c] sm:$0xf0] }
 0x29b   :  { %3953 = vmatpush.bf16.msra.mxu2 %v6045_v45  ;;  %v5853_v45 = vor.u32 %v6803_v33, %v5850_v36  ;;  %v6301_v7 = vor.u32 %v6915_v40, %v6298_v6  ;;  %v6726_v33 = vld [vmem:[%s10376_s8 + $0xc] sm:$0xf]  ;;  %v5542_v36 = vld [vmem:[%s10376_s8 + $0x24] sm:$0xf0]  ;;  %v5744_v6 = vld [vmem:[%s10376_s8 + $0x198] sm:$0xf] }
 0x29c   :  { %3942 = vmatpush.bf16.msra.mxu1 %v5765_v47  ;;  %v6796_v47 = vld [vmem:[%s10376_s8 + $0x23c] sm:$0xf]  ;;  %v5990_v40 = vld [vmem:[%s10376_s8 + $0x3a4] sm:$0xf0]  ;;  %v5545_v42 = vor.u32 %v6726_v33, %v5542_v36  ;;  %v6793_v36 = vld [vmem:[%s10376_s8 + $0x220] sm:$0xf0] }
 0x29d   :  { %3968 = vmatpush.bf16.msra.mxu0 %v6213_v29  ;;  %v6908_v29 = vld [vmem:[%s10376_s8 + $0x5bc] sm:$0xf]  ;;  %v5825_v54 = vor.u32 %v6796_v47, %v5822_v49  ;;  %v6821_v47 = vld [vmem:[%s10376_s8 + $0x300] sm:$0xf0]  ;;  %v5800_v33 = vld [vmem:[%s10376_s8 + $0x208] sm:$0xf] }
 0x29e   :  { %3928 = vmatpush.bf16.msra.mxu3 %v5569_v52  ;;  %v5626_v52 = vld [vmem:[%s10376_s8 + $0xcc] sm:$0xf0] }
 0x29f   :  { %3954 = vmatpush.bf16.msra.mxu2 %v6017_v59  ;;  %3943 = vmatmul.bf16.vlgmr.msra.gmra.mxu1 %v9360_v48 }
 0x2a0   :  { %3987 = vmatpush.bf16.msrb.mxu1 %v5965_v34  ;;  %3969 = vmatmul.bf16.vlgmr.msra.gmra.mxu0 %v9368_v17  ;;  %v6270_v34 = vld [vmem:[%s10376_s8 + $0x5d4] sm:$0xf0] }
 0x2a1   :  { %4013 = vmatpush.bf16.msrb.mxu0 %v6413_v51  ;;  %v6747_v51 = vld [vmem:[%s10376_s8 + $0xb4] sm:$0xf]  ;;  %v6273_v59 = vor.u32 %v6908_v29, %v6270_v34  ;;  %v6360_v29 = vld [vmem:[%s10376_s8 + $0x668] sm:$0xf]  ;;  %v6933_v34 = vld [vmem:[%s10376_s8 + $0x680] sm:$0xf0] }
 0x2a2   :  { %3929 = vmatpush.bf16.msra.mxu3 %v5541_v11  ;;  %v5629_v62 = vor.u32 %v6747_v51, %v5626_v52  ;;  %v6046_v11 = vld [vmem:[%s10376_s8 + $0x414] sm:$0xf0]  ;;  %v5716_v51 = vld [vmem:[%s10376_s8 + $0x160] sm:$0xf]  ;;  %v6772_v52 = vld [vmem:[%s10376_s8 + $0x178] sm:$0xf0] }
 0x2a3   :  { %3955 = vmatpush.bf16.msra.mxu2 %v5989_v13  ;;  %v5766_v13 = vld [vmem:[%s10376_s8 + $0x1e4] sm:$0xf0] }
 0x2a4   :  { %3988 = vmatpush.bf16.msrb.mxu1 %v5937_v4  ;;  %v6740_v4 = vld [vmem:[%s10376_s8 + $0x7c] sm:$0xf]  ;;  %v5769_v23 = vor.u32 %v6782_v12, %v5766_v13  ;;  %v6333_v12 = vor.u32 %v6926_v0, %v6332_v63  ;;  %v6807_v13 = vld [vmem:[%s10376_s8 + $0x290] sm:$0xf0] }
 0x2a5   :  { %4014 = vmatpush.bf16.msrb.mxu0 %v6385_v8  ;;  %3930 = vmatmul.bf16.vlgmr.msra.gmra.mxu3 %v9402_v38  ;;  %v6852_v8 = vld [vmem:[%s10376_s8 + $0x3fc] sm:$0xf]  ;;  %v5601_v15 = vor.u32 %v6740_v4, %v5598_v41  ;;  %v5688_v4 = vld [vmem:[%s10376_s8 + $0x128] sm:$0xf]  ;;  %v6765_v41 = vld [vmem:[%s10376_s8 + $0x140] sm:$0xf0] }
 0x2a6   :  { %3974 = vmatpush.bf16.msrb.mxu3 %v5741_v57  ;;  %3956 = vmatmul.bf16.vlgmr.msra.gmra.mxu2 %v9410_v44  ;;  %v6894_v57 = vld [vmem:[%s10376_s8 + $0x54c] sm:$0xf] }
 0x2a7   :  { %4000 = vmatpush.bf16.msrb.mxu2 %v6189_v16  ;;  %v5968_v16 = vld [vmem:[%s10376_s8 + $0x358] sm:$0xf]  ;;  %v6217_v46 = vor.u32 %v6894_v57, %v6214_v14  ;;  %v5689_v57 = vor.u32 %v6765_v41, %v5688_v4 }
 0x2a8   :  { %3989 = vmatpush.bf16.msrb.mxu1 %v5909_v9  ;;  %v6049_v9 = vor.u32 %v6852_v8, %v6046_v11  ;;  %v5969_v26 = vor.u32 %v6835_v18, %v5968_v16  ;;  %v6136_v8 = vld [vmem:[%s10376_s8 + $0x4a8] sm:$0xf]  ;;  %v6877_v11 = vld [vmem:[%s10376_s8 + $0x4c0] sm:$0xf0]  ;;  %v6304_v14 = vld [vmem:[%s10376_s8 + $0x5f8] sm:$0xf] }
 0x2a9   :  { %4015 = vmatpush.bf16.msrb.mxu0 %v6357_v10  ;;  %v5570_v10 = vld [vmem:[%s10376_s8 + $0x5c] sm:$0xf0]  ;;  %v6137_v16 = vor.u32 %v6877_v11, %v6136_v8  ;;  %v5660_v18 = vld [vmem:[%s10376_s8 + $0xf0] sm:$0xf]  ;;  %v6937_v8 = vld [vmem:[%s10376_s8 + $0x6a4] sm:$0xf] }
 0x2aa   :  { %3975 = vmatpush.bf16.msrb.mxu3 %v5713_v25  ;;  %v6018_v25 = vld [vmem:[%s10376_s8 + $0x3dc] sm:$0xf0]  ;;  %v5573_v1 = vor.u32 %v6733_v22, %v5570_v10  ;;  %v6870_v22 = vld [vmem:[%s10376_s8 + $0x488] sm:$0xf0] }
 0x2ab   :  { %4001 = vmatpush.bf16.msrb.mxu2 %v6161_v27  ;;  %v5940_v27 = vld [vmem:[%s10376_s8 + $0x320] sm:$0xf] }
 0x2ac   :  { %3990 = vmatpush.bf16.msrb.mxu1 %v5881_v56  ;;  %v6828_v56 = vld [vmem:[%s10376_s8 + $0x338] sm:$0xf0]  ;;  %v6390_v11 = vld [vmem:[%s10376_s8 + $0x6bc] sm:$0xf0] }
 0x2ad   :  { %4016 = vmatpush.bf16.msrb.mxu0 %v6329_v32  ;;  %v6021_v32 = vor.u32 %v6845_v24, %v6018_v25  ;;  %v5941_v53 = vor.u32 %v6828_v56, %v5940_v27  ;;  %v6800_v24 = vld [vmem:[%s10376_s8 + $0x258] sm:$0xf0]  ;;  %v5661_v25 = vor.u32 %v6758_v20, %v5660_v18  ;;  %v6109_v27 = vor.u32 %v6870_v22, %v6108_v21 }
 0x2ae   :  { %3976 = vmatpush.bf16.msrb.mxu3 %v5685_v37  ;;  %v6838_v37 = vld [vmem:[%s10376_s8 + $0x38c] sm:$0xf]  ;;  %v6888_v20 = vld [vmem:[%s10376_s8 + $0x51c] sm:$0xf]  ;;  %v6393_v21 = vor.u32 %v6937_v8, %v6390_v11  ;;  %v6082_v11 = vld [vmem:[%s10376_s8 + $0x454] sm:$0xf0] }
 0x2af   :  { %4002 = vmatpush.bf16.msrb.mxu2 %v6133_v43  ;;  %v6779_v43 = vld [vmem:[%s10376_s8 + $0x1b0] sm:$0xf0]  ;;  %v5993_v49 = vor.u32 %v6838_v37, %v5990_v40  ;;  %v6248_v40 = vld [vmem:[%s10376_s8 + $0x588] sm:$0xf]  ;;  %v6860_v8 = vld [vmem:[%s10376_s8 + $0x43c] sm:$0xf] }
 0x2b0   :  { %3991 = vmatpush.bf16.msrb.mxu1 %v5853_v45  ;;  %v6891_v45 = vld [vmem:[%s10376_s8 + $0x530] sm:$0xf0] }
 0x2b1   :  { %4017 = vmatpush.bf16.msrb.mxu0 %v6301_v7  ;;  %v5912_v7 = vld [vmem:[%s10376_s8 + $0x2e8] sm:$0xf] }
 0x2b2   :  { %3977 = vmatpush.bf16.msrb.mxu3 %v5657_v50  ;;  %v5745_v50 = vor.u32 %v6779_v43, %v5744_v6  ;;  %v6905_v6 = vld [vmem:[%s10376_s8 + $0x5a0] sm:$0xf0]  ;;  %v6081_v43 = vor.u32 %v6863_v31, %v6080_v30  ;;  %v6166_v31 = vld [vmem:[%s10376_s8 + $0x4fc] sm:$0xf0] }
 0x2b3   :  { %4003 = vmatpush.bf16.msrb.mxu2 %v6105_v39  ;;  %v6193_v39 = vor.u32 %v6891_v45, %v6192_v19  ;;  %v6744_v19 = vld [vmem:[%s10376_s8 + $0x98] sm:$0xf0]  ;;  %v5801_v45 = vor.u32 %v6793_v36, %v5800_v33  ;;  %v6881_v30 = vld [vmem:[%s10376_s8 + $0x4e4] sm:$0xf]  ;;  %v6811_v33 = vld [vmem:[%s10376_s8 + $0x2b4] sm:$0xf] }
 0x2b4   :  { %3992 = vmatpush.bf16.msrb.mxu1 %v5825_v54  ;;  %v5913_v54 = vor.u32 %v6821_v47, %v5912_v7  ;;  %v5772_v7 = vld [vmem:[%s10376_s8 + $0x1d0] sm:$0xf]  ;;  %v6249_v47 = vor.u32 %v6905_v6, %v6248_v40  ;;  %v6923_v40 = vld [vmem:[%s10376_s8 + $0x634] sm:$0xf] }
 0x2b5   :  { %4018 = vmatpush.bf16.msrb.mxu0 %v6273_v59  ;;  %v6361_v59 = vor.u32 %v6933_v34, %v6360_v29  ;;  %v6898_v29 = vld [vmem:[%s10376_s8 + $0x568] sm:$0xf0]  ;;  %v5886_v36 = vld [vmem:[%s10376_s8 + $0x2cc] sm:$0xf0] }
 0x2b6   :  { %3978 = vmatpush.bf16.msrb.mxu3 %v5629_v62  ;;  %v5717_v62 = vor.u32 %v6772_v52, %v5716_v51  ;;  %v5970_v51 = vld [vmem:[%s10376_s8 + $0x374] sm:$0xf0]  ;;  %v6944_v52 = vld [vmem:[%s10376_s8 + $0x6dc] sm:$0xf]  ;;  %v6334_v6 = vld [vmem:[%s10376_s8 + $0x64c] sm:$0xf0] }
 0x2b7   :  { %4004 = vmatpush.bf16.msrb.mxu2 %v6077_v2  ;;  %v6165_v2 = vor.u32 %v6884_v58, %v6164_v55  ;;  %v6418_v55 = vld [vmem:[%s10376_s8 + $0x6f4] sm:$0xf0]  ;;  %v5576_v58 = vld [vmem:[%s10376_s8 + $0x48] sm:$0xf] }
 0x2b8   :  { %3993 = vmatpush.bf16.msrb.mxu1 %v5797_v5  ;;  %v5885_v5 = vor.u32 %v6814_v61, %v5884_v35  ;;  %v6024_v61 = vld [vmem:[%s10376_s8 + $0x3c8] sm:$0xf]  ;;  %v6421_v4 = vor.u32 %v6944_v52, %v6418_v55  ;;  %v5662_v52 = vld [vmem:[%s10376_s8 + $0x10c] sm:$0xf0]  ;;  %v6867_v55 = vld [vmem:[%s10376_s8 + $0x474] sm:$0xf] }
 0x2b9   :  { %4019 = vmatpush.bf16.msrb.mxu0 %v6245_v3  ;;  %v5856_v3 = vld [vmem:[%s10376_s8 + $0x278] sm:$0xf] }
 0x2ba   :  { %3979 = vmatpush.bf16.msrb.mxu3 %v5601_v15  ;;  %v6919_v15 = vld [vmem:[%s10376_s8 + $0x610] sm:$0xf0] }
 0x2bb   :  { %4005 = vmatpush.bf16.msrb.mxu2 %v6049_v9  ;;  %v5857_v9 = vor.u32 %v6807_v13, %v5856_v3  ;;  %v6305_v10 = vor.u32 %v6919_v15, %v6304_v14  ;;  %v5548_v3 = vld [vmem:[%s10376_s8 + $0x10] sm:$0xf]  ;;  %v6730_v13 = vld [vmem:[%s10376_s8 + $0x28] sm:$0xf0]  ;;  %v6776_v15 = vld [vmem:[%s10376_s8 + $0x19c] sm:$0xf] }
 0x2bc   :  { %3994 = vmatpush.bf16.msrb.mxu1 %v5769_v23  ;;  %v5828_v23 = vld [vmem:[%s10376_s8 + $0x240] sm:$0xf]  ;;  %v6842_v14 = vld [vmem:[%s10376_s8 + $0x3a8] sm:$0xf0]  ;;  %v5549_v22 = vor.u32 %v6730_v13, %v5548_v3  ;;  %v5802_v13 = vld [vmem:[%s10376_s8 + $0x224] sm:$0xf0] }
 0x2bd   :  { %4020 = vmatpush.bf16.msrb.mxu0 %v6217_v46  ;;  %v6276_v46 = vld [vmem:[%s10376_s8 + $0x5c0] sm:$0xf]  ;;  %v5829_v56 = vor.u32 %v6800_v24, %v5828_v23  ;;  %v5914_v23 = vld [vmem:[%s10376_s8 + $0x304] sm:$0xf0]  ;;  %v6790_v3 = vld [vmem:[%s10376_s8 + $0x20c] sm:$0xf] }
 0x2be   :  { %3980 = vmatpush.bf16.msrb.mxu3 %v5573_v1  ;;  %v6751_v1 = vld [vmem:[%s10376_s8 + $0xd0] sm:$0xf0] }
 0x2bf   :  { %4006 = vmatpush.bf16.msrb.mxu2 %v6021_v32  ;;  %3995 = vmatmul.bf16.vlgmr.msrb.gmra.mxu1 %v9360_v48 }
 0x2c0   :  { %4039 = vmatpush.bf16.msra.mxu1 %v5969_v26  ;;  %4021 = vmatmul.bf16.vlgmr.msrb.gmra.mxu0 %v9368_v17  ;;  %v6912_v26 = vld [vmem:[%s10376_s8 + $0x5d8] sm:$0xf0] }
 0x2c1   :  { %4065 = vmatpush.bf16.msra.mxu0 %v6417_v28  ;;  %v5632_v28 = vld [vmem:[%s10376_s8 + $0xb8] sm:$0xf]  ;;  %v6277_v32 = vor.u32 %v6912_v26, %v6276_v46  ;;  %v6930_v46 = vld [vmem:[%s10376_s8 + $0x66c] sm:$0xf]  ;;  %v6362_v26 = vld [vmem:[%s10376_s8 + $0x684] sm:$0xf0] }
 0x2c2   :  { %3981 = vmatpush.bf16.msrb.mxu3 %v5545_v42  ;;  %v5633_v37 = vor.u32 %v6751_v1, %v5632_v28  ;;  %v6856_v42 = vld [vmem:[%s10376_s8 + $0x418] sm:$0xf0]  ;;  %v6769_v28 = vld [vmem:[%s10376_s8 + $0x164] sm:$0xf]  ;;  %v5718_v1 = vld [vmem:[%s10376_s8 + $0x17c] sm:$0xf0] }
 0x2c3   :  { %4007 = vmatpush.bf16.msrb.mxu2 %v5993_v49  ;;  %v6786_v49 = vld [vmem:[%s10376_s8 + $0x1e8] sm:$0xf0] }
 0x2c4   :  { %4040 = vmatpush.bf16.msra.mxu1 %v5941_v53  ;;  %v5604_v53 = vld [vmem:[%s10376_s8 + $0x80] sm:$0xf]  ;;  %v5773_v35 = vor.u32 %v6786_v49, %v5772_v7  ;;  %v6337_v7 = vor.u32 %v6923_v40, %v6334_v6  ;;  %v5858_v49 = vld [vmem:[%s10376_s8 + $0x294] sm:$0xf0] }
 0x2c5   :  { %4066 = vmatpush.bf16.msra.mxu0 %v6389_v60  ;;  %3982 = vmatmul.bf16.vlgmr.msrb.gmra.mxu3 %v9402_v38  ;;  %v6052_v60 = vld [vmem:[%s10376_s8 + $0x400] sm:$0xf]  ;;  %v5605_v34 = vor.u32 %v6744_v19, %v5604_v53  ;;  %v6762_v53 = vld [vmem:[%s10376_s8 + $0x12c] sm:$0xf]  ;;  %v5690_v19 = vld [vmem:[%s10376_s8 + $0x144] sm:$0xf0] }
 0x2c6   :  { %4026 = vmatpush.bf16.msra.mxu3 %v5745_v50  ;;  %4008 = vmatmul.bf16.vlgmr.msrb.gmra.mxu2 %v9410_v44  ;;  %v6220_v50 = vld [vmem:[%s10376_s8 + $0x550] sm:$0xf] }
 0x2c7   :  { %4052 = vmatpush.bf16.msra.mxu2 %v6193_v39  ;;  %v6832_v39 = vld [vmem:[%s10376_s8 + $0x35c] sm:$0xf]  ;;  %v6221_v63 = vor.u32 %v6898_v29, %v6220_v50  ;;  %v5693_v50 = vor.u32 %v6762_v53, %v5690_v19 }
 0x2c8   :  { %4041 = vmatpush.bf16.msra.mxu1 %v5913_v54  ;;  %v6053_v54 = vor.u32 %v6856_v42, %v6052_v60  ;;  %v5973_v0 = vor.u32 %v6832_v39, %v5970_v51  ;;  %v6874_v60 = vld [vmem:[%s10376_s8 + $0x4ac] sm:$0xf]  ;;  %v6138_v42 = vld [vmem:[%s10376_s8 + $0x4c4] sm:$0xf0]  ;;  %v6916_v29 = vld [vmem:[%s10376_s8 + $0x5fc] sm:$0xf] }
 0x2c9   :  { %4067 = vmatpush.bf16.msra.mxu0 %v6361_v59  ;;  %v6737_v59 = vld [vmem:[%s10376_s8 + $0x60] sm:$0xf0]  ;;  %v6141_v39 = vor.u32 %v6874_v60, %v6138_v42  ;;  %v6755_v51 = vld [vmem:[%s10376_s8 + $0xf4] sm:$0xf]  ;;  %v6396_v60 = vld [vmem:[%s10376_s8 + $0x6a8] sm:$0xf] }
 0x2ca   :  { %4027 = vmatpush.bf16.msra.mxu3 %v5717_v62  ;;  %v6849_v62 = vld [vmem:[%s10376_s8 + $0x3e0] sm:$0xf0]  ;;  %v5577_v41 = vor.u32 %v6737_v59, %v5576_v58  ;;  %v6110_v58 = vld [vmem:[%s10376_s8 + $0x48c] sm:$0xf0] }
 0x2cb   :  { %4053 = vmatpush.bf16.msra.mxu2 %v6165_v2  ;;  %v6825_v2 = vld [vmem:[%s10376_s8 + $0x324] sm:$0xf] }
 0x2cc   :  { %4042 = vmatpush.bf16.msra.mxu1 %v5885_v5  ;;  %v5942_v5 = vld [vmem:[%s10376_s8 + $0x33c] sm:$0xf0]  ;;  %v6941_v42 = vld [vmem:[%s10376_s8 + $0x6c0] sm:$0xf0] }
 0x2cd   :  { %4068 = vmatpush.bf16.msra.mxu0 %v6333_v12  ;;  %v6025_v12 = vor.u32 %v6849_v62, %v6024_v61  ;;  %v5945_v18 = vor.u32 %v6825_v2, %v5942_v5  ;;  %v5830_v61 = vld [vmem:[%s10376_s8 + $0x25c] sm:$0xf0]  ;;  %v5665_v62 = vor.u32 %v6755_v51, %v5662_v52  ;;  %v6113_v2 = vor.u32 %v6867_v55, %v6110_v58 }
 0x2ce   :  { %4028 = vmatpush.bf16.msra.mxu3 %v5689_v57  ;;  %v5996_v57 = vld [vmem:[%s10376_s8 + $0x390] sm:$0xf]  ;;  %v6200_v52 = vld [vmem:[%s10376_s8 + $0x520] sm:$0xf]  ;;  %v6397_v55 = vor.u32 %v6941_v42, %v6396_v60  ;;  %v6752_v42 = vld [vmem:[%s10376_s8 + $0xd8] sm:$0xf0] }
 0x2cf   :  { %4054 = vmatpush.bf16.msra.mxu2 %v6137_v16  ;;  %v5746_v16 = vld [vmem:[%s10376_s8 + $0x1b4] sm:$0xf0]  ;;  %v5997_v24 = vor.u32 %v6842_v14, %v5996_v57  ;;  %v6902_v14 = vld [vmem:[%s10376_s8 + $0x58c] sm:$0xf]  ;;  %v5640_v60 = vld [vmem:[%s10376_s8 + $0xc0] sm:$0xf] }
 0x2d0   :  { %4043 = vmatpush.bf16.msra.mxu1 %v5857_v9  ;;  %v6194_v9 = vld [vmem:[%s10376_s8 + $0x534] sm:$0xf0] }
 0x2d1   :  { %4069 = vmatpush.bf16.msra.mxu0 %v6305_v10  ;;  %v6818_v10 = vld [vmem:[%s10376_s8 + $0x2ec] sm:$0xf] }
 0x2d2   :  { %4029 = vmatpush.bf16.msra.mxu3 %v5661_v25  ;;  %v5749_v25 = vor.u32 %v6776_v15, %v5746_v16  ;;  %v6250_v15 = vld [vmem:[%s10376_s8 + $0x5a4] sm:$0xf0]  ;;  %v6085_v16 = vor.u32 %v6860_v8, %v6082_v11  ;;  %v6885_v11 = vld [vmem:[%s10376_s8 + $0x500] sm:$0xf0] }
 0x2d3   :  { %4055 = vmatpush.bf16.msra.mxu2 %v6109_v27  ;;  %v6197_v27 = vor.u32 %v6888_v20, %v6194_v9  ;;  %v5606_v20 = vld [vmem:[%s10376_s8 + $0x9c] sm:$0xf0]  ;;  %v5805_v9 = vor.u32 %v6790_v3, %v5802_v13  ;;  %v6172_v8 = vld [vmem:[%s10376_s8 + $0x4e8] sm:$0xf]  ;;  %v5892_v3 = vld [vmem:[%s10376_s8 + $0x2b8] sm:$0xf] }
 0x2d4   :  { %4044 = vmatpush.bf16.msra.mxu1 %v5829_v56  ;;  %v5917_v56 = vor.u32 %v6818_v10, %v5914_v23  ;;  %v6783_v10 = vld [vmem:[%s10376_s8 + $0x1d4] sm:$0xf]  ;;  %v6253_v23 = vor.u32 %v6902_v14, %v6250_v15  ;;  %v6340_v14 = vld [vmem:[%s10376_s8 + $0x638] sm:$0xf] }
 0x2d5   :  { %4070 = vmatpush.bf16.msra.mxu0 %v6277_v32  ;;  %v6365_v32 = vor.u32 %v6930_v46, %v6362_v26  ;;  %v6222_v46 = vld [vmem:[%s10376_s8 + $0x56c] sm:$0xf0]  ;;  %v6815_v13 = vld [vmem:[%s10376_s8 + $0x2d0] sm:$0xf0] }
 0x2d6   :  { %4030 = vmatpush.bf16.msra.mxu3 %v5633_v37  ;;  %v5721_v37 = vor.u32 %v6769_v28, %v5718_v1  ;;  %v6836_v28 = vld [vmem:[%s10376_s8 + $0x378] sm:$0xf0]  ;;  %v6424_v1 = vld [vmem:[%s10376_s8 + $0x6e0] sm:$0xf]  ;;  %v6927_v15 = vld [vmem:[%s10376_s8 + $0x650] sm:$0xf0] }
 0x2d7   :  { %4056 = vmatpush.bf16.msra.mxu2 %v6081_v43  ;;  %v6169_v43 = vor.u32 %v6881_v30, %v6166_v31  ;;  %v6948_v30 = vld [vmem:[%s10376_s8 + $0x6f8] sm:$0xf0]  ;;  %v6734_v31 = vld [vmem:[%s10376_s8 + $0x4c] sm:$0xf] }
 0x2d8   :  { %4045 = vmatpush.bf16.msra.mxu1 %v5801_v45  ;;  %v5889_v45 = vor.u32 %v6811_v33, %v5886_v36  ;;  %v6846_v36 = vld [vmem:[%s10376_s8 + $0x3cc] sm:$0xf]  ;;  %v6425_v53 = vor.u32 %v6948_v30, %v6424_v1  ;;  %v6759_v30 = vld [vmem:[%s10376_s8 + $0x110] sm:$0xf0] }
 0x2d9   :  { %4071 = vmatpush.bf16.msra.mxu0 %v6249_v47  ;;  %v6804_v47 = vld [vmem:[%s10376_s8 + $0x27c] sm:$0xf] }
 0x2da   :  { %4031 = vmatpush.bf16.msra.mxu3 %v5605_v34  ;;  %v6306_v34 = vld [vmem:[%s10376_s8 + $0x614] sm:$0xf0] }
 0x2db   :  { %4057 = vmatpush.bf16.msra.mxu2 %v6053_v54  ;;  %v5861_v54 = vor.u32 %v6804_v47, %v5858_v49  ;;  %v6309_v59 = vor.u32 %v6916_v29, %v6306_v34  ;;  %v6727_v47 = vld [vmem:[%s10376_s8 + $0x14] sm:$0xf]  ;;  %v5550_v49 = vld [vmem:[%s10376_s8 + $0x2c] sm:$0xf0]  ;;  %v5752_v34 = vld [vmem:[%s10376_s8 + $0x1a0] sm:$0xf] }
 0x2dc   :  { %4046 = vmatpush.bf16.msra.mxu1 %v5773_v35  ;;  %v6797_v35 = vld [vmem:[%s10376_s8 + $0x244] sm:$0xf]  ;;  %v5998_v29 = vld [vmem:[%s10376_s8 + $0x3ac] sm:$0xf0]  ;;  %v5553_v58 = vor.u32 %v6727_v47, %v5550_v49  ;;  %v6088_v49 = vld [vmem:[%s10376_s8 + $0x440] sm:$0xf] }
 0x2dd   :  { %4072 = vmatpush.bf16.msra.mxu0 %v6221_v63  ;;  %v6909_v63 = vld [vmem:[%s10376_s8 + $0x5c4] sm:$0xf]  ;;  %v5833_v5 = vor.u32 %v6797_v35, %v5830_v61  ;;  %v6822_v35 = vld [vmem:[%s10376_s8 + $0x308] sm:$0xf0] }
 0x2de   :  { %4032 = vmatpush.bf16.msra.mxu3 %v5577_v41  ;;  %v5634_v41 = vld [vmem:[%s10376_s8 + $0xd4] sm:$0xf0] }
 0x2df   :  { %4058 = vmatpush.bf16.msra.mxu2 %v6025_v12  ;;  %4047 = vmatmul.bf16.vlgmr.msra.gmra.mxu1 %v9360_v48 }
 0x2e0   :  { %4091 = vmatpush.bf16.msrb.mxu1 %v5973_v0  ;;  %4073 = vmatmul.bf16.vlgmr.msra.gmra.mxu0 %v9368_v17  ;;  %v6278_v0 = vld [vmem:[%s10376_s8 + $0x5dc] sm:$0xf0] }
 0x2e1   :  { %4117 = vmatpush.bf16.msrb.mxu0 %v6421_v4  ;;  %v6748_v4 = vld [vmem:[%s10376_s8 + $0xbc] sm:$0xf]  ;;  %v6281_v12 = vor.u32 %v6909_v63, %v6278_v0  ;;  %v6368_v63 = vld [vmem:[%s10376_s8 + $0x670] sm:$0xf]  ;;  %v6934_v0 = vld [vmem:[%s10376_s8 + $0x688] sm:$0xf0] }
 0x2e2   :  { %4033 = vmatpush.bf16.msra.mxu3 %v5549_v22  ;;  %v5637_v57 = vor.u32 %v6748_v4, %v5634_v41  ;;  %v6054_v22 = vld [vmem:[%s10376_s8 + $0x41c] sm:$0xf0]  ;;  %v5724_v4 = vld [vmem:[%s10376_s8 + $0x168] sm:$0xf]  ;;  %v6773_v41 = vld [vmem:[%s10376_s8 + $0x180] sm:$0xf0] }
 0x2e3   :  { %4059 = vmatpush.bf16.msra.mxu2 %v5997_v24  ;;  %v5774_v24 = vld [vmem:[%s10376_s8 + $0x1ec] sm:$0xf0] }
 0x2e4   :  { %4092 = vmatpush.bf16.msrb.mxu1 %v5945_v18  ;;  %v6741_v18 = vld [vmem:[%s10376_s8 + $0x84] sm:$0xf]  ;;  %v5777_v33 = vor.u32 %v6783_v10, %v5774_v24  ;;  %v6878_v10 = vld [vmem:[%s10376_s8 + $0x4c8] sm:$0xf0]  ;;  %v6341_v24 = vor.u32 %v6927_v15, %v6340_v14  ;;  %v5584_v15 = vld [vmem:[%s10376_s8 + $0x50] sm:$0xf] }
 0x2e5   :  { %4118 = vmatpush.bf16.msrb.mxu0 %v6393_v21  ;;  %4034 = vmatmul.bf16.vlgmr.msra.gmra.mxu3 %v9402_v38  ;;  %v6853_v21 = vld [vmem:[%s10376_s8 + $0x404] sm:$0xf]  ;;  %v5609_v26 = vor.u32 %v6741_v18, %v5606_v20  ;;  %v5696_v18 = vld [vmem:[%s10376_s8 + $0x130] sm:$0xf]  ;;  %v6766_v20 = vld [vmem:[%s10376_s8 + $0x148] sm:$0xf0] }
 0x2e6   :  { %4078 = vmatpush.bf16.msrb.mxu3 %v5749_v25  ;;  %4060 = vmatmul.bf16.vlgmr.msra.gmra.mxu2 %v9410_v44  ;;  %v6895_v25 = vld [vmem:[%s10376_s8 + $0x554] sm:$0xf] }
 0x2e7   :  { %4104 = vmatpush.bf16.msrb.mxu2 %v6197_v27  ;;  %v5976_v27 = vld [vmem:[%s10376_s8 + $0x360] sm:$0xf]  ;;  %v6225_v40 = vor.u32 %v6895_v25, %v6222_v46  ;;  %v6808_v46 = vld [vmem:[%s10376_s8 + $0x298] sm:$0xf0] }
 0x2e8   :  { %4093 = vmatpush.bf16.msrb.mxu1 %v5917_v56  ;;  %v6057_v56 = vor.u32 %v6853_v21, %v6054_v22  ;;  %v5977_v6 = vor.u32 %v6836_v28, %v5976_v27  ;;  %v5893_v21 = vor.u32 %v6815_v13, %v5892_v3  ;;  %v6144_v22 = vld [vmem:[%s10376_s8 + $0x4b0] sm:$0xf]  ;;  %v5864_v25 = vld [vmem:[%s10376_s8 + $0x280] sm:$0xf]  ;;  %v6920_v28 = vld [vmem:[%s10376_s8 + $0x618] sm:$0xf0] }
 0x2e9   :  { %4119 = vmatpush.bf16.msrb.mxu0 %v6365_v32  ;;  %v5578_v32 = vld [vmem:[%s10376_s8 + $0x64] sm:$0xf0]  ;;  %v6312_v27 = vld [vmem:[%s10376_s8 + $0x600] sm:$0xf]  ;;  %v6145_v1 = vor.u32 %v6878_v10, %v6144_v22  ;;  %v6228_v3 = vld [vmem:[%s10376_s8 + $0x558] sm:$0xf] }
 0x2ea   :  { %4079 = vmatpush.bf16.msrb.mxu3 %v5721_v37  ;;  %v6026_v37 = vld [vmem:[%s10376_s8 + $0x3e4] sm:$0xf0]  ;;  %v5581_v19 = vor.u32 %v6734_v31, %v5578_v32  ;;  %v5865_v31 = vor.u32 %v6808_v46, %v5864_v25  ;;  %v6116_v32 = vld [vmem:[%s10376_s8 + $0x478] sm:$0xf]  ;;  %v6899_v13 = vld [vmem:[%s10376_s8 + $0x570] sm:$0xf0] }
 0x2eb   :  { %4105 = vmatpush.bf16.msrb.mxu2 %v6169_v43  ;;  %v5948_v43 = vld [vmem:[%s10376_s8 + $0x328] sm:$0xf] }
 0x2ec   :  { %4094 = vmatpush.bf16.msrb.mxu1 %v5889_v45  ;;  %v6829_v45 = vld [vmem:[%s10376_s8 + $0x340] sm:$0xf0] }
 0x2ed   :  { %4120 = vmatpush.bf16.msrb.mxu0 %v6337_v7  ;;  %v6029_v7 = vor.u32 %v6846_v36, %v6026_v37  ;;  %v5949_v51 = vor.u32 %v6829_v45, %v5948_v43  ;;  %v6313_v36 = vor.u32 %v6920_v28, %v6312_v27  ;;  %v5836_v37 = vld [vmem:[%s10376_s8 + $0x248] sm:$0xf]  ;;  %v5556_v27 = vld [vmem:[%s10376_s8 + $0x18] sm:$0xf]  ;;  %v6731_v28 = vld [vmem:[%s10376_s8 + $0x30] sm:$0xf0] }
 0x2ee   :  { %4080 = vmatpush.bf16.msrb.mxu3 %v5693_v50  ;;  %v6839_v50 = vld [vmem:[%s10376_s8 + $0x394] sm:$0xf]  ;;  %v6284_v43 = vld [vmem:[%s10376_s8 + $0x5c8] sm:$0xf] }
 0x2ef   :  { %4106 = vmatpush.bf16.msrb.mxu2 %v6141_v39  ;;  %v6780_v39 = vld [vmem:[%s10376_s8 + $0x1b8] sm:$0xf0]  ;;  %v6001_v61 = vor.u32 %v6839_v50, %v5998_v29 }
 0x2f0   :  { %4095 = vmatpush.bf16.msrb.mxu1 %v5861_v54  ;;  %v6892_v54 = vld [vmem:[%s10376_s8 + $0x538] sm:$0xf0] }
 0x2f1   :  { %4121 = vmatpush.bf16.msrb.mxu0 %v6309_v59  ;;  %v5920_v59 = vld [vmem:[%s10376_s8 + $0x2f0] sm:$0xf]  ;;  %v6864_v50 = vld [vmem:[%s10376_s8 + $0x458] sm:$0xf0] }
 0x2f2   :  { %4081 = vmatpush.bf16.msrb.mxu3 %v5665_v62  ;;  %v5753_v62 = vor.u32 %v6780_v39, %v5752_v34 }
 0x2f3   :  { %4107 = vmatpush.bf16.msrb.mxu2 %v6113_v2  ;;  %v6201_v2 = vor.u32 %v6892_v54, %v6200_v52  ;;  %v6794_v52 = vld [vmem:[%s10376_s8 + $0x228] sm:$0xf0]  ;;  %v5641_v54 = vor.u32 %v6752_v42, %v5640_v60 }
 0x2f4   :  { %4096 = vmatpush.bf16.msrb.mxu1 %v5833_v5  ;;  %v5921_v5 = vor.u32 %v6822_v35, %v5920_v59  ;;  %v6089_v59 = vor.u32 %v6864_v50, %v6088_v49  ;;  %v5612_v35 = vld [vmem:[%s10376_s8 + $0x88] sm:$0xf] }
 0x2f5   :  { %4122 = vmatpush.bf16.msrb.mxu0 %v6281_v12  ;;  %v6369_v12 = vor.u32 %v6934_v0, %v6368_v63  ;;  %v6060_v0 = vld [vmem:[%s10376_s8 + $0x408] sm:$0xf] }
 0x2f6   :  { %4082 = vmatpush.bf16.msrb.mxu3 %v5637_v57  ;;  %v5725_v57 = vor.u32 %v6773_v41, %v5724_v4 }
 0x2f7   :  { %4108 = vmatpush.bf16.msrb.mxu2 %v6085_v16  ;;  %v6173_v16 = vor.u32 %v6885_v11, %v6172_v8  ;;  %v5780_v8 = vld [vmem:[%s10376_s8 + $0x1d8] sm:$0xf]  ;;  %v6787_v11 = vld [vmem:[%s10376_s8 + $0x1f0] sm:$0xf0] }
 0x2f8   :  { %4097 = vmatpush.bf16.msrb.mxu1 %v5805_v9 }
 0x2f9   :  { %4123 = vmatpush.bf16.msrb.mxu0 %v6253_v23 }
 0x2fa   :  { %4083 = vmatpush.bf16.msrb.mxu3 %v5609_v26  ;;  %v5697_v26 = vor.u32 %v6766_v20, %v5696_v18  ;;  %v5781_v20 = vor.u32 %v6787_v11, %v5780_v8 }
 0x2fb   :  { %4109 = vmatpush.bf16.msrb.mxu2 %v6057_v56  ;;  %v5668_v56 = vld [vmem:[%s10376_s8 + $0xf8] sm:$0xf] }
 0x2fc   :  { %4098 = vmatpush.bf16.msrb.mxu1 %v5777_v33  ;;  %v10225_v9 = vpop.f32.mrf.mxu1  ;;  %v6871_v33 = vld [vmem:[%s10376_s8 + $0x490] sm:$0xf0] }
 0x2fd   :  { %4124 = vmatpush.bf16.msrb.mxu0 %v6225_v40  ;;  %v10234_v23 = vpop.f32.mrf.mxu0  ;;  %v6801_v40 = vld [vmem:[%s10376_s8 + $0x260] sm:$0xf0]  ;;  %v6117_v45 = vor.u32 %v6871_v33, %v6116_v32  ;;  %v5557_v32 = vor.u32 %v6731_v28, %v5556_v27 }
 0x2fe   :  { %4084 = vmatpush.bf16.msrb.mxu3 %v5581_v19  ;;  %v10275_v19 = vld [vmem:[%s10377_s9] sm:$0x7f]  ;;  %v5837_v47 = vor.u32 %v6801_v40, %v5836_v37 }
 0x2ff   :  { %4110 = vmatpush.bf16.msrb.mxu2 %v6029_v7  ;;  %4099 = vmatmul.bf16.vlgmr.msrb.gmra.mxu1 %v9360_v48  ;;  %v2652_v39 = vperm.slane %v10275_v19, 0  ;;  %v2653_v40 = vperm.slane %v10275_v19, 1  ;;  %v2655_v28 = vperm.slane %v10275_v19, 3 }
 0x300   :  { %4143 = vmatpush.bf16.msra.mxu1 %v5977_v6  ;;  %4125 = vmatmul.bf16.vlgmr.msrb.gmra.mxu0 %v9368_v17  ;;  %v5669_v6 = vor.u32 %v6759_v30, %v5668_v56  ;;  %v6004_v56 = vld [vmem:[%s10376_s8 + $0x398] sm:$0xf] }
 0x301   :  { %4169 = vmatpush.bf16.msra.mxu0 %v6425_v53  ;;  %v6913_v53 = vld [vmem:[%s10376_s8 + $0x5e0] sm:$0xf0] }
 0x302   :  { %4085 = vmatpush.bf16.msrb.mxu3 %v5553_v58  ;;  %v6285_v34 = vor.u32 %v6913_v53, %v6284_v43  ;;  %v6906_v58 = vld [vmem:[%s10376_s8 + $0x5a8] sm:$0xf0] }
 0x303   :  { %4111 = vmatpush.bf16.msrb.mxu2 %v6001_v61  ;;  %v6745_v61 = vld [vmem:[%s10376_s8 + $0xa0] sm:$0xf0] }
 0x304   :  { %4144 = vmatpush.bf16.msra.mxu1 %v5949_v51  ;;  %v3842_v7 = vpop.f32.mrf.mxu1  ;;  %v5808_v51 = vld [vmem:[%s10376_s8 + $0x210] sm:$0xf] }
 0x305   :  { %4170 = vmatpush.bf16.msra.mxu0 %v6397_v55  ;;  %4086 = vmatmul.bf16.vlgmr.msrb.gmra.mxu3 %v9402_v38  ;;  %v3868_v29 = vpop.f32.mrf.mxu0  ;;  %v6256_v55 = vld [vmem:[%s10376_s8 + $0x590] sm:$0xf]  ;;  %v5809_v63 = vor.u32 %v6794_v52, %v5808_v51  ;;  %v2654_v52 = vperm.slane %v10275_v19, 2 }
 0x306   :  { %4130 = vmatpush.bf16.msra.mxu3 %v5753_v62  ;;  %4112 = vmatmul.bf16.vlgmr.msrb.gmra.mxu2 %v9410_v44 }
 0x307   :  { %4156 = vmatpush.bf16.msra.mxu2 %v6201_v2  ;;  %v6857_v2 = vld [vmem:[%s10376_s8 + $0x420] sm:$0xf0] }
 0x308   :  { %4145 = vmatpush.bf16.msra.mxu1 %v5921_v5  ;;  %v3827_v62 = vpop.f32.mrf.mxu3  ;;  %v6257_v5 = vor.u32 %v6906_v58, %v6256_v55  ;;  %v6061_v14 = vor.u32 %v6857_v2, %v6060_v0 }
 0x309   :  { %4171 = vmatpush.bf16.msra.mxu0 %v6369_v12  ;;  %v3828_v4 = vadd.f32 %v3827_v62, %v2652_v39  ;;  %v3853_v41 = vpop.f32.mrf.mxu2  ;;  %v5613_v12 = vor.u32 %v6745_v61, %v5612_v35 }
 0x30a   :  { %4131 = vmatpush.bf16.msra.mxu3 %v5725_v57 }
 0x30b   :  { %4157 = vmatpush.bf16.msra.mxu2 %v6173_v16  ;;  %v3841_v57 = vadd.f32 %v10225_v9, %v3828_v4  ;;  %v6738_v16 = vld [vmem:[%s10376_s8 + $0x68] sm:$0xf0] }
 0x30c   :  { %4146 = vmatpush.bf16.msra.mxu1 %v5893_v21  ;;  %v3892_v18 = vpop.f32.mrf.mxu1  ;;  %v6032_v21 = vld [vmem:[%s10376_s8 + $0x3d0] sm:$0xf]  ;;  %v6850_v9 = vld [vmem:[%s10376_s8 + $0x3e8] sm:$0xf0]  ;;  %v5585_v25 = vor.u32 %v6738_v16, %v5584_v15 }
 0x30d   :  { %4172 = vmatpush.bf16.msra.mxu0 %v6341_v24  ;;  %v3854_v22 = vadd.f32 %v3853_v41, %v3841_v57  ;;  %v3918_v10 = vpop.f32.mrf.mxu0  ;;  %v6229_v24 = vor.u32 %v6899_v13, %v6228_v3 }
 0x30e   :  { %4132 = vmatpush.bf16.msra.mxu3 %v5697_v26  ;;  %v6033_v26 = vor.u32 %v6850_v9, %v6032_v21 }
 0x30f   :  { %4158 = vmatpush.bf16.msra.mxu2 %v6145_v1  ;;  %v3867_v46 = vadd.f32 %v10234_v23, %v3854_v22  ;;  %v6843_v23 = vld [vmem:[%s10376_s8 + $0x3b0] sm:$0xf0]  ;;  %s7033_s8 = smov [#allocation4]  }
 0x310   :  { %4147 = vmatpush.bf16.msra.mxu1 %v5865_v31  ;;  %v3829_v1 = vpop.f32.mrf.mxu3  ;;  %v6005_v33 = vor.u32 %v6843_v23, %v6004_v56  ;;  %s4342_s1 = sshll.u32 %s7033_s8, 4  ;;  %s4343_s1 = int_to_ptr.vmem [resolvable:$true] %s4342_s1 }
 0x311   :  { %4173 = vmatpush.bf16.msra.mxu0 %v6313_v36  ;;  %v6426_v30 = vmul.f32 -1.442695, %v3867_v46  ;;  %v3855_v31 = vpop.f32.mrf.mxu2  ;;  %4347 = dma.vmem_to_hbm [thread:$0]  %s4343_s1, 256, %s4345_s21, [#allocation5]  }
 0x312   :  { %4133 = vmatpush.bf16.msra.mxu3 %v5669_v6 }
 0x313   :  { %4159 = vmatpush.bf16.msra.mxu2 %v6117_v45  ;;  %6953 = vpow2.f32 %v6426_v30 }
 0x314   :  { %4148 = vmatpush.bf16.msra.mxu1 %v5837_v47  ;;  %v3894_v36 = vpop.f32.mrf.mxu1 }
 0x315   :  { %4174 = vmatpush.bf16.msra.mxu0 %v6285_v34  ;;  %v3920_v37 = vpop.f32.mrf.mxu0 }
 0x316   :  { %4134 = vmatpush.bf16.msra.mxu3 %v5641_v54 }
 0x317   :  { %4160 = vmatpush.bf16.msra.mxu2 %v6089_v59 }
 0x318   :  { %4149 = vmatpush.bf16.msra.mxu1 %v5809_v63  ;;  %v3879_v6 = vpop.f32.mrf.mxu3 }
 0x319   :  { %4175 = vmatpush.bf16.msra.mxu0 %v6257_v5  ;;  %v6954_v43 = vpop.eup %6953  ;;  %v3880_v53 = vadd.f32 %v3879_v6, %v2653_v40  ;;  %v3905_v45 = vpop.f32.mrf.mxu2 }
 0x31a   :  { %4135 = vmatpush.bf16.msra.mxu3 %v5613_v12  ;;  %v4203_v42 = vadd.f32 1.0, %v6954_v43 }
 0x31b   :  { %4161 = vmatpush.bf16.msra.mxu2 %v6061_v14  ;;  %v3893_v60 = vadd.f32 %v3892_v18, %v3880_v53 }
 0x31c   :  { %4150 = vmatpush.bf16.msra.mxu1 %v5781_v20  ;;  %6955 = vrcp.f32 %v4203_v42  ;;  %vm4215_vm2 = vweird.f32 %v4203_v42  ;;  %v4221_v11 = vand.u32 2147483648, %v4203_v42  ;;  %v4219_v3 = vand.u32 2147483647, %v4203_v42 }
 0x31d   :  { %4176 = vmatpush.bf16.msra.mxu0 %v6229_v24  ;;  %v3906_v7 = vadd.f32 %v3905_v45, %v3893_v60  ;;  %v3970_v47 = vpop.f32.mrf.mxu0 }
 0x31e   :  { %4136 = vmatpush.bf16.msra.mxu3 %v5585_v25  ;;  %v4222_v21 = vor.u32 1.1754944e-38, %v4221_v11  ;;  %vm4220_vm7 = vcmp.eq.f32.partialorder %v4219_v3, 8.507059e+37 }
 0x31f   :  { %4162 = vmatpush.bf16.msra.mxu2 %v6033_v26  ;;  %4151 = vmatmul.bf16.vlgmr.msra.gmra.mxu1 %v9360_v48  ;;  %v3944_v48 = vpop.f32.mrf.mxu1 }
 0x320   :  { %4177 = vmatmul.bf16.vlgmr.msra.gmra.mxu0 %v9368_v17  ;;  %v3919_v17 = vadd.f32 %v3918_v10, %v3906_v7  ;;  %v3881_v49 = vpop.f32.mrf.mxu3 }
 0x321   :  { %v3907_v29 = vpop.f32.mrf.mxu2 }
 0x322   :  { %4137 = vmatpush.bf16.msra.mxu3 %v5557_v32  ;;  %v6427_v50 = vmul.f32 -1.442695, %v3919_v17  ;;  %v6956_v51 = vpop.eup %6955 }
 0x323   :  { %4163 = vmatpush.bf16.msra.mxu2 %v6005_v33  ;;  %v4211_v55 = vmul.f32 %v6956_v51, %v4203_v42  ;;  %vm4216_vm1 = vweird.f32 %v6956_v51 }
 0x324   :  { %6957 = vpow2.f32 %v6427_v50  ;;  %vm4217_vm4 = vmor %vm4215_vm2, %vm4216_vm1 }
 0x325   :  { %4138 = vmatmul.bf16.vlgmr.msra.gmra.mxu3 %v9402_v38  ;;  %v3972_v39 = vpop.f32.mrf.mxu0  ;;  %v4212_v35 = vsub.f32 1.0, %v4211_v55 }
 0x326   :  { %4164 = vmatmul.bf16.vlgmr.msra.gmra.mxu2 %v9410_v44  ;;  %v2656_v39 = vperm.slane %v10275_v19, 4 }
 0x327   :  { %v3946_v34 = vpop.f32.mrf.mxu1  ;;  %v4213_v0 = vmul.f32 %v6956_v51, %v4212_v35 }
 0x328   :  { %v3931_v54 = vpop.f32.mrf.mxu3 }
 0x329   :  { %v3957_v44 = vpop.f32.mrf.mxu2  ;;  %v3932_v59 = vadd.f32 %v3931_v54, %v2654_v52  ;;  %v4214_v8 = vadd.f32 %v6956_v51, %v4213_v0 }
 0x32a   :  { %v6958_v38 = vpop.eup %6957 }
 0x32b   :  { %v4204_v58 = vadd.f32 1.0, %v6958_v38  ;;  %v3945_v61 = vadd.f32 %v3944_v48, %v3932_v59  ;;  %v4218_v16 = vsel %vm4217_vm4, %v6956_v51, %v4214_v8 }
 0x32c   :  { %v4223_v24 = vsel %vm4220_vm7, %v4222_v21, %v4218_v16 }
 0x32d   :  { %6959 = vrcp.f32 %v4204_v58  ;;  %v3958_v41 = vadd.f32 %v3957_v44, %v3945_v61  ;;  %v4236_v12 = vand.u32 2147483648, %v4204_v58  ;;  %v4234_v57 = vand.u32 2147483647, %v4204_v58 }
 0x32e   :  { %vm4230_vm5 = vweird.f32 %v4204_v58 }
 0x32f   :  { %v3971_v14 = vadd.f32 %v3970_v47, %v3958_v41  ;;  %v4237_v9 = vor.u32 1.1754944e-38, %v4236_v12  ;;  %vm4235_vm8 = vcmp.eq.f32.partialorder %v4234_v57, 8.507059e+37 }
 0x330   :  { %v3933_v62 = vpop.f32.mrf.mxu3 }
 0x331   :  { %v3959_v63 = vpop.f32.mrf.mxu2  ;;  %v6428_v10 = vmul.f32 -1.442695, %v3971_v14 }
 0x333   :  { %v6960_v2 = vpop.eup %6959  ;;  %6961 = vpow2.f32 %v6428_v10 }
 0x334   :  { %v4226_v4 = vmul.f32 %v6960_v2, %v4204_v58  ;;  %vm4231_vm3 = vweird.f32 %v6960_v2 }
 0x335   :  { %vm4232_vm6 = vmor %vm4230_vm5, %vm4231_vm3 }
 0x336   :  { %v4227_v5 = vsub.f32 1.0, %v4226_v4 }
 0x338   :  { %v4228_v13 = vmul.f32 %v6960_v2, %v4227_v5 }
 0x339   :  { %v6962_v56 = vpop.eup %6961 }
 0x33a   :  { %v4229_v18 = vadd.f32 %v6960_v2, %v4228_v13  ;;  %v4205_v32 = vadd.f32 1.0, %v6962_v56 }
 0x33c   :  { %v3996_v15 = vpop.f32.mrf.mxu1  ;;  %v4233_v22 = vsel %vm4232_vm6, %v6960_v2, %v4229_v18  ;;  %6963 = vrcp.f32 %v4205_v32  ;;  %vm4245_vm10 = vweird.f32 %v4205_v32  ;;  %v4251_v38 = vand.u32 2147483648, %v4205_v32 }
 0x33d   :  { %v4022_v20 = vpop.f32.mrf.mxu0  ;;  %v4238_v25 = vsel %vm4235_vm8, %v4237_v9, %v4233_v22  ;;  %v4249_v44 = vand.u32 2147483647, %v4205_v32 }
 0x33e   :  { %v4315_v46 = vpack.c.bf16 %v4238_v25, %v4223_v24  ;;  %v4252_v63 = vor.u32 1.1754944e-38, %v4251_v38 }
 0x33f   :  { %vm4250_vm15 = vcmp.eq.f32.partialorder %v4249_v44, 8.507059e+37 }
 0x340   :  { %4319 = vst [vmem:[#allocation2] sm:$0xff] %v4315_v46 }
 0x342   :  { %v6964_v43 = vpop.eup %6963 }
 0x343   :  { %v4241_v45 = vmul.f32 %v6964_v43, %v4205_v32  ;;  %vm4246_vm9 = vweird.f32 %v6964_v43 }
 0x344   :  { %v3998_v26 = vpop.f32.mrf.mxu1  ;;  %vm4247_vm12 = vmor %vm4245_vm10, %vm4246_vm9 }
 0x345   :  { %v4024_v27 = vpop.f32.mrf.mxu0  ;;  %v4242_v7 = vsub.f32 1.0, %v4241_v45 }
 0x347   :  { %v4243_v17 = vmul.f32 %v6964_v43, %v4242_v7 }
 0x348   :  { %v3983_v1 = vpop.f32.mrf.mxu3 }
 0x349   :  { %v3984_v23 = vadd.f32 %v3983_v1, %v2655_v28  ;;  %v4009_v30 = vpop.f32.mrf.mxu2  ;;  %v4244_v52 = vadd.f32 %v6964_v43, %v4243_v17 }
 0x34b   :  { %v3997_v31 = vadd.f32 %v3996_v15, %v3984_v23  ;;  %v4248_v61 = vsel %vm4247_vm12, %v6964_v43, %v4244_v52 }
 0x34c   :  { %v4253_v4 = vsel %vm4250_vm15, %v4252_v63, %v4248_v61 }
 0x34d   :  { %v4010_v33 = vadd.f32 %v4009_v30, %v3997_v31 }
 0x34f   :  { %v4023_v36 = vadd.f32 %v4022_v20, %v4010_v33  ;;  %v2657_v20 = vperm.slane %v10275_v19, 5 }
 0x350   :  { %v3985_v37 = vpop.f32.mrf.mxu3 }
 0x351   :  { %v6429_v40 = vmul.f32 -1.442695, %v4023_v36  ;;  %v4011_v6 = vpop.f32.mrf.mxu2 }
 0x353   :  { %6965 = vpow2.f32 %v6429_v40 }
 0x359   :  { %v6966_v53 = vpop.eup %6965 }
 0x35a   :  { %v4206_v42 = vadd.f32 1.0, %v6966_v53  ;;  %v2658_v53 = vperm.slane %v10275_v19, 6 }
 0x35c   :  { %v4048_v60 = vpop.f32.mrf.mxu1  ;;  %6967 = vrcp.f32 %v4206_v42  ;;  %v4266_v55 = vand.u32 2147483648, %v4206_v42  ;;  %v4264_v59 = vand.u32 2147483647, %v4206_v42  ;;  %vm4260_vm13 = vweird.f32 %v4206_v42 }
 0x35d   :  { %v4074_v48 = vpop.f32.mrf.mxu0 }
 0x35e   :  { %v4267_v0 = vor.u32 1.1754944e-38, %v4266_v55  ;;  %vm4265_vm0 = vcmp.eq.f32.partialorder %v4264_v59, 8.507059e+37 }
 0x362   :  { %v6968_v49 = vpop.eup %6967 }
 0x363   :  { %v4256_v29 = vmul.f32 %v6968_v49, %v4206_v42  ;;  %vm4261_vm11 = vweird.f32 %v6968_v49 }
 0x364   :  { %v4050_v47 = vpop.f32.mrf.mxu1  ;;  %vm4262_vm14 = vmor %vm4260_vm13, %vm4261_vm11  ;;  %vm4322_vm13 = vcmask 125952  }
 0x365   :  { %v4076_v50 = vpop.f32.mrf.mxu0  ;;  %v4257_v34 = vsub.f32 1.0, %v4256_v29 }
 0x367   :  { %v4258_v58 = vmul.f32 %v6968_v49, %v4257_v34 }
 0x368   :  { %v4035_v51 = vpop.f32.mrf.mxu3 }
 0x369   :  { %v4061_v54 = vpop.f32.mrf.mxu2  ;;  %v4036_v35 = vadd.f32 %v4035_v51, %v2656_v39  ;;  %v4259_v62 = vadd.f32 %v6968_v49, %v4258_v58 }
 0x36b   :  { %v4263_v2 = vsel %vm4262_vm14, %v6968_v49, %v4259_v62  ;;  %v4049_v5 = vadd.f32 %v4048_v60, %v4036_v35 }
 0x36c   :  { %v4268_v41 = vsel %vm4265_vm0, %v4267_v0, %v4263_v2 }
 0x36d   :  { %v4316_v11 = vpack.c.bf16 %v4268_v41, %v4253_v4  ;;  %v4062_v3 = vadd.f32 %v4061_v54, %v4049_v5 }
 0x36f   :  { %4320 = vst [vmem:[#allocation2 + $0x8] sm:$0xff] %v4316_v11  ;;  %v4075_v13 = vadd.f32 %v4074_v48, %v4062_v3 }
 0x370   :  { %v4037_v8 = vpop.f32.mrf.mxu3 }
 0x371   :  { %v4063_v12 = vpop.f32.mrf.mxu2  ;;  %v6430_v15 = vmul.f32 -1.442695, %v4075_v13 }
 0x373   :  { %6969 = vpow2.f32 %v6430_v15 }
 0x379   :  { %v6970_v9 = vpop.eup %6969 }
 0x37a   :  { %v4207_v25 = vadd.f32 1.0, %v6970_v9 }
 0x37c   :  { %v4100_v57 = vpop.f32.mrf.mxu1  ;;  %6971 = vrcp.f32 %v4207_v25  ;;  %vm4275_vm2 = vweird.f32 %v4207_v25  ;;  %v4281_v17 = vand.u32 2147483648, %v4207_v25  ;;  %v4279_v50 = vand.u32 2147483647, %v4207_v25 }
 0x37d   :  { %v4126_v14 = vpop.f32.mrf.mxu0 }
 0x37e   :  { %v4282_v54 = vor.u32 1.1754944e-38, %v4281_v17  ;;  %vm4280_vm7 = vcmp.eq.f32.partialorder %v4279_v50, 8.507059e+37 }
 0x382   :  { %v6972_v56 = vpop.eup %6971 }
 0x383   :  { %v4271_v30 = vmul.f32 %v6972_v56, %v4207_v25  ;;  %vm4276_vm1 = vweird.f32 %v6972_v56 }
 0x384   :  { %v4102_v16 = vpop.f32.mrf.mxu1  ;;  %vm4277_vm4 = vmor %vm4275_vm2, %vm4276_vm1 }
 0x385   :  { %v4128_v18 = vpop.f32.mrf.mxu0  ;;  %v4272_v36 = vsub.f32 1.0, %v4271_v30 }
 0x387   :  { %v4273_v40 = vmul.f32 %v6972_v56, %v4272_v36 }
 0x388   :  { %v4087_v21 = vpop.f32.mrf.mxu3 }
 0x389   :  { %v4088_v22 = vadd.f32 %v4087_v21, %v2657_v20  ;;  %v4113_v10 = vpop.f32.mrf.mxu2  ;;  %v4274_v48 = vadd.f32 %v6972_v56, %v4273_v40 }
 0x38b   :  { %v4101_v24 = vadd.f32 %v4100_v57, %v4088_v22  ;;  %v4278_v51 = vsel %vm4277_vm4, %v6972_v56, %v4274_v48 }
 0x38c   :  { %v4283_v58 = vsel %vm4280_vm7, %v4282_v54, %v4278_v51 }
 0x38d   :  { %v4114_v46 = vadd.f32 %v4113_v10, %v4101_v24 }
 0x38f   :  { %v4127_v26 = vadd.f32 %v4126_v14, %v4114_v46 }
 0x390   :  { %v4089_v27 = vpop.f32.mrf.mxu3 }
 0x391   :  { %v6431_v28 = vmul.f32 -1.442695, %v4127_v26  ;;  %v4115_v1 = vpop.f32.mrf.mxu2 }
 0x393   :  { %6973 = vpow2.f32 %v6431_v28 }
 0x399   :  { %v6974_v23 = vpop.eup %6973 }
 0x39a   :  { %v4208_v32 = vadd.f32 1.0, %v6974_v23 }
 0x39c   :  { %v4152_v31 = vpop.f32.mrf.mxu1  ;;  %6975 = vrcp.f32 %v4208_v32  ;;  %v4296_v49 = vand.u32 2147483648, %v4208_v32  ;;  %v4294_v34 = vand.u32 2147483647, %v4208_v32  ;;  %vm4290_vm5 = vweird.f32 %v4208_v32 }
 0x39d   :  { %v4178_v33 = vpop.f32.mrf.mxu0 }
 0x39e   :  { %v4297_v38 = vor.u32 1.1754944e-38, %v4296_v49  ;;  %vm4295_vm8 = vcmp.eq.f32.partialorder %v4294_v34, 8.507059e+37 }
 0x3a2   :  { %v6976_v6 = vpop.eup %6975 }
 0x3a3   :  { %v4286_v45 = vmul.f32 %v6976_v6, %v4208_v32  ;;  %vm4291_vm3 = vweird.f32 %v6976_v6 }
 0x3a4   :  { %v4154_v37 = vpop.f32.mrf.mxu1  ;;  %vm4292_vm6 = vmor %vm4290_vm5, %vm4291_vm3 }
 0x3a5   :  { %v4180_v43 = vpop.f32.mrf.mxu0  ;;  %v4287_v60 = vsub.f32 1.0, %v4286_v45 }
 0x3a7   :  { %v4288_v29 = vmul.f32 %v6976_v6, %v4287_v60 }
 0x3a8   :  { %v4139_v42 = vpop.f32.mrf.mxu3 }
 0x3a9   :  { %v4140_v7 = vadd.f32 %v4139_v42, %v2658_v53  ;;  %v4165_v47 = vpop.f32.mrf.mxu2  ;;  %v4289_v52 = vadd.f32 %v6976_v6, %v4288_v29 }
 0x3ab   :  { %v4153_v39 = vadd.f32 %v4152_v31, %v4140_v7  ;;  %v4293_v55 = vsel %vm4292_vm6, %v6976_v6, %v4289_v52 }
 0x3ac   :  { %v4298_v59 = vsel %vm4295_vm8, %v4297_v38, %v4293_v55 }
 0x3ad   :  { %v4166_v19 = vadd.f32 %v4165_v47, %v4153_v39  ;;  %v4317_v61 = vpack.c.bf16 %v4298_v59, %v4283_v58 }
 0x3af   :  { %v4179_v44 = vadd.f32 %v4178_v33, %v4166_v19  ;;  %4321 = vst [vmem:[#allocation2 + $0x10] sm:$0xff] %v4317_v61 }
 0x3b0   :  { %v4141_v35 = vpop.f32.mrf.mxu3 }
 0x3b1   :  { %v6432_v62 = vmul.f32 -1.442695, %v4179_v44  ;;  %v4167_v63 = vpop.f32.mrf.mxu2 }
 0x3b3   :  { %6977 = vpow2.f32 %v6432_v62 }
 0x3b9   :  { %v6978_v0 = vpop.eup %6977 }
 0x3ba   :  { %v4209_v2 = vadd.f32 1.0, %v6978_v0 }
 0x3bc   :  { %6979 = vrcp.f32 %v4209_v2  ;;  %v4311_v8 = vand.u32 2147483648, %v4209_v2  ;;  %v4309_v12 = vand.u32 2147483647, %v4209_v2  ;;  %vm4305_vm10 = vweird.f32 %v4209_v2 }
 0x3be   :  { %v4312_v13 = vor.u32 1.1754944e-38, %v4311_v8  ;;  %vm4310_vm12 = vcmp.eq.f32.partialorder %v4309_v12, 8.507059e+37 }
 0x3c2   :  { %v6980_v4 = vpop.eup %6979 }
 0x3c3   :  { %v4301_v41 = vmul.f32 %v6980_v4, %v4209_v2  ;;  %vm4306_vm9 = vweird.f32 %v6980_v4 }
 0x3c4   :  { %vm4307_vm11 = vmor %vm4305_vm10, %vm4306_vm9 }
 0x3c5   :  { %v4302_v5 = vsub.f32 1.0, %v4301_v41 }
 0x3c7   :  { %v4303_v11 = vmul.f32 %v6980_v4, %v4302_v5 }
 0x3c9   :  { %v4304_v3 = vadd.f32 %v6980_v4, %v4303_v11 }
 0x3cb   :  { %v4308_v57 = vsel %vm4307_vm11, %v6980_v4, %v4304_v3 }
 0x3cc   :  { %v4313_v14 = vsel %vm4310_vm12, %v4312_v13, %v4308_v57 }
 0x3cd   :  { %v4318_v15 = vpack.c.bf16 %v4313_v14, %v4313_v14 }
 0x3cf   :  { %4323 = vst.msk [vmem:[#allocation2 + $0x18] sm:$0xf] %vm4322_vm13, %v4318_v15 }
 0x3d0   :  { %4336 = dma.vmem_to_hbm [thread:$0]  %s4332_s22, 448, %s4334_s24, [#allocation3]  }
 0x3d1   :  { %7029 = dma.done.wait [#allocation3], 448  }
 0x3d2   :  { %7030 = vsyncadd [#allocation3], 4294966848 }
 0x3d3   :  { %7031 = dma.done.wait [#allocation5], 256  }
 0x3d4   :  { %7032 = vsyncadd [#allocation5], 4294967040 }
 0x3d5   :  { %4356 = vsyncpa [#allocation3], 1 }
 0x3d6   :  { %4357 = vsyncpa [#allocation5], 1 }

</bundles_post_ra>
